<compile_context>
chip_gen: v7x
topology: tpu7x:2x2x1
jax: 0.10.0
libtpu: 0.0.40
codegen_flags: <defaults>
</compile_context>

<pallas_src>
import math
import functools
import numpy as np

import jax
import jax.numpy as jnp
from jax.experimental import pallas as pl
from jax.experimental.pallas import tpu as pltpu


# ---------------------------------------------------------------------------
# in-kernel helpers
# ---------------------------------------------------------------------------
def _layer_norm(x, gamma, beta, eps=1e-5):
    mu = jnp.mean(x, axis=-1, keepdims=True)
    var = jnp.mean(jnp.square(x - mu), axis=-1, keepdims=True)
    return (x - mu) * jax.lax.rsqrt(var + eps) * gamma + beta


def _gelu(x):
    # TODO(synk): torch nn.GELU() default is exact erf-GELU; tanh approximation is
    # used for robust Mosaic lowering (max deviation ~1e-3).
    c = math.sqrt(2.0 / math.pi)
    return 0.5 * x * (1.0 + jnp.tanh(c * (x + 0.044715 * x * x * x)))


# ---------------------------------------------------------------------------
# Pallas kernel: whole tower + last-token select + projection + L2 norm
# ---------------------------------------------------------------------------
def encoder_stack_kernel(x_ref, madd_ref, sel_ref,
                         wqkv_ref, bqkv_ref, wo_ref, bo_ref,
                         g1_ref, be1_ref, g2_ref, be2_ref,
                         w1_ref, b1_ref, w2_ref, b2_ref, proj_ref,
                         out_ref, x_scr, cat_scr, *, n_heads, d_k):
    """grid = (B//Bt, n_layers). Axis 0 ("parallel") walks batch tiles, axis 1
    ("arbitrary", innermost) walks layers. The residual stream is carried in the
    VMEM scratch `x_scr`; the (Bt,1,E) output block is written only at the last
    layer (after the fused projection + L2 norm)."""
    layer = pl.program_id(1)
    n_layers = pl.num_programs(1)
    Bt, S, D = x_ref.shape
    M = Bt * S

    @pl.when(layer == 0)
    def _():
        x_scr[...] = x_ref[...].reshape(M, D)

    x = x_scr[...]                                      # (M, D) f32 residual stream

    # Additive key-padding mask (0.0 = attendable, -1e30 = masked; finite so fully
    # padded query rows stay finite). Precomputed in the wrapper; the (Bt,S,S)
    # broadcast is materialized ONCE per layer, not once per head.
    m_add = jnp.broadcast_to(madd_ref[...], (Bt, S, S))

    # ---- multi-head attention on LN1(x) (pre-LN, matching the torch reference) ----
    h = _layer_norm(x, g1_ref[0], be1_ref[0]).astype(jnp.bfloat16)
    # Fused QKV: one (M, D) @ (D, 3D) matmul; 1/sqrt(d_k) already folded into Wq/bq.
    qkv = jnp.dot(h, wqkv_ref[0], preferred_element_type=jnp.float32) + bqkv_ref[0]
    q3 = qkv[:, 0 * D:1 * D].reshape(Bt, S, D).astype(jnp.bfloat16)
    k3 = qkv[:, 1 * D:2 * D].reshape(Bt, S, D).astype(jnp.bfloat16)
    v3 = qkv[:, 2 * D:3 * D].reshape(Bt, S, D).astype(jnp.bfloat16)

    # Per-head attention. Head outputs are staged into the bf16 VMEM scratch
    # `cat_scr` at their column offsets so the output projection becomes ONE
    # (M, D) @ (D, D) matmul with full K=D contraction depth (instead of n_heads
    # K=d_k matmuls plus n_heads f32 accumulator adds).
    # TODO(synk): q3/k3/v3 head slices sit at d_k-lane offsets (not 128-aligned for
    # d_k=64); a (Bt*H, S, d_k) re-layout or head-pair processing would also remove
    # the per-head lane repacks, but multi-batch-dim dot_general / 4-D transposes
    # are not reliably lowered by Mosaic, so the safe per-head form is kept.
    for hd in range(n_heads):
        lo = hd * d_k
        qh = q3[:, :, lo:lo + d_k]
        kh = k3[:, :, lo:lo + d_k]
        vh = v3[:, :, lo:lo + d_k]
        s = jnp.einsum('bqd,bkd->bqk', qh, kh,
                       preferred_element_type=jnp.float32) + m_add
        s = s - jnp.max(s, axis=-1, keepdims=True)
        e = jnp.exp(s)
        p = e * pl.reciprocal(jnp.sum(e, axis=-1, keepdims=True), approx=True)
        oh = jnp.einsum('bqk,bkd->bqd', p.astype(jnp.bfloat16), vh,
                        preferred_element_type=jnp.float32)
        cat_scr[:, lo:lo + d_k] = oh.reshape(M, d_k).astype(jnp.bfloat16)

    attn = jnp.dot(cat_scr[...], wo_ref[0],
                   preferred_element_type=jnp.float32) + bo_ref[0]
    x = x + attn

    # ---- MLP on LN2(x) ----
    h2 = _layer_norm(x, g2_ref[0], be2_ref[0]).astype(jnp.bfloat16)
    z = jnp.dot(h2, w1_ref[0], preferred_element_type=jnp.float32) + b1_ref[0]
    z = _gelu(z).astype(jnp.bfloat16)
    z = jnp.dot(z, w2_ref[0], preferred_element_type=jnp.float32) + b2_ref[0]
    x = x + z

    x_scr[...] = x

    # ---- epilogue (last layer only): last-token select + projection + L2 norm ----
    # Writes only (Bt, 1, E) per tile instead of (Bt, S, D): kills the big HBM
    # writeback, the XLA gather re-read, and the second kernel launch.
    @pl.when(layer == n_layers - 1)
    def _():
        # sel_ref is a one-hot over S built in the wrapper from sum(mask[:,0])-1
        # (assumes a contiguous-prefix padding mask, exactly like the torch ref).
        x_last = jnp.sum(x.reshape(Bt, S, D) * sel_ref[...], axis=1)      # (Bt, D)
        y = jnp.dot(x_last, proj_ref[...], preferred_element_type=jnp.float32)
        inv = jax.lax.rsqrt(jnp.sum(y * y, axis=-1, keepdims=True) + 1e-12)
        E = y.shape[-1]
        out_ref[...] = (y * inv).reshape(Bt, 1, E).astype(out_ref.dtype)


# ---------------------------------------------------------------------------
# VMEM budgeting / batch-tile selection
# ---------------------------------------------------------------------------
def _vmem_budget_and_limit():
    """Generation-aware budgeting: v5e/v6e have 128 MiB physical VMEM, v7x 64 MiB."""
    try:
        cap = int(pltpu.get_tpu_info().vmem_capacity_bytes)
    except Exception:
        cap = 64 * 1024 * 1024                      # conservative (v7x-sized) fallback
    budget = int(cap * 0.60)                        # headroom for compiler temporaries
    limit = int(cap * 0.85)                         # scoped-VMEM cap for Mosaic
    return budget, limit


def _vmem_bytes_estimate(Bt, S, D, E, Dm):
    """Rough per-step VMEM footprint: IO blocks (double-buffered), weights (x2 buf),
    persistent scratches and the widest live temporaries inside the body."""
    M = Bt * S
    blk = 2 * (M * D * 4 + 2 * Bt * S * 4 + Bt * E * 4)
    wts = 2 * 2 * (3 * D * D + D * D + 2 * D * Dm) + D * E * 4 + 64 * D
    scr = M * D * 4 + M * D * 2
    tmp = (max(3 * D, Dm) * M * 4       # widest f32 matmul result (qkv or mlp hidden)
           + 4 * M * D * 2              # h, q3, k3, v3 (bf16)
           + 3 * Bt * S * S * 4         # scores / exp / broadcast mask (f32)
           + M * D * 4)                 # attention-out / residual temporaries
    return blk + wts + scr + tmp


def _pick_batch_tile(B, S, D, E, Dm, budget_bytes, min_tiles=1):
    """Largest divisor Bt of B that fits the VMEM budget, preferring nb >= min_tiles
    so dual-TensorCore chips (v7x, megacore parts) keep both cores busy."""
    divisors = [bt for bt in range(1, B + 1) if B % bt == 0]
    fitting = [bt for bt in divisors
               if _vmem_bytes_estimate(bt, S, D, E, Dm) <= budget_bytes]
    if not fitting:
        return 1
    preferred = [bt for bt in fitting if B // bt >= min_tiles]
    return max(preferred) if preferred else max(fitting)


# ---------------------------------------------------------------------------
# pallas_call wrapper
# ---------------------------------------------------------------------------
_WKEYS = ('wqkv', 'bqkv', 'wo', 'bo', 'ln1_g', 'ln1_b', 'ln2_g', 'ln2_b',
          'w1', 'b1', 'w2', 'b2')


def transformer_stack(x, m_add, sel_onehot, sp, proj, n_heads, *, batch_tile=None):
    B, S, D = x.shape
    L = sp['wqkv'].shape[0]
    Dm = sp['w1'].shape[2]
    E = proj.shape[1]
    d_k = D // n_heads

    budget, vmem_limit = _vmem_budget_and_limit()
    Bt = batch_tile if batch_tile is not None else _pick_batch_tile(
        B, S, D, E, Dm, budget, min_tiles=(2 if B >= 2 else 1))
    assert B % Bt == 0
    nb = B // Bt
    M = Bt * S

    def wspec(shape):
        return pl.BlockSpec((1,) + shape, lambda b, l: (l, 0, 0))

    in_specs = [
        pl.BlockSpec((Bt, S, D), lambda b, l: (b, 0, 0)),       # x
        pl.BlockSpec((Bt, 1, S), lambda b, l: (b, 0, 0)),       # additive key mask
        pl.BlockSpec((Bt, S, 1), lambda b, l: (b, 0, 0)),       # last-token one-hot
        wspec((D, 3 * D)),                                      # wqkv (bf16)
        wspec((1, 3 * D)),                                      # bqkv (f32)
        wspec((D, D)),                                          # wo   (bf16)
        wspec((1, D)),                                          # bo
        wspec((1, D)), wspec((1, D)),                           # ln1 gamma / beta
        wspec((1, D)), wspec((1, D)),                           # ln2 gamma / beta
        wspec((D, Dm)), wspec((1, Dm)),                         # w1, b1
        wspec((Dm, D)), wspec((1, D)),                          # w2, b2
        pl.BlockSpec((D, E), lambda b, l: (0, 0)),              # projection (fetched once)
    ]

    # Advisory cost estimate so XLA schedules sensibly around this long fused call.
    flops = int(L * (24 * B * S * D * D + 4 * B * S * S * D) + 2 * B * D * E)
    transcend = int(L * (n_heads * B * S * S + B * S * Dm))
    layer_w_bytes = 2 * (3 * D * D + D * D + 2 * D * Dm) + 4 * (10 * D + Dm)
    bytes_acc = int(nb * L * layer_w_bytes + B * S * D * 4 + 2 * B * S * 4
                    + D * E * 4 + B * E * 4)

    kernel = functools.partial(encoder_stack_kernel, n_heads=n_heads, d_k=d_k)
    out = pl.pallas_call(
        kernel,
        out_shape=jax.ShapeDtypeStruct((B, 1, E), jnp.float32),
        grid_spec=pltpu.PrefetchScalarGridSpec(
            num_scalar_prefetch=0,
            grid=(nb, L),                                        # layer axis innermost
            in_specs=in_specs,
            out_specs=pl.BlockSpec((Bt, 1, E), lambda b, l: (b, 0, 0)),
            scratch_shapes=[pltpu.VMEM((M, D), jnp.float32),     # residual stream
                            pltpu.VMEM((M, D), jnp.bfloat16)]),  # head-concat staging
        compiler_params=pltpu.CompilerParams(
            dimension_semantics=("parallel", "arbitrary"),
            vmem_limit_bytes=vmem_limit),
        cost_estimate=pl.CostEstimate(flops=flops, transcendentals=transcend,
                                      bytes_accessed=bytes_acc),
    )(x, m_add, sel_onehot, *[sp[k] for k in _WKEYS], proj)
    return out.reshape(B, E)


# ---------------------------------------------------------------------------
# parameter construction (synthetic, deterministic)
# ---------------------------------------------------------------------------
def make_positional_embedding(d_model, seq_len):
    pe = np.zeros((seq_len, d_model), dtype=np.float32)
    for pos in range(seq_len):
        for i in range(d_model):
            if i % 2 == 0:
                pe[pos, i] = np.sin(pos / 10000 ** (i / d_model))
            else:
                pe[pos, i] = np.cos(pos / 10000 ** ((i - 1) / d_model))
    return jnp.asarray(pe)


def stack_layer_params(layers, n_heads):
    """Fuse Q/K/V into one (D, 3D) weight per layer (softmax scale folded into the
    Q part), stack all layers along a leading axis; matmul weights -> bf16 (f32
    accumulation inside the kernel), biases / LayerNorm params stay f32."""
    D = layers[0]['wq'].shape[0]
    d_k = D // n_heads
    scale = 1.0 / math.sqrt(d_k)
    wqkv = jnp.stack([jnp.concatenate([lp['wq'] * scale, lp['wk'], lp['wv']], axis=1)
                      for lp in layers])
    bqkv = jnp.stack([jnp.concatenate([lp['bq'] * scale, lp['bk'], lp['bv']], axis=1)
                      for lp in layers])
    return {
        'wqkv': wqkv.astype(jnp.bfloat16),
        'bqkv': bqkv.astype(jnp.float32),
        'wo': jnp.stack([lp['wo'] for lp in layers]).astype(jnp.bfloat16),
        'bo': jnp.stack([lp['bo'] for lp in layers]).astype(jnp.float32),
        'ln1_g': jnp.stack([lp['ln1_g'] for lp in layers]).astype(jnp.float32),
        'ln1_b': jnp.stack([lp['ln1_b'] for lp in layers]).astype(jnp.float32),
        'ln2_g': jnp.stack([lp['ln2_g'] for lp in layers]).astype(jnp.float32),
        'ln2_b': jnp.stack([lp['ln2_b'] for lp in layers]).astype(jnp.float32),
        'w1': jnp.stack([lp['w1'] for lp in layers]).astype(jnp.bfloat16),
        'b1': jnp.stack([lp['b1'] for lp in layers]).astype(jnp.float32),
        'w2': jnp.stack([lp['w2'] for lp in layers]).astype(jnp.bfloat16),
        'b2': jnp.stack([lp['b2'] for lp in layers]).astype(jnp.float32),
    }


def init_params(key, *, vocab_size, d_model, max_seq_length, n_heads, n_layers,
                emb_dim, r_mlp=4):
    def linear(k, fan_in, fan_out):
        kw, kb = jax.random.split(k)
        bound = 1.0 / math.sqrt(fan_in)
        w = jax.random.uniform(kw, (fan_in, fan_out), jnp.float32, -bound, bound)
        b = jax.random.uniform(kb, (1, fan_out), jnp.float32, -bound, bound)
        return w, b

    k_emb, k_proj, k_layers = jax.random.split(key, 3)
    layers = []
    for lk in jax.random.split(k_layers, n_layers):
        kq, kk, kv, ko, k1, k2 = jax.random.split(lk, 6)
        wq, bq = linear(kq, d_model, d_model)
        wk, bk = linear(kk, d_model, d_model)
        wv, bv = linear(kv, d_model, d_model)
        wo, bo = linear(ko, d_model, d_model)
        w1, b1 = linear(k1, d_model, d_model * r_mlp)
        w2, b2 = linear(k2, d_model * r_mlp, d_model)
        layers.append({
            'wq': wq, 'bq': bq, 'wk': wk, 'bk': bk, 'wv': wv, 'bv': bv,
            'wo': wo, 'bo': bo,
            'ln1_g': jnp.ones((1, d_model), jnp.float32),
            'ln1_b': jnp.zeros((1, d_model), jnp.float32),
            'ln2_g': jnp.ones((1, d_model), jnp.float32),
            'ln2_b': jnp.zeros((1, d_model), jnp.float32),
            'w1': w1, 'b1': b1, 'w2': w2, 'b2': b2,
        })
    return {
        'embedding': 0.02 * jax.random.normal(k_emb, (vocab_size, d_model), jnp.float32),
        'projection': jax.random.normal(k_proj, (d_model, emb_dim), jnp.float32),
        'pe': make_positional_embedding(d_model, max_seq_length),
        'stacked_layers': stack_layer_params(layers, n_heads),
    }


# ---------------------------------------------------------------------------
# full forward pass (glue in XLA, hot path in one Pallas kernel)
# ---------------------------------------------------------------------------
def text_encoder_forward(text, mask, params, n_heads):
    # Embedding lookup + positional embedding + mask/one-hot prep stay in XLA
    # (gather has no clean Pallas equivalent); dropout layers are identity.
    B, S = text.shape
    x = jnp.take(params['embedding'], text, axis=0)            # (B, S, D)
    x = x + params['pe'][None, :, :]

    key_mask = mask[:, 0, :].astype(jnp.float32)                # (B, S) 1=keep 0=pad
    last_idx = jnp.sum(mask[:, 0, :], axis=1).astype(jnp.int32) - 1   # (B,)

    # Pad the sequence axis to the 128-lane quantum: lane-dense score/prob tensors
    # and a full MXU contraction for p @ v; padded keys are masked out below and
    # padded query rows are discarded by the last-token selector.
    S_pad = ((S + 127) // 128) * 128
    if S_pad != S:
        x = jnp.pad(x, ((0, 0), (0, S_pad - S), (0, 0)))
        key_mask = jnp.pad(key_mask, ((0, 0), (0, S_pad - S)))

    # Additive mask built once here (0 attendable / -1e30 masked, finite).
    m_add = ((key_mask - 1.0) * 1e30)[:, None, :]               # (B, 1, S_pad)
    # One-hot selector of the last real token (contiguous-prefix mask assumption,
    # identical to the torch reference's sum(mask[:,0])-1 indexing).
    sel = (jnp.arange(S_pad)[None, :] == last_idx[:, None]).astype(jnp.float32)
    sel = sel[:, :, None]                                       # (B, S_pad, 1)

    return transformer_stack(x, m_add, sel, params['stacked_layers'],
                             params['projection'], n_heads)


if __name__ == "__main__":
    B, S = 2, 8
    vocab_size, d_model, n_heads, n_layers, emb_dim = 50, 32, 4, 2, 16

    key = jax.random.PRNGKey(0)
    k_params, k_text = jax.random.split(key)
    params = init_params(k_params, vocab_size=vocab_size, d_model=d_model,
                         max_seq_length=S, n_heads=n_heads, n_layers=n_layers,
                         emb_dim=emb_dim)

    text = jax.random.randint(k_text, (B, S), 0, vocab_size, dtype=jnp.int32)
    lengths = jnp.array([5, 8], dtype=jnp.int32)                # valid tokens per sequence
    valid = (jnp.arange(S)[None, :] < lengths[:, None]).astype(jnp.float32)   # (B, S)
    mask = jnp.broadcast_to(valid[:, None, :], (B, S, S))       # (B, S, S) padding mask

    out = jax.block_until_ready(text_encoder_forward(text, mask, params, n_heads))
    assert out.shape == (B, emb_dim)
    assert bool(jnp.all(jnp.isfinite(out)))
    # rows are L2-normalized
    assert bool(jnp.allclose(jnp.linalg.norm(out, axis=-1), 1.0, atol=1e-4))
    print("KERNEL_OK")
</pallas_src>

<mosaic_0001>
module attributes {stable_mosaic.version = 11 : i64} {
  func.func @encoder_stack_kernel(%arg0: i32, %arg1: i32, %arg2: memref<1x128x32xf32, #tpu.memory_space<vmem>>, %arg3: memref<1x1x128xf32, #tpu.memory_space<vmem>>, %arg4: memref<1x128x1xf32, #tpu.memory_space<vmem>>, %arg5: memref<1x32x96xbf16, #tpu.memory_space<vmem>>, %arg6: memref<1x1x96xf32, #tpu.memory_space<vmem>>, %arg7: memref<1x32x32xbf16, #tpu.memory_space<vmem>>, %arg8: memref<1x1x32xf32, #tpu.memory_space<vmem>>, %arg9: memref<1x1x32xf32, #tpu.memory_space<vmem>>, %arg10: memref<1x1x32xf32, #tpu.memory_space<vmem>>, %arg11: memref<1x1x32xf32, #tpu.memory_space<vmem>>, %arg12: memref<1x1x32xf32, #tpu.memory_space<vmem>>, %arg13: memref<1x32x128xbf16, #tpu.memory_space<vmem>>, %arg14: memref<1x1x128xf32, #tpu.memory_space<vmem>>, %arg15: memref<1x128x32xbf16, #tpu.memory_space<vmem>>, %arg16: memref<1x1x32xf32, #tpu.memory_space<vmem>>, %arg17: memref<32x16xf32, #tpu.memory_space<vmem>>, %arg18: memref<1x1x16xf32, #tpu.memory_space<vmem>>, %arg19: memref<128x32xf32, #tpu.memory_space<vmem>>, %arg20: memref<128x32xbf16, #tpu.memory_space<vmem>>) attributes {dimension_semantics = [#tpu.dimension_semantics<parallel>, #tpu.dimension_semantics<arbitrary>], iteration_bounds = array<i64: 2, 2>, scalar_prefetch = 0 : i64, scratch_operands = 2 : i64, tpu.core_type = #tpu.core_type<tc>, window_params = [{transform_indices = @transform_0, window_bounds = array<i64: 1, 128, 32>}, {transform_indices = @transform_1, window_bounds = array<i64: 1, 1, 128>}, {transform_indices = @transform_2, window_bounds = array<i64: 1, 128, 1>}, {transform_indices = @transform_3, window_bounds = array<i64: 1, 32, 96>}, {transform_indices = @transform_4, window_bounds = array<i64: 1, 1, 96>}, {transform_indices = @transform_5, window_bounds = array<i64: 1, 32, 32>}, {transform_indices = @transform_6, window_bounds = array<i64: 1, 1, 32>}, {transform_indices = @transform_7, window_bounds = array<i64: 1, 1, 32>}, {transform_indices = @transform_8, window_bounds = array<i64: 1, 1, 32>}, {transform_indices = @transform_9, window_bounds = array<i64: 1, 1, 32>}, {transform_indices = @transform_10, window_bounds = array<i64: 1, 1, 32>}, {transform_indices = @transform_11, window_bounds = array<i64: 1, 32, 128>}, {transform_indices = @transform_12, window_bounds = array<i64: 1, 1, 128>}, {transform_indices = @transform_13, window_bounds = array<i64: 1, 128, 32>}, {transform_indices = @transform_14, window_bounds = array<i64: 1, 1, 32>}, {pipeline_mode = #tpu.pipeline_mode<synchronous>, transform_indices = @transform_15, window_bounds = array<i64: 32, 16>}, {transform_indices = @transform_16, window_bounds = array<i64: 1, 1, 16>}]} {
    %c0_i32 = arith.constant 0 : i32
    %0 = arith.cmpi eq, %arg1, %c0_i32 : i32
    %1 = arith.extui %0 : i1 to i32
    %c0_i32_0 = arith.constant 0 : i32
    %2 = arith.cmpi ne, %1, %c0_i32_0 : i32
    scf.if %2 {
      %c0_84 = arith.constant 0 : index
      %c0_85 = arith.constant 0 : index
      %c0_86 = arith.constant 0 : index
      %199 = vector.load %arg2[%c0_84, %c0_85, %c0_86] : memref<1x128x32xf32, #tpu.memory_space<vmem>>, vector<1x128x32xf32>
      %200 = vector.shape_cast %199 : vector<1x128x32xf32> to vector<128x32xf32>
      %c0_87 = arith.constant 0 : index
      %c0_88 = arith.constant 0 : index
      %201 = vector.load %arg19[%c0_87, %c0_88] : memref<128x32xf32, #tpu.memory_space<vmem>>, vector<128x32xf32>
      tpu.vector_store %arg19[%c0_87, %c0_88], %200 {strides = array<i32>} : memref<128x32xf32, #tpu.memory_space<vmem>>, vector<128x32xf32>,
    } else {
    }
    %c0 = arith.constant 0 : index
    %c0_1 = arith.constant 0 : index
    %3 = vector.load %arg19[%c0, %c0_1] : memref<128x32xf32, #tpu.memory_space<vmem>>, vector<128x32xf32>
    %c0_2 = arith.constant 0 : index
    %c0_3 = arith.constant 0 : index
    %c0_4 = arith.constant 0 : index
    %4 = vector.load %arg3[%c0_2, %c0_3, %c0_4] : memref<1x1x128xf32, #tpu.memory_space<vmem>>, vector<1x1x128xf32>
    %5 = vector.shape_cast %4 : vector<1x1x128xf32> to vector<1x1x128xf32>
    %6 = vector.broadcast %5 : vector<1x1x128xf32> to vector<1x128x128xf32>
    %c0_5 = arith.constant 0 : index
    %c0_6 = arith.constant 0 : index
    %c0_7 = arith.constant 0 : index
    %7 = vector.load %arg9[%c0_5, %c0_6, %c0_7] : memref<1x1x32xf32, #tpu.memory_space<vmem>>, vector<1x1x32xf32>
    %8 = vector.shape_cast %7 : vector<1x1x32xf32> to vector<1x32xf32>
    %c0_8 = arith.constant 0 : index
    %c0_9 = arith.constant 0 : index
    %c0_10 = arith.constant 0 : index
    %9 = vector.load %arg10[%c0_8, %c0_9, %c0_10] : memref<1x1x32xf32, #tpu.memory_space<vmem>>, vector<1x1x32xf32>
    %10 = vector.shape_cast %9 : vector<1x1x32xf32> to vector<1x32xf32>
    %cst = arith.constant dense<0.000000e+00> : vector<128xf32>
    %11 = vector.multi_reduction <add>, %3, %cst [1] : vector<128x32xf32> to vector<128xf32>
    %12 = vector.shape_cast %11 : vector<128xf32> to vector<128x1xf32>
    %cst_11 = arith.constant 3.200000e+01 : f32
    %13 = vector.broadcast %cst_11 : f32 to vector<128x1xf32>
    %14 = arith.divf %12, %13 : vector<128x1xf32>
    %15 = vector.broadcast %14 : vector<128x1xf32> to vector<128x32xf32>
    %16 = arith.subf %3, %15 : vector<128x32xf32>
    %17 = arith.mulf %16, %16 : vector<128x32xf32>
    %cst_12 = arith.constant dense<0.000000e+00> : vector<128xf32>
    %18 = vector.multi_reduction <add>, %17, %cst_12 [1] : vector<128x32xf32> to vector<128xf32>
    %19 = vector.shape_cast %18 : vector<128xf32> to vector<128x1xf32>
    %cst_13 = arith.constant 3.200000e+01 : f32
    %20 = vector.broadcast %cst_13 : f32 to vector<128x1xf32>
    %21 = arith.divf %19, %20 : vector<128x1xf32>
    %22 = vector.broadcast %14 : vector<128x1xf32> to vector<128x32xf32>
    %23 = arith.subf %3, %22 : vector<128x32xf32>
    %cst_14 = arith.constant 9.99999974E-6 : f32
    %24 = vector.broadcast %cst_14 : f32 to vector<128x1xf32>
    %25 = arith.addf %21, %24 : vector<128x1xf32>
    %26 = math.rsqrt %25 : vector<128x1xf32>
    %27 = vector.broadcast %26 : vector<128x1xf32> to vector<128x32xf32>
    %28 = arith.mulf %23, %27 : vector<128x32xf32>
    %29 = vector.broadcast %8 : vector<1x32xf32> to vector<128x32xf32>
    %30 = arith.mulf %28, %29 : vector<128x32xf32>
    %31 = vector.broadcast %10 : vector<1x32xf32> to vector<128x32xf32>
    %32 = arith.addf %30, %31 : vector<128x32xf32>
    %33 = arith.truncf %32 : vector<128x32xf32> to vector<128x32xbf16>
    %c0_15 = arith.constant 0 : index
    %c0_16 = arith.constant 0 : index
    %c0_17 = arith.constant 0 : index
    %34 = vector.load %arg5[%c0_15, %c0_16, %c0_17] : memref<1x32x96xbf16, #tpu.memory_space<vmem>>, vector<1x32x96xbf16>
    %35 = vector.shape_cast %34 : vector<1x32x96xbf16> to vector<32x96xbf16>
    %cst_18 = arith.constant dense<0.000000e+00> : vector<128x96xf32>
    %36 = tpu.matmul %33, %35, %cst_18 {dimension_numbers = #tpu.dot_dimension_numbers<[1], [0], [0], [1], [0, 0, 1, 1], [], []>} : vector<128x32xbf16>, vector<32x96xbf16>, vector<128x96xf32> -> vector<128x96xf32>
    %c0_19 = arith.constant 0 : index
    %c0_20 = arith.constant 0 : index
    %c0_21 = arith.constant 0 : index
    %37 = vector.load %arg6[%c0_19, %c0_20, %c0_21] : memref<1x1x96xf32, #tpu.memory_space<vmem>>, vector<1x1x96xf32>
    %38 = vector.shape_cast %37 : vector<1x1x96xf32> to vector<1x96xf32>
    %39 = vector.broadcast %38 : vector<1x96xf32> to vector<128x96xf32>
    %40 = arith.addf %36, %39 : vector<128x96xf32>
    %41 = vector.extract_strided_slice %40 {offsets = [0, 0], sizes = [128, 32], strides = [1, 1]} : vector<128x96xf32> to vector<128x32xf32>
    %42 = vector.shape_cast %41 : vector<128x32xf32> to vector<1x128x32xf32>
    %43 = arith.truncf %42 : vector<1x128x32xf32> to vector<1x128x32xbf16>
    %44 = vector.extract_strided_slice %40 {offsets = [0, 32], sizes = [128, 32], strides = [1, 1]} : vector<128x96xf32> to vector<128x32xf32>
    %45 = vector.shape_cast %44 : vector<128x32xf32> to vector<1x128x32xf32>
    %46 = arith.truncf %45 : vector<1x128x32xf32> to vector<1x128x32xbf16>
    %47 = vector.extract_strided_slice %40 {offsets = [0, 64], sizes = [128, 32], strides = [1, 1]} : vector<128x96xf32> to vector<128x32xf32>
    %48 = vector.shape_cast %47 : vector<128x32xf32> to vector<1x128x32xf32>
    %49 = arith.truncf %48 : vector<1x128x32xf32> to vector<1x128x32xbf16>
    %50 = vector.extract_strided_slice %43 {offsets = [0, 0, 0], sizes = [1, 128, 8], strides = [1, 1, 1]} : vector<1x128x32xbf16> to vector<1x128x8xbf16>
    %51 = vector.extract_strided_slice %46 {offsets = [0, 0, 0], sizes = [1, 128, 8], strides = [1, 1, 1]} : vector<1x128x32xbf16> to vector<1x128x8xbf16>
    %52 = vector.extract_strided_slice %49 {offsets = [0, 0, 0], sizes = [1, 128, 8], strides = [1, 1, 1]} : vector<1x128x32xbf16> to vector<1x128x8xbf16>
    "tpu.trace_start"() <{level = 10 : i32, message = "bqd,bkd->bqk"}> : () -> ()
    %cst_22 = arith.constant dense<0.000000e+00> : vector<1x128x128xf32>
    %53 = tpu.matmul %50, %51, %cst_22 {dimension_numbers = #tpu.dot_dimension_numbers<[2], [2], [1], [1], [0, 0, 0, 1, 1, 1], [0], [0]>} : vector<1x128x8xbf16>, vector<1x128x8xbf16>, vector<1x128x128xf32> -> vector<1x128x128xf32>
    "tpu.trace_stop"() : () -> ()
    %54 = arith.addf %53, %6 : vector<1x128x128xf32>
    %cst_23 = arith.constant dense<0xFF800000> : vector<1x128xf32>
    %55 = vector.multi_reduction <maximumf>, %54, %cst_23 [2] : vector<1x128x128xf32> to vector<1x128xf32>
    %56 = vector.shape_cast %55 : vector<1x128xf32> to vector<1x128x1xf32>
    %57 = vector.broadcast %56 : vector<1x128x1xf32> to vector<1x128x128xf32>
    %58 = arith.subf %54, %57 : vector<1x128x128xf32>
    %59 = math.exp %58 : vector<1x128x128xf32>
    %cst_24 = arith.constant dense<0.000000e+00> : vector<1x128xf32>
    %60 = vector.multi_reduction <add>, %59, %cst_24 [2] : vector<1x128x128xf32> to vector<1x128xf32>
    %61 = vector.shape_cast %60 : vector<1x128xf32> to vector<1x128x1xf32>
    %62 = tpu.reciprocal %61 {approx = true} : vector<1x128x1xf32> -> vector<1x128x1xf32>
    %63 = vector.broadcast %62 : vector<1x128x1xf32> to vector<1x128x128xf32>
    %64 = arith.mulf %59, %63 : vector<1x128x128xf32>
    %65 = arith.truncf %64 : vector<1x128x128xf32> to vector<1x128x128xbf16>
    "tpu.trace_start"() <{level = 10 : i32, message = "bqk,bkd->bqd"}> : () -> ()
    %cst_25 = arith.constant dense<0.000000e+00> : vector<1x128x8xf32>
    %66 = tpu.matmul %65, %52, %cst_25 {dimension_numbers = #tpu.dot_dimension_numbers<[2], [1], [1], [2], [0, 0, 0, 1, 1, 2], [0], [0]>} : vector<1x128x128xbf16>, vector<1x128x8xbf16>, vector<1x128x8xf32> -> vector<1x128x8xf32>
    "tpu.trace_stop"() : () -> ()
    %67 = vector.shape_cast %66 : vector<1x128x8xf32> to vector<128x8xf32>
    %68 = arith.truncf %67 : vector<128x8xf32> to vector<128x8xbf16>
    %c0_26 = arith.constant 0 : index
    %c0_27 = arith.constant 0 : index
    %69 = vector.load %arg20[%c0_26, %c0_27] : memref<128x32xbf16, #tpu.memory_space<vmem>>, vector<128x8xbf16>
    tpu.vector_store %arg20[%c0_26, %c0_27], %68 {strides = array<i32>} : memref<128x32xbf16, #tpu.memory_space<vmem>>, vector<128x8xbf16>,
    %70 = vector.extract_strided_slice %43 {offsets = [0, 0, 8], sizes = [1, 128, 8], strides = [1, 1, 1]} : vector<1x128x32xbf16> to vector<1x128x8xbf16>
    %71 = vector.extract_strided_slice %46 {offsets = [0, 0, 8], sizes = [1, 128, 8], strides = [1, 1, 1]} : vector<1x128x32xbf16> to vector<1x128x8xbf16>
    %72 = vector.extract_strided_slice %49 {offsets = [0, 0, 8], sizes = [1, 128, 8], strides = [1, 1, 1]} : vector<1x128x32xbf16> to vector<1x128x8xbf16>
    "tpu.trace_start"() <{level = 10 : i32, message = "bqd,bkd->bqk"}> : () -> ()
    %cst_28 = arith.constant dense<0.000000e+00> : vector<1x128x128xf32>
    %73 = tpu.matmul %70, %71, %cst_28 {dimension_numbers = #tpu.dot_dimension_numbers<[2], [2], [1], [1], [0, 0, 0, 1, 1, 1], [0], [0]>} : vector<1x128x8xbf16>, vector<1x128x8xbf16>, vector<1x128x128xf32> -> vector<1x128x128xf32>
    "tpu.trace_stop"() : () -> ()
    %74 = arith.addf %73, %6 : vector<1x128x128xf32>
    %cst_29 = arith.constant dense<0xFF800000> : vector<1x128xf32>
    %75 = vector.multi_reduction <maximumf>, %74, %cst_29 [2] : vector<1x128x128xf32> to vector<1x128xf32>
    %76 = vector.shape_cast %75 : vector<1x128xf32> to vector<1x128x1xf32>
    %77 = vector.broadcast %76 : vector<1x128x1xf32> to vector<1x128x128xf32>
    %78 = arith.subf %74, %77 : vector<1x128x128xf32>
    %79 = math.exp %78 : vector<1x128x128xf32>
    %cst_30 = arith.constant dense<0.000000e+00> : vector<1x128xf32>
    %80 = vector.multi_reduction <add>, %79, %cst_30 [2] : vector<1x128x128xf32> to vector<1x128xf32>
    %81 = vector.shape_cast %80 : vector<1x128xf32> to vector<1x128x1xf32>
    %82 = tpu.reciprocal %81 {approx = true} : vector<1x128x1xf32> -> vector<1x128x1xf32>
    %83 = vector.broadcast %82 : vector<1x128x1xf32> to vector<1x128x128xf32>
    %84 = arith.mulf %79, %83 : vector<1x128x128xf32>
    %85 = arith.truncf %84 : vector<1x128x128xf32> to vector<1x128x128xbf16>
    "tpu.trace_start"() <{level = 10 : i32, message = "bqk,bkd->bqd"}> : () -> ()
    %cst_31 = arith.constant dense<0.000000e+00> : vector<1x128x8xf32>
    %86 = tpu.matmul %85, %72, %cst_31 {dimension_numbers = #tpu.dot_dimension_numbers<[2], [1], [1], [2], [0, 0, 0, 1, 1, 2], [0], [0]>} : vector<1x128x128xbf16>, vector<1x128x8xbf16>, vector<1x128x8xf32> -> vector<1x128x8xf32>
    "tpu.trace_stop"() : () -> ()
    %87 = vector.shape_cast %86 : vector<1x128x8xf32> to vector<128x8xf32>
    %88 = arith.truncf %87 : vector<128x8xf32> to vector<128x8xbf16>
    %c0_32 = arith.constant 0 : index
    %c8 = arith.constant 8 : index
    %89 = vector.load %arg20[%c0_32, %c8] : memref<128x32xbf16, #tpu.memory_space<vmem>>, vector<128x8xbf16>
    tpu.vector_store %arg20[%c0_32, %c8], %88 {strides = array<i32>} : memref<128x32xbf16, #tpu.memory_space<vmem>>, vector<128x8xbf16>,
    %90 = vector.extract_strided_slice %43 {offsets = [0, 0, 16], sizes = [1, 128, 8], strides = [1, 1, 1]} : vector<1x128x32xbf16> to vector<1x128x8xbf16>
    %91 = vector.extract_strided_slice %46 {offsets = [0, 0, 16], sizes = [1, 128, 8], strides = [1, 1, 1]} : vector<1x128x32xbf16> to vector<1x128x8xbf16>
    %92 = vector.extract_strided_slice %49 {offsets = [0, 0, 16], sizes = [1, 128, 8], strides = [1, 1, 1]} : vector<1x128x32xbf16> to vector<1x128x8xbf16>
    "tpu.trace_start"() <{level = 10 : i32, message = "bqd,bkd->bqk"}> : () -> ()
    %cst_33 = arith.constant dense<0.000000e+00> : vector<1x128x128xf32>
    %93 = tpu.matmul %90, %91, %cst_33 {dimension_numbers = #tpu.dot_dimension_numbers<[2], [2], [1], [1], [0, 0, 0, 1, 1, 1], [0], [0]>} : vector<1x128x8xbf16>, vector<1x128x8xbf16>, vector<1x128x128xf32> -> vector<1x128x128xf32>
    "tpu.trace_stop"() : () -> ()
    %94 = arith.addf %93, %6 : vector<1x128x128xf32>
    %cst_34 = arith.constant dense<0xFF800000> : vector<1x128xf32>
    %95 = vector.multi_reduction <maximumf>, %94, %cst_34 [2] : vector<1x128x128xf32> to vector<1x128xf32>
    %96 = vector.shape_cast %95 : vector<1x128xf32> to vector<1x128x1xf32>
    %97 = vector.broadcast %96 : vector<1x128x1xf32> to vector<1x128x128xf32>
    %98 = arith.subf %94, %97 : vector<1x128x128xf32>
    %99 = math.exp %98 : vector<1x128x128xf32>
    %cst_35 = arith.constant dense<0.000000e+00> : vector<1x128xf32>
    %100 = vector.multi_reduction <add>, %99, %cst_35 [2] : vector<1x128x128xf32> to vector<1x128xf32>
    %101 = vector.shape_cast %100 : vector<1x128xf32> to vector<1x128x1xf32>
    %102 = tpu.reciprocal %101 {approx = true} : vector<1x128x1xf32> -> vector<1x128x1xf32>
    %103 = vector.broadcast %102 : vector<1x128x1xf32> to vector<1x128x128xf32>
    %104 = arith.mulf %99, %103 : vector<1x128x128xf32>
    %105 = arith.truncf %104 : vector<1x128x128xf32> to vector<1x128x128xbf16>
    "tpu.trace_start"() <{level = 10 : i32, message = "bqk,bkd->bqd"}> : () -> ()
    %cst_36 = arith.constant dense<0.000000e+00> : vector<1x128x8xf32>
    %106 = tpu.matmul %105, %92, %cst_36 {dimension_numbers = #tpu.dot_dimension_numbers<[2], [1], [1], [2], [0, 0, 0, 1, 1, 2], [0], [0]>} : vector<1x128x128xbf16>, vector<1x128x8xbf16>, vector<1x128x8xf32> -> vector<1x128x8xf32>
    "tpu.trace_stop"() : () -> ()
    %107 = vector.shape_cast %106 : vector<1x128x8xf32> to vector<128x8xf32>
    %108 = arith.truncf %107 : vector<128x8xf32> to vector<128x8xbf16>
    %c0_37 = arith.constant 0 : index
    %c16 = arith.constant 16 : index
    %109 = vector.load %arg20[%c0_37, %c16] : memref<128x32xbf16, #tpu.memory_space<vmem>>, vector<128x8xbf16>
    tpu.vector_store %arg20[%c0_37, %c16], %108 {strides = array<i32>} : memref<128x32xbf16, #tpu.memory_space<vmem>>, vector<128x8xbf16>,
    %110 = vector.extract_strided_slice %43 {offsets = [0, 0, 24], sizes = [1, 128, 8], strides = [1, 1, 1]} : vector<1x128x32xbf16> to vector<1x128x8xbf16>
    %111 = vector.extract_strided_slice %46 {offsets = [0, 0, 24], sizes = [1, 128, 8], strides = [1, 1, 1]} : vector<1x128x32xbf16> to vector<1x128x8xbf16>
    %112 = vector.extract_strided_slice %49 {offsets = [0, 0, 24], sizes = [1, 128, 8], strides = [1, 1, 1]} : vector<1x128x32xbf16> to vector<1x128x8xbf16>
    "tpu.trace_start"() <{level = 10 : i32, message = "bqd,bkd->bqk"}> : () -> ()
    %cst_38 = arith.constant dense<0.000000e+00> : vector<1x128x128xf32>
    %113 = tpu.matmul %110, %111, %cst_38 {dimension_numbers = #tpu.dot_dimension_numbers<[2], [2], [1], [1], [0, 0, 0, 1, 1, 1], [0], [0]>} : vector<1x128x8xbf16>, vector<1x128x8xbf16>, vector<1x128x128xf32> -> vector<1x128x128xf32>
    "tpu.trace_stop"() : () -> ()
    %114 = arith.addf %113, %6 : vector<1x128x128xf32>
    %cst_39 = arith.constant dense<0xFF800000> : vector<1x128xf32>
    %115 = vector.multi_reduction <maximumf>, %114, %cst_39 [2] : vector<1x128x128xf32> to vector<1x128xf32>
    %116 = vector.shape_cast %115 : vector<1x128xf32> to vector<1x128x1xf32>
    %117 = vector.broadcast %116 : vector<1x128x1xf32> to vector<1x128x128xf32>
    %118 = arith.subf %114, %117 : vector<1x128x128xf32>
    %119 = math.exp %118 : vector<1x128x128xf32>
    %cst_40 = arith.constant dense<0.000000e+00> : vector<1x128xf32>
    %120 = vector.multi_reduction <add>, %119, %cst_40 [2] : vector<1x128x128xf32> to vector<1x128xf32>
    %121 = vector.shape_cast %120 : vector<1x128xf32> to vector<1x128x1xf32>
    %122 = tpu.reciprocal %121 {approx = true} : vector<1x128x1xf32> -> vector<1x128x1xf32>
    %123 = vector.broadcast %122 : vector<1x128x1xf32> to vector<1x128x128xf32>
    %124 = arith.mulf %119, %123 : vector<1x128x128xf32>
    %125 = arith.truncf %124 : vector<1x128x128xf32> to vector<1x128x128xbf16>
    "tpu.trace_start"() <{level = 10 : i32, message = "bqk,bkd->bqd"}> : () -> ()
    %cst_41 = arith.constant dense<0.000000e+00> : vector<1x128x8xf32>
    %126 = tpu.matmul %125, %112, %cst_41 {dimension_numbers = #tpu.dot_dimension_numbers<[2], [1], [1], [2], [0, 0, 0, 1, 1, 2], [0], [0]>} : vector<1x128x128xbf16>, vector<1x128x8xbf16>, vector<1x128x8xf32> -> vector<1x128x8xf32>
    "tpu.trace_stop"() : () -> ()
    %127 = vector.shape_cast %126 : vector<1x128x8xf32> to vector<128x8xf32>
    %128 = arith.truncf %127 : vector<128x8xf32> to vector<128x8xbf16>
    %c0_42 = arith.constant 0 : index
    %c24 = arith.constant 24 : index
    %129 = vector.load %arg20[%c0_42, %c24] : memref<128x32xbf16, #tpu.memory_space<vmem>>, vector<128x8xbf16>
    tpu.vector_store %arg20[%c0_42, %c24], %128 {strides = array<i32>} : memref<128x32xbf16, #tpu.memory_space<vmem>>, vector<128x8xbf16>,
    %c0_43 = arith.constant 0 : index
    %c0_44 = arith.constant 0 : index
    %130 = vector.load %arg20[%c0_43, %c0_44] : memref<128x32xbf16, #tpu.memory_space<vmem>>, vector<128x32xbf16>
    %c0_45 = arith.constant 0 : index
    %c0_46 = arith.constant 0 : index
    %c0_47 = arith.constant 0 : index
    %131 = vector.load %arg7[%c0_45, %c0_46, %c0_47] : memref<1x32x32xbf16, #tpu.memory_space<vmem>>, vector<1x32x32xbf16>
    %132 = vector.shape_cast %131 : vector<1x32x32xbf16> to vector<32x32xbf16>
    %cst_48 = arith.constant dense<0.000000e+00> : vector<128x32xf32>
    %133 = tpu.matmul %130, %132, %cst_48 {dimension_numbers = #tpu.dot_dimension_numbers<[1], [0], [0], [1], [0, 0, 1, 1], [], []>} : vector<128x32xbf16>, vector<32x32xbf16>, vector<128x32xf32> -> vector<128x32xf32>
    %c0_49 = arith.constant 0 : index
    %c0_50 = arith.constant 0 : index
    %c0_51 = arith.constant 0 : index
    %134 = vector.load %arg8[%c0_49, %c0_50, %c0_51] : memref<1x1x32xf32, #tpu.memory_space<vmem>>, vector<1x1x32xf32>
    %135 = vector.shape_cast %134 : vector<1x1x32xf32> to vector<1x32xf32>
    %136 = vector.broadcast %135 : vector<1x32xf32> to vector<128x32xf32>
    %137 = arith.addf %133, %136 : vector<128x32xf32>
    %138 = arith.addf %3, %137 : vector<128x32xf32>
    %c0_52 = arith.constant 0 : index
    %c0_53 = arith.constant 0 : index
    %c0_54 = arith.constant 0 : index
    %139 = vector.load %arg11[%c0_52, %c0_53, %c0_54] : memref<1x1x32xf32, #tpu.memory_space<vmem>>, vector<1x1x32xf32>
    %140 = vector.shape_cast %139 : vector<1x1x32xf32> to vector<1x32xf32>
    %c0_55 = arith.constant 0 : index
    %c0_56 = arith.constant 0 : index
    %c0_57 = arith.constant 0 : index
    %141 = vector.load %arg12[%c0_55, %c0_56, %c0_57] : memref<1x1x32xf32, #tpu.memory_space<vmem>>, vector<1x1x32xf32>
    %142 = vector.shape_cast %141 : vector<1x1x32xf32> to vector<1x32xf32>
    %cst_58 = arith.constant dense<0.000000e+00> : vector<128xf32>
    %143 = vector.multi_reduction <add>, %138, %cst_58 [1] : vector<128x32xf32> to vector<128xf32>
    %144 = vector.shape_cast %143 : vector<128xf32> to vector<128x1xf32>
    %cst_59 = arith.constant 3.200000e+01 : f32
    %145 = vector.broadcast %cst_59 : f32 to vector<128x1xf32>
    %146 = arith.divf %144, %145 : vector<128x1xf32>
    %147 = vector.broadcast %146 : vector<128x1xf32> to vector<128x32xf32>
    %148 = arith.subf %138, %147 : vector<128x32xf32>
    %149 = arith.mulf %148, %148 : vector<128x32xf32>
    %cst_60 = arith.constant dense<0.000000e+00> : vector<128xf32>
    %150 = vector.multi_reduction <add>, %149, %cst_60 [1] : vector<128x32xf32> to vector<128xf32>
    %151 = vector.shape_cast %150 : vector<128xf32> to vector<128x1xf32>
    %cst_61 = arith.constant 3.200000e+01 : f32
    %152 = vector.broadcast %cst_61 : f32 to vector<128x1xf32>
    %153 = arith.divf %151, %152 : vector<128x1xf32>
    %154 = vector.broadcast %146 : vector<128x1xf32> to vector<128x32xf32>
    %155 = arith.subf %138, %154 : vector<128x32xf32>
    %cst_62 = arith.constant 9.99999974E-6 : f32
    %156 = vector.broadcast %cst_62 : f32 to vector<128x1xf32>
    %157 = arith.addf %153, %156 : vector<128x1xf32>
    %158 = math.rsqrt %157 : vector<128x1xf32>
    %159 = vector.broadcast %158 : vector<128x1xf32> to vector<128x32xf32>
    %160 = arith.mulf %155, %159 : vector<128x32xf32>
    %161 = vector.broadcast %140 : vector<1x32xf32> to vector<128x32xf32>
    %162 = arith.mulf %160, %161 : vector<128x32xf32>
    %163 = vector.broadcast %142 : vector<1x32xf32> to vector<128x32xf32>
    %164 = arith.addf %162, %163 : vector<128x32xf32>
    %165 = arith.truncf %164 : vector<128x32xf32> to vector<128x32xbf16>
    %c0_63 = arith.constant 0 : index
    %c0_64 = arith.constant 0 : index
    %c0_65 = arith.constant 0 : index
    %166 = vector.load %arg13[%c0_63, %c0_64, %c0_65] : memref<1x32x128xbf16, #tpu.memory_space<vmem>>, vector<1x32x128xbf16>
    %167 = vector.shape_cast %166 : vector<1x32x128xbf16> to vector<32x128xbf16>
    %cst_66 = arith.constant dense<0.000000e+00> : vector<128x128xf32>
    %168 = tpu.matmul %165, %167, %cst_66 {dimension_numbers = #tpu.dot_dimension_numbers<[1], [0], [0], [1], [0, 0, 1, 1], [], []>} : vector<128x32xbf16>, vector<32x128xbf16>, vector<128x128xf32> -> vector<128x128xf32>
    %c0_67 = arith.constant 0 : index
    %c0_68 = arith.constant 0 : index
    %c0_69 = arith.constant 0 : index
    %169 = vector.load %arg14[%c0_67, %c0_68, %c0_69] : memref<1x1x128xf32, #tpu.memory_space<vmem>>, vector<1x1x128xf32>
    %170 = vector.shape_cast %169 : vector<1x1x128xf32> to vector<1x128xf32>
    %171 = vector.broadcast %170 : vector<1x128xf32> to vector<128x128xf32>
    %172 = arith.addf %168, %171 : vector<128x128xf32>
    %cst_70 = arith.constant 5.000000e-01 : f32
    %173 = vector.broadcast %cst_70 : f32 to vector<128x128xf32>
    %174 = arith.mulf %173, %172 : vector<128x128xf32>
    %cst_71 = arith.constant 4.471500e-02 : f32
    %175 = vector.broadcast %cst_71 : f32 to vector<128x128xf32>
    %176 = arith.mulf %175, %172 : vector<128x128xf32>
    %177 = arith.mulf %176, %172 : vector<128x128xf32>
    %178 = arith.mulf %177, %172 : vector<128x128xf32>
    %179 = arith.addf %172, %178 : vector<128x128xf32>
    %cst_72 = arith.constant 0.797884583 : f32
    %180 = vector.broadcast %cst_72 : f32 to vector<128x128xf32>
    %181 = arith.mulf %180, %179 : vector<128x128xf32>
    %182 = math.tanh %181 : vector<128x128xf32>
    %cst_73 = arith.constant 1.000000e+00 : f32
    %183 = vector.broadcast %cst_73 : f32 to vector<128x128xf32>
    %184 = arith.addf %183, %182 : vector<128x128xf32>
    %185 = arith.mulf %174, %184 : vector<128x128xf32>
    %186 = arith.truncf %185 : vector<128x128xf32> to vector<128x128xbf16>
    %c0_74 = arith.constant 0 : index
    %c0_75 = arith.constant 0 : index
    %c0_76 = arith.constant 0 : index
    %187 = vector.load %arg15[%c0_74, %c0_75, %c0_76] : memref<1x128x32xbf16, #tpu.memory_space<vmem>>, vector<1x128x32xbf16>
    %188 = vector.shape_cast %187 : vector<1x128x32xbf16> to vector<128x32xbf16>
    %cst_77 = arith.constant dense<0.000000e+00> : vector<128x32xf32>
    %189 = tpu.matmul %186, %188, %cst_77 {dimension_numbers = #tpu.dot_dimension_numbers<[1], [0], [0], [1], [0, 0, 1, 1], [], []>} : vector<128x128xbf16>, vector<128x32xbf16>, vector<128x32xf32> -> vector<128x32xf32>
    %c0_78 = arith.constant 0 : index
    %c0_79 = arith.constant 0 : index
    %c0_80 = arith.constant 0 : index
    %190 = vector.load %arg16[%c0_78, %c0_79, %c0_80] : memref<1x1x32xf32, #tpu.memory_space<vmem>>, vector<1x1x32xf32>
    %191 = vector.shape_cast %190 : vector<1x1x32xf32> to vector<1x32xf32>
    %192 = vector.broadcast %191 : vector<1x32xf32> to vector<128x32xf32>
    %193 = arith.addf %189, %192 : vector<128x32xf32>
    %194 = arith.addf %138, %193 : vector<128x32xf32>
    %c0_81 = arith.constant 0 : index
    %c0_82 = arith.constant 0 : index
    %195 = vector.load %arg19[%c0_81, %c0_82] : memref<128x32xf32, #tpu.memory_space<vmem>>, vector<128x32xf32>
    tpu.vector_store %arg19[%c0_81, %c0_82], %194 {strides = array<i32>} : memref<128x32xf32, #tpu.memory_space<vmem>>, vector<128x32xf32>,
    %c1_i32 = arith.constant 1 : i32
    %196 = arith.cmpi eq, %arg1, %c1_i32 : i32
    %197 = arith.extui %196 : i1 to i32
    %c0_i32_83 = arith.constant 0 : i32
    %198 = arith.cmpi ne, %197, %c0_i32_83 : i32
    scf.if %198 {
      %199 = vector.shape_cast %194 : vector<128x32xf32> to vector<1x128x32xf32>
      %c0_84 = arith.constant 0 : index
      %c0_85 = arith.constant 0 : index
      %c0_86 = arith.constant 0 : index
      %200 = vector.load %arg4[%c0_84, %c0_85, %c0_86] : memref<1x128x1xf32, #tpu.memory_space<vmem>>, vector<1x128x1xf32>
      %201 = vector.broadcast %200 : vector<1x128x1xf32> to vector<1x128x32xf32>
      %202 = arith.mulf %199, %201 : vector<1x128x32xf32>
      %cst_87 = arith.constant dense<0.000000e+00> : vector<1x32xf32>
      %203 = vector.multi_reduction <add>, %202, %cst_87 [1] : vector<1x128x32xf32> to vector<1x32xf32>
      %c0_88 = arith.constant 0 : index
      %c0_89 = arith.constant 0 : index
      %204 = vector.load %arg17[%c0_88, %c0_89] : memref<32x16xf32, #tpu.memory_space<vmem>>, vector<32x16xf32>
      %cst_90 = arith.constant dense<0.000000e+00> : vector<1x16xf32>
      %205 = tpu.matmul %203, %204, %cst_90 {dimension_numbers = #tpu.dot_dimension_numbers<[1], [0], [0], [1], [0, 0, 1, 1], [], []>} : vector<1x32xf32>, vector<32x16xf32>, vector<1x16xf32> -> vector<1x16xf32>
      %206 = arith.mulf %205, %205 : vector<1x16xf32>
      %cst_91 = arith.constant dense<0.000000e+00> : vector<1xf32>
      %207 = vector.multi_reduction <add>, %206, %cst_91 [1] : vector<1x16xf32> to vector<1xf32>
      %208 = vector.shape_cast %207 : vector<1xf32> to vector<1x1xf32>
      %cst_92 = arith.constant 9.99999996E-13 : f32
      %209 = vector.broadcast %cst_92 : f32 to vector<1x1xf32>
      %210 = arith.addf %208, %209 : vector<1x1xf32>
      %211 = math.rsqrt %210 : vector<1x1xf32>
      %212 = vector.broadcast %211 : vector<1x1xf32> to vector<1x16xf32>
      %213 = arith.mulf %205, %212 : vector<1x16xf32>
      %214 = vector.shape_cast %213 : vector<1x16xf32> to vector<1x1x16xf32>
      %c0_93 = arith.constant 0 : index
      %c0_94 = arith.constant 0 : index
      %c0_95 = arith.constant 0 : index
      %215 = vector.load %arg18[%c0_93, %c0_94, %c0_95] : memref<1x1x16xf32, #tpu.memory_space<vmem>>, vector<1x1x16xf32>
      tpu.vector_store %arg18[%c0_93, %c0_94, %c0_95], %214 {strides = array<i32>} : memref<1x1x16xf32, #tpu.memory_space<vmem>>, vector<1x1x16xf32>,
    } else {
    }
    return
  }
  func.func @transform_0(%arg0: i32, %arg1: i32) -> (i32, i32, i32) {
    %c0_i32 = arith.constant 0 : i32
    %c0_i32_0 = arith.constant 0 : i32
    %c0_i32_1 = arith.constant 0 : i32
    return %arg0, %c0_i32, %c0_i32_0 : i32, i32, i32
  }
  func.func @transform_1(%arg0: i32, %arg1: i32) -> (i32, i32, i32) {
    %c0_i32 = arith.constant 0 : i32
    %c0_i32_0 = arith.constant 0 : i32
    %c0_i32_1 = arith.constant 0 : i32
    return %arg0, %c0_i32, %c0_i32_0 : i32, i32, i32
  }
  func.func @transform_2(%arg0: i32, %arg1: i32) -> (i32, i32, i32) {
    %c0_i32 = arith.constant 0 : i32
    %c0_i32_0 = arith.constant 0 : i32
    %c0_i32_1 = arith.constant 0 : i32
    return %arg0, %c0_i32, %c0_i32_0 : i32, i32, i32
  }
  func.func @transform_3(%arg0: i32, %arg1: i32) -> (i32, i32, i32) {
    %c0_i32 = arith.constant 0 : i32
    %c0_i32_0 = arith.constant 0 : i32
    %c0_i32_1 = arith.constant 0 : i32
    return %arg1, %c0_i32, %c0_i32_0 : i32, i32, i32
  }
  func.func @transform_4(%arg0: i32, %arg1: i32) -> (i32, i32, i32) {
    %c0_i32 = arith.constant 0 : i32
    %c0_i32_0 = arith.constant 0 : i32
    %c0_i32_1 = arith.constant 0 : i32
    return %arg1, %c0_i32, %c0_i32_0 : i32, i32, i32
  }
  func.func @transform_5(%arg0: i32, %arg1: i32) -> (i32, i32, i32) {
    %c0_i32 = arith.constant 0 : i32
    %c0_i32_0 = arith.constant 0 : i32
    %c0_i32_1 = arith.constant 0 : i32
    return %arg1, %c0_i32, %c0_i32_0 : i32, i32, i32
  }
  func.func @transform_6(%arg0: i32, %arg1: i32) -> (i32, i32, i32) {
    %c0_i32 = arith.constant 0 : i32
    %c0_i32_0 = arith.constant 0 : i32
    %c0_i32_1 = arith.constant 0 : i32
    return %arg1, %c0_i32, %c0_i32_0 : i32, i32, i32
  }
  func.func @transform_7(%arg0: i32, %arg1: i32) -> (i32, i32, i32) {
    %c0_i32 = arith.constant 0 : i32
    %c0_i32_0 = arith.constant 0 : i32
    %c0_i32_1 = arith.constant 0 : i32
    return %arg1, %c0_i32, %c0_i32_0 : i32, i32, i32
  }
  func.func @transform_8(%arg0: i32, %arg1: i32) -> (i32, i32, i32) {
    %c0_i32 = arith.constant 0 : i32
    %c0_i32_0 = arith.constant 0 : i32
    %c0_i32_1 = arith.constant 0 : i32
    return %arg1, %c0_i32, %c0_i32_0 : i32, i32, i32
  }
  func.func @transform_9(%arg0: i32, %arg1: i32) -> (i32, i32, i32) {
    %c0_i32 = arith.constant 0 : i32
    %c0_i32_0 = arith.constant 0 : i32
    %c0_i32_1 = arith.constant 0 : i32
    return %arg1, %c0_i32, %c0_i32_0 : i32, i32, i32
  }
  func.func @transform_10(%arg0: i32, %arg1: i32) -> (i32, i32, i32) {
    %c0_i32 = arith.constant 0 : i32
    %c0_i32_0 = arith.constant 0 : i32
    %c0_i32_1 = arith.constant 0 : i32
    return %arg1, %c0_i32, %c0_i32_0 : i32, i32, i32
  }
  func.func @transform_11(%arg0: i32, %arg1: i32) -> (i32, i32, i32) {
    %c0_i32 = arith.constant 0 : i32
    %c0_i32_0 = arith.constant 0 : i32
    %c0_i32_1 = arith.constant 0 : i32
    return %arg1, %c0_i32, %c0_i32_0 : i32, i32, i32
  }
  func.func @transform_12(%arg0: i32, %arg1: i32) -> (i32, i32, i32) {
    %c0_i32 = arith.constant 0 : i32
    %c0_i32_0 = arith.constant 0 : i32
    %c0_i32_1 = arith.constant 0 : i32
    return %arg1, %c0_i32, %c0_i32_0 : i32, i32, i32
  }
  func.func @transform_13(%arg0: i32, %arg1: i32) -> (i32, i32, i32) {
    %c0_i32 = arith.constant 0 : i32
    %c0_i32_0 = arith.constant 0 : i32
    %c0_i32_1 = arith.constant 0 : i32
    return %arg1, %c0_i32, %c0_i32_0 : i32, i32, i32
  }
  func.func @transform_14(%arg0: i32, %arg1: i32) -> (i32, i32, i32) {
    %c0_i32 = arith.constant 0 : i32
    %c0_i32_0 = arith.constant 0 : i32
    %c0_i32_1 = arith.constant 0 : i32
    return %arg1, %c0_i32, %c0_i32_0 : i32, i32, i32
  }
  func.func @transform_15(%arg0: i32, %arg1: i32) -> (i32, i32) {
    %c0_i32 = arith.constant 0 : i32
    %c0_i32_0 = arith.constant 0 : i32
    %c0_i32_1 = arith.constant 0 : i32
    return %c0_i32, %c0_i32_0 : i32, i32
  }
  func.func @transform_16(%arg0: i32, %arg1: i32) -> (i32, i32, i32) {
    %c0_i32 = arith.constant 0 : i32
    %c0_i32_0 = arith.constant 0 : i32
    %c0_i32_1 = arith.constant 0 : i32
    return %arg0, %c0_i32, %c0_i32_0 : i32, i32, i32
  }
}

</mosaic_0001>

<bundles_post_ra>
// kernel: tpu_custom_call.1
= control target key start
LH: loop header
LB: loop body
LE: loop exit
PB: predicated region body
PF: predicated region fallthrough
CT: control target
= control target key end

     0   :  { %s7907_s0 = inlined_call_operand.vmem [shape: f32[2,128,32], index: 0, kind: input, shape index: {}]   ;;  %s7908_s1 = inlined_call_operand.vmem [shape: f32[2,1,128], index: 1, kind: input, shape index: {}]   ;;  %s7909_s2 = inlined_call_operand.vmem [shape: f32[2,128,1], index: 2, kind: input, shape index: {}]   ;;  %s7910_s3 = inlined_call_operand.vmem [shape: bf16[2,32,96], index: 3, kind: input, shape index: {}]   ;;  %s7911_s4 = inlined_call_operand.vmem [shape: f32[2,1,96], index: 4, kind: input, shape index: {}]   ;;  %s7912_s5 = inlined_call_operand.vmem [shape: bf16[2,32,32], index: 5, kind: input, shape index: {}]   ;;  %s7913_s6 = inlined_call_operand.vmem [shape: f32[2,1,32], index: 6, kind: input, shape index: {}]   ;;  %s7914_s7 = inlined_call_operand.vmem [shape: f32[2,1,32], index: 7, kind: input, shape index: {}]   ;;  %s7915_s8 = inlined_call_operand.vmem [shape: f32[2,1,32], index: 8, kind: input, shape index: {}]   ;;  %s7916_s9 = inlined_call_operand.vmem [shape: f32[2,1,32], index: 9, kind: input, shape index: {}]   ;;  %s7917_s10 = inlined_call_operand.vmem [shape: f32[2,1,32], index: 10, kind: input, shape index: {}]   ;;  %s7918_s11 = inlined_call_operand.vmem [shape: bf16[2,32,128], index: 11, kind: input, shape index: {}]   ;;  %s7919_s12 = inlined_call_operand.vmem [shape: f32[2,1,128], index: 12, kind: input, shape index: {}]   ;;  %s7920_s13 = inlined_call_operand.vmem [shape: bf16[2,128,32], index: 13, kind: input, shape index: {}]   ;;  %s7921_s14 = inlined_call_operand.vmem [shape: f32[2,1,32], index: 14, kind: input, shape index: {}]   ;;  %s7922_s15 = inlined_call_operand.vmem [shape: f32[32,16], index: 15, kind: input, shape index: {}]   ;;  %s7923_s16 = inlined_call_operand.hbm [shape: f32[2,1,16], index: 16, kind: output, shape index: {}]  }
   0x1   :  { %7944 = sst [smem:[#allocation25_spill]] %s7907_s0 }
   0x2   :  { %7945 = sst [smem:[#allocation26_spill]] %s7908_s1 }
   0x3   :  { %7946 = sst [smem:[#allocation27_spill]] %s7909_s2 }
   0x4   :  { %7947 = sst [smem:[#allocation28_spill]] %s7910_s3 }
   0x5   :  { %7948 = sst [smem:[#allocation29_spill]] %s7912_s5 }
   0x6   :  { %7949 = sst [smem:[#allocation30_spill]] %s7921_s14 }
   0x7   :  { %7950 = sst [smem:[#allocation31_spill]] %s7922_s15 }
   0x8   :  { %7951 = sst [smem:[#allocation32_spill]] %s7923_s16 }
   0x9   :  { %21 = vsyncpa [#allocation5], 0 }
   0xa   :  { %23 = vsyncpa [#allocation5 + $0x1], 0  ;;  %s5951_s21 = smov 0   ;;  %s5953_s22 = smov 0  }
   0xb   :  { %s5955_s23 = smov 0   ;;  %s5957_s24 = smov 0  }
   0xc   :  { %s5959_s25 = smov 0   ;;  %s5961_s26 = smov 0  }
   0xd   :  { %s5963_s27 = smov 0   ;;  %s5965_s28 = smov 0  }
   0xe LB: > { %7952 = sst [smem:[#allocation7_spill]] %s5817_s21  ;;  %s4575_s29 = sadd.s32 4294967295, %s5845_s28   ;;  %s5845_s28 = sphi %s5965_s28, %s29_s28   ;;  %s5841_s27 = sphi %s5963_s27, %s8025_s27   ;;  %s5837_s26 = sphi %s5961_s26, %s8021_s26   ;;  %s5833_s25 = sphi %s5959_s25, %s8020_s25   ;;  %s5829_s24 = sphi %s5957_s24, %s8019_s24   ;;  %s5825_s23 = sphi %s5955_s23, %s8018_s23   ;;  %s5821_s22 = sphi %s5953_s22, %s8024_s22   ;;  %s5817_s21 = sphi %s5951_s21, %s8023_s21  }
   0xf   : > { %7953 = sst [smem:[#allocation8_spill]] %s5825_s23  ;;  %s4576_s30 = sadd.s32 4294967294, %s5845_s28  }
  0x10   : > { %7954 = sst [smem:[#allocation9_spill]] %s5829_s24  ;;  %s38_s0 = sadd.s32 1, %s5837_s26 }
  0x11   : > { %7955 = sst [smem:[#allocation10_spill]] %s5833_s25  ;;  %p39_p0 = scmp.ge.s32.totalorder %s38_s0, 2 }
  0x12   : > { %7956 = sst [smem:[#allocation11_spill]] %s5837_s26  ;;  %s41_s17 = sadd.s32 1, %s5841_s27 }
  0x13   : > { %7957 = sst [smem:[#allocation12_spill]] %s5841_s27  ;;  %p469_p1 = scmp.ne.s32.totalorder %s5825_s23, %s5821_s22 }
  0x14   : > { %7958 = sst [smem:[#allocation13_spill]] %s5845_s28  ;;  %p470_p2 = scmp.eq.s32.totalorder %s4575_s29, 3 }
  0x15   : > { %s8027_s0 = smov (%p39_p0, %s38_s0), 0  ;;  %s8029_s17 = smov (!%p39_p0, %s41_s17), %s5841_s27 }
  0x16   : > { %7959 = sst [smem:[#allocation14_spill]] %s8027_s0  ;;  %p6000_p3 = por %p470_p2, %p469_p1 }
  0x17   : > { %p475_p4 = scmp.ne.s32.totalorder %s5821_s22, %s5817_s21  ;;  %p43_p5 = scmp.ge.s32.totalorder %s8029_s17, 2 }
  0x18   : > { %s7960_s18 = scalar_select %p6000_p3, 1, 0 }
  0x19   : > { %p476_p6 = scmp.eq.s32.totalorder %s4576_s30, 3  ;;  %p4579_p7 = scmp.ge.s32.totalorder %s5845_s28, 1 }
  0x1a   : > { %7961 = sst [smem:[#allocation15_spill]] %s7960_s18  ;;  %p599_p8 = scmp.lt.s32.totalorder %s5845_s28, 5 }
  0x1b   : > { %s8031_s17 = smov (%p43_p5, %s8029_s17), 0  ;;  %p6010_p9 = por %p476_p6, %p475_p4 }
  0x1c   : > { %7962 = sst [smem:[#allocation16_spill]] %s8031_s17  ;;  %p600_p10 = pnand %p4579_p7, %p599_p8 }
  0x1d   : > { %s7963_s19 = scalar_select %p6010_p9, 1, 0 }
  0x1e   : > { %s456_s20 = ssub.s32 %s5841_s27, %s8031_s17  ;;  %s459_s29 = sadd.s32 1, %s5825_s23 }
  0x1f   : > { %7964 = sst [smem:[#allocation17_spill]] %s7963_s19  ;;  %p457_p11 = scmp.eq.s32.totalorder %s456_s20, 0 }
  0x20   : > { %603 = sbr.rel (%p600_p10) target bundleno = 5194 (0x144a), region = 84 }
  0x21   : > { %s6018_s0 = scalar_select %p457_p11, %s5825_s23, %s459_s29  }
  0x23   : > { %7965 = sst [smem:[#allocation18_spill]] %s6018_s0 }
  0x27   : > { %p700_p12 = scmp.lt.s32.totalorder %s5833_s25, 1  ;;  %p713_p13 = scmp.lt.s32.totalorder %s5829_s24, 1 }
  0x28   : > { %s7966_s1 = sld [smem:[#allocation26_spill]]  ;;  %s7968_s23 = sld [smem:[#allocation25_spill]] }
  0x29   : > { %s701_s26 = scalar_select %p700_p12, %s5833_s25, 1 }
  0x2a   : > { %s6025_s21 = scalar_select %p713_p13, %s5829_s24, 1 }
  0x2b   : > { %s4677_s20 = sshll.u32 %s701_s26, 7  ;;  %s7969_s2 = sld [smem:[#allocation27_spill]] }
  0x2c   : > { %s4679_s25 = sshll.u32 %s6025_s21, 4  ;;  %s7971_s3 = sld [smem:[#allocation28_spill]] }
  0x2d   : > { %s7972_s5 = sld [smem:[#allocation29_spill]]  ;;  %s4682_s28 = sshll.u32 %s6025_s21, 6 }
  0x2e   : > { %s6030_s27 = scalar_lea.vmem %s7966_s1, %s701_s26  ;;  %s6035_s19 = scalar_lea.vmem %s7968_s23, %s4677_s20 }
  0x2f   : > { %7967 = sst [smem:[#allocation19_spill]] %s6030_s27  ;;  %s6080_s1 = scalar_lea.vmem %s7918_s11, %s4679_s25 }
  0x30   : > { %s6090_s14 = scalar_lea.vmem %s7920_s13, %s4682_s28  ;;  %s7975_s0 = sand.u32 1, %s5821_s22  }
  0x31   : > { %s6040_s18 = scalar_lea.vmem %s7969_s2, %s4677_s20  ;;  %s748_s20 = scalar_lea.vmem %s7919_s12, %s6025_s21 }
  0x32   : > { %7970 = sst [smem:[#allocation20_spill]] %s6040_s18  ;;  %s6050_s29 = scalar_lea.vmem %s7971_s3, %s4679_s25 }
  0x33   : > { %s6055_s23 = scalar_lea.vmem %s7972_s5, %s4679_s25  ;;  %s731_s18 = scalar_lea.vmem %s7914_s7, %s6025_s21 }
  0x34   : > { %7973 = sst [smem:[#allocation21_spill]] %s6055_s23  ;;  %s7974_s3 = sld [smem:[#allocation30_spill]] }
  0x35   : > { %s6098_s30 = scalar_lea.vmem [#allocation4], %s7975_s0  ;;  %s7976_s5 = sld [smem:[#allocation9_spill]] }
  0x3a   : > { %s756_s27 = scalar_lea.vmem %s7974_s3, %s6025_s21 }
  0x3b   : > { %p4592_p0 = scmp.ne.s32.totalorder %s7976_s5, 0 }
  0x3c   : > { %v762_v0 = vld [vmem:[%s6035_s19] sm:$0xff] (!%p4592_p0)  ;;  %vm778_vm0 = vcmask (!%p4592_p0), 261120   ;;  %v763_v1 = vld [vmem:[%s6035_s19 + $0x8] sm:$0xff] (!%p4592_p0)  ;;  %v764_v2 = vld [vmem:[%s6035_s19 + $0x10] sm:$0xff] (!%p4592_p0) }
  0x3d   : > { %761 = sbr.rel (%p4592_p0) target bundleno = 69 (0x45), region = 88  ;;  %779 = vst.msk [vmem:[#allocation2] sm:$0xff] (!%p4592_p0), %vm778_vm0, %v762_v0  ;;  %780 = vst.msk [vmem:[#allocation2 + $0x8] sm:$0xff] (!%p4592_p0), %vm778_vm0, %v763_v1  ;;  %v765_v3 = vld [vmem:[%s6035_s19 + $0x18] sm:$0xff] (!%p4592_p0)  ;;  %v766_v4 = vld [vmem:[%s6035_s19 + $0x20] sm:$0xff] (!%p4592_p0) }
  0x3e   : > { %781 = vst.msk [vmem:[#allocation2 + $0x10] sm:$0xff] (!%p4592_p0), %vm778_vm0, %v764_v2  ;;  %v767_v5 = vld [vmem:[%s6035_s19 + $0x28] sm:$0xff] (!%p4592_p0)  ;;  %782 = vst.msk [vmem:[#allocation2 + $0x18] sm:$0xff] (!%p4592_p0), %vm778_vm0, %v765_v3  ;;  %v768_v6 = vld [vmem:[%s6035_s19 + $0x30] sm:$0xff] (!%p4592_p0) }
  0x3f   : > { %783 = vst.msk [vmem:[#allocation2 + $0x20] sm:$0xff] (!%p4592_p0), %vm778_vm0, %v766_v4  ;;  %784 = vst.msk [vmem:[#allocation2 + $0x28] sm:$0xff] (!%p4592_p0), %vm778_vm0, %v767_v5  ;;  %v769_v7 = vld [vmem:[%s6035_s19 + $0x38] sm:$0xff] (!%p4592_p0)  ;;  %v770_v8 = vld [vmem:[%s6035_s19 + $0x40] sm:$0xff] (!%p4592_p0) }
  0x40   : > { %785 = vst.msk [vmem:[#allocation2 + $0x30] sm:$0xff] (!%p4592_p0), %vm778_vm0, %v768_v6  ;;  %786 = vst.msk [vmem:[#allocation2 + $0x38] sm:$0xff] (!%p4592_p0), %vm778_vm0, %v769_v7  ;;  %v771_v9 = vld [vmem:[%s6035_s19 + $0x48] sm:$0xff] (!%p4592_p0)  ;;  %v772_v10 = vld [vmem:[%s6035_s19 + $0x50] sm:$0xff] (!%p4592_p0) }
  0x41   : > { %787 = vst.msk [vmem:[#allocation2 + $0x40] sm:$0xff] (!%p4592_p0), %vm778_vm0, %v770_v8  ;;  %v773_v11 = vld [vmem:[%s6035_s19 + $0x58] sm:$0xff] (!%p4592_p0)  ;;  %788 = vst.msk [vmem:[#allocation2 + $0x48] sm:$0xff] (!%p4592_p0), %vm778_vm0, %v771_v9  ;;  %v774_v12 = vld [vmem:[%s6035_s19 + $0x60] sm:$0xff] (!%p4592_p0) }
  0x42   : > { %789 = vst.msk [vmem:[#allocation2 + $0x50] sm:$0xff] (!%p4592_p0), %vm778_vm0, %v772_v10  ;;  %790 = vst.msk [vmem:[#allocation2 + $0x58] sm:$0xff] (!%p4592_p0), %vm778_vm0, %v773_v11  ;;  %v775_v13 = vld [vmem:[%s6035_s19 + $0x68] sm:$0xff] (!%p4592_p0)  ;;  %v776_v14 = vld [vmem:[%s6035_s19 + $0x70] sm:$0xff] (!%p4592_p0) }
  0x43   : > { %791 = vst.msk [vmem:[#allocation2 + $0x60] sm:$0xff] (!%p4592_p0), %vm778_vm0, %v774_v12  ;;  %792 = vst.msk [vmem:[#allocation2 + $0x68] sm:$0xff] (!%p4592_p0), %vm778_vm0, %v775_v13  ;;  %v777_v15 = vld [vmem:[%s6035_s19 + $0x78] sm:$0xff] (!%p4592_p0) }
  0x44   : > { %793 = vst.msk [vmem:[#allocation2 + $0x70] sm:$0xff] %vm778_vm0, %v776_v14  ;;  %794 = vst.msk [vmem:[#allocation2 + $0x78] sm:$0xff] %vm778_vm0, %v777_v15 }
  0x45 PF: > { %v795_v16 = vld [vmem:[#allocation2] sm:$0xff]  ;;  %vm820_vm1 = vcmask 261120   ;;  %v796_v18 = vld [vmem:[#allocation2 + $0x8] sm:$0xff]  ;;  %s7977_s23 = scalar_lea.vmem %s7915_s8, %s6025_s21  ;;  %s7978_s16 = scalar_lea.vmem %s7911_s4, %s6025_s21  ;;  %vm1258_vm2 = vcmask 64512   ;;  %vm2183_vm3 = vcmask 130112   ;;  %vm2682_vm4 = vcmask 195712  }
  0x46   : > { %v797_v17 = vld [vmem:[#allocation2 + $0x10] sm:$0xff]  ;;  %v821_v19 = vsel %vm820_vm1, %v795_v16, 0.0  ;;  %v798_v21 = vld [vmem:[#allocation2 + $0x18] sm:$0xff]  ;;  %v824_v24 = vsel %vm820_vm1, %v796_v18, 0.0  ;;  %s5847_s2 = smov 96   ;;  %s5848_s15 = smov 64  }
  0x47   : > { %v827_v20 = vsel %vm820_vm1, %v797_v17, 0.0  ;;  %822 = vadd.xlane.f32.xlu0 %v821_v19  ;;  %v6135_v22 = vld [vmem:[#allocation2 + $0x20] sm:$0xff]  ;;  %v6137_v23 = vld [vmem:[#allocation2 + $0x28] sm:$0xff]  ;;  %v830_v25 = vsel %vm820_vm1, %v798_v21, 0.0  ;;  %s5849_s24 = smov 88   ;;  %s7979_s17 = sld [smem:[#allocation19_spill]] }
  0x48   : > { %828 = vadd.xlane.f32.xlu1 %v827_v20  ;;  %v6141_v26 = vld [vmem:[#allocation2 + $0x30] sm:$0xff]  ;;  %v6143_v27 = vld [vmem:[#allocation2 + $0x38] sm:$0xff]  ;;  %v833_v28 = vsel %vm820_vm1, %v6135_v22, 0.0  ;;  %v836_v29 = vsel %vm820_vm1, %v6137_v23, 0.0  ;;  %s5850_s26 = smov 120   ;;  %s5851_s0 = smov 56  }
  0x49   : > { %v839_v30 = vsel %vm820_vm1, %v6141_v26, 0.0  ;;  %v842_v31 = vsel %vm820_vm1, %v6143_v27, 0.0  ;;  %v6153_v32 = vld [vmem:[#allocation2 + $0x40] sm:$0xff]  ;;  %v6155_v33 = vld [vmem:[#allocation2 + $0x48] sm:$0xff]  ;;  %s5852_s5 = smov 80   ;;  %s5853_s3 = smov 112  }
  0x4a   : > { %v845_v34 = vsel %vm820_vm1, %v6153_v32, 0.0  ;;  %v848_v35 = vsel %vm820_vm1, %v6155_v33, 0.0  ;;  %v6161_v36 = vld [vmem:[#allocation2 + $0x50] sm:$0xff]  ;;  %v6163_v37 = vld [vmem:[#allocation2 + $0x58] sm:$0xff]  ;;  %s5854_s25 = smov 48   ;;  %s5855_s19 = smov 72  }
  0x4b   : > { %825 = vadd.xlane.f32.xlu0 %v824_v24  ;;  %v851_v38 = vsel %vm820_vm1, %v6161_v36, 0.0  ;;  %v854_v39 = vsel %vm820_vm1, %v6163_v37, 0.0  ;;  %v6169_v40 = vld [vmem:[#allocation2 + $0x60] sm:$0xff]  ;;  %v6171_v41 = vld [vmem:[#allocation2 + $0x68] sm:$0xff]  ;;  %v6177_v44 = vld [vmem:[#allocation2 + $0x70] sm:$0xff]  ;;  %s5859_s28 = smov 16  }
  0x4c   : > { %831 = vadd.xlane.f32.xlu1 %v830_v25  ;;  %v857_v42 = vsel %vm820_vm1, %v6169_v40, 0.0  ;;  %v860_v43 = vsel %vm820_vm1, %v6171_v41, 0.0  ;;  %v6179_v45 = vld [vmem:[#allocation2 + $0x78] sm:$0xff]  ;;  %v863_v46 = vsel %vm820_vm1, %v6177_v44, 0.0  ;;  %vm3181_vm5 = vcmask 261312  }
  0x4d   : > { %v866_v47 = vsel %vm820_vm1, %v6179_v45, 0.0 }
  0x4f   : > { %834 = vadd.xlane.f32.xlu0 %v833_v28 }
  0x50   : > { %837 = vadd.xlane.f32.xlu1 %v836_v29 }
  0x53   : > { %840 = vadd.xlane.f32.xlu0 %v839_v30 }
  0x54   : > { %843 = vadd.xlane.f32.xlu1 %v842_v31 }
  0x57   : > { %846 = vadd.xlane.f32.xlu0 %v845_v34 }
  0x58   : > { %849 = vadd.xlane.f32.xlu1 %v848_v35 }
  0x5b   : > { %852 = vadd.xlane.f32.xlu0 %v851_v38 }
  0x5c   : > { %855 = vadd.xlane.f32.xlu1 %v854_v39 }
  0x5f   : > { %858 = vadd.xlane.f32.xlu0 %v857_v42 }
  0x60   : > { %861 = vadd.xlane.f32.xlu1 %v860_v43 }
  0x63   : > { %864 = vadd.xlane.f32.xlu0 %v863_v46 }
  0x64   : > { %867 = vadd.xlane.f32.xlu1 %v866_v47 }
  0xd4   : > { %v823_v48 = vpop.xlane.xlu0 %822 }
  0xd5   : > { %v829_v49 = vpop.xlane.xlu1 %828  ;;  %v870_v50 = vmul.f32 0.03125, %v823_v48 }
  0xd6   : > { %v872_v51 = vmul.f32 0.03125, %v829_v49 }
  0xd7   : > { %v6185_v52 = vsub.f32 %v795_v16, %v870_v50 }
  0xd8   : > { %v6187_v53 = vsub.f32 %v797_v17, %v872_v51  ;;  %v826_v54 = vpop.xlane.xlu0 %825 }
  0xd9   : > { %v832_v55 = vpop.xlane.xlu1 %831  ;;  %v871_v56 = vmul.f32 0.03125, %v826_v54  ;;  %v902_v58 = vmul.f32 %v6185_v52, %v6185_v52 }
  0xda   : > { %v873_v57 = vmul.f32 0.03125, %v832_v55  ;;  %v904_v59 = vmul.f32 %v6187_v53, %v6187_v53 }
  0xdb   : > { %v6193_v60 = vsub.f32 %v796_v18, %v871_v56  ;;  %v918_v62 = vsel %vm820_vm1, %v902_v58, 0.0 }
  0xdc   : > { %v6195_v61 = vsub.f32 %v798_v21, %v873_v57  ;;  %919 = vadd.xlane.f32.xlu0 %v918_v62  ;;  %v835_v63 = vpop.xlane.xlu0 %834  ;;  %v924_v1 = vsel %vm820_vm1, %v904_v59, 0.0 }
  0xdd   : > { %v838_v0 = vpop.xlane.xlu1 %837  ;;  %v874_v2 = vmul.f32 0.03125, %v835_v63  ;;  %v903_v4 = vmul.f32 %v6193_v60, %v6193_v60 }
  0xde   : > { %v875_v3 = vmul.f32 0.03125, %v838_v0  ;;  %v905_v5 = vmul.f32 %v6195_v61, %v6195_v61 }
  0xdf   : > { %v6204_v6 = vsub.f32 %v6135_v22, %v874_v2  ;;  %v921_v8 = vsel %vm820_vm1, %v903_v4, 0.0 }
  0xe0   : > { %v6207_v7 = vsub.f32 %v6137_v23, %v875_v3  ;;  %925 = vadd.xlane.f32.xlu0 %v924_v1  ;;  %922 = vadd.xlane.f32.xlu1 %v921_v8  ;;  %v841_v9 = vpop.xlane.xlu0 %840  ;;  %v927_v11 = vsel %vm820_vm1, %v905_v5, 0.0  ;;  %v5365_v5 = vld [vmem:[%s6050_s29 + $0x8] sm:$0xff]  }
  0xe1   : > { %v844_v10 = vpop.xlane.xlu1 %843  ;;  %v876_v12 = vmul.f32 0.03125, %v841_v9  ;;  %v906_v14 = vmul.f32 %v6204_v6, %v6204_v6 }
  0xe2   : > { %v877_v13 = vmul.f32 0.03125, %v844_v10  ;;  %v907_v15 = vmul.f32 %v6207_v7, %v6207_v7 }
  0xe3   : > { %v6216_v16 = vsub.f32 %v6141_v26, %v876_v12  ;;  %v930_v18 = vsel %vm820_vm1, %v906_v14, 0.0 }
  0xe4   : > { %v6219_v17 = vsub.f32 %v6143_v27, %v877_v13  ;;  %928 = vadd.xlane.f32.xlu1 %v927_v11  ;;  %931 = vadd.xlane.f32.xlu0 %v930_v18  ;;  %v847_v19 = vpop.xlane.xlu0 %846  ;;  %v933_v21 = vsel %vm820_vm1, %v907_v15, 0.0 }
  0xe5   : > { %v850_v20 = vpop.xlane.xlu1 %849  ;;  %v878_v22 = vmul.f32 0.03125, %v847_v19  ;;  %v908_v24 = vmul.f32 %v6216_v16, %v6216_v16 }
  0xe6   : > { %v879_v23 = vmul.f32 0.03125, %v850_v20  ;;  %v909_v25 = vmul.f32 %v6219_v17, %v6219_v17 }
  0xe7   : > { %v6228_v26 = vsub.f32 %v6153_v32, %v878_v22  ;;  %v936_v28 = vsel %vm820_vm1, %v908_v24, 0.0 }
  0xe8   : > { %v6231_v27 = vsub.f32 %v6155_v33, %v879_v23  ;;  %934 = vadd.xlane.f32.xlu1 %v933_v21  ;;  %937 = vadd.xlane.f32.xlu0 %v936_v28  ;;  %v853_v29 = vpop.xlane.xlu0 %852  ;;  %v939_v31 = vsel %vm820_vm1, %v909_v25, 0.0 }
  0xe9   : > { %v856_v30 = vpop.xlane.xlu1 %855  ;;  %v880_v34 = vmul.f32 0.03125, %v853_v29  ;;  %v910_v38 = vmul.f32 %v6228_v26, %v6228_v26 }
  0xea   : > { %v881_v35 = vmul.f32 0.03125, %v856_v30  ;;  %v911_v32 = vmul.f32 %v6231_v27, %v6231_v27 }
  0xeb   : > { %v6240_v39 = vsub.f32 %v6161_v36, %v880_v34  ;;  %v942_v42 = vsel %vm820_vm1, %v910_v38, 0.0 }
  0xec   : > { %v6243_v33 = vsub.f32 %v6163_v37, %v881_v35  ;;  %940 = vadd.xlane.f32.xlu1 %v939_v31  ;;  %943 = vadd.xlane.f32.xlu0 %v942_v42  ;;  %v859_v43 = vpop.xlane.xlu0 %858  ;;  %v945_v47 = vsel %vm820_vm1, %v911_v32, 0.0 }
  0xed   : > { %v862_v46 = vpop.xlane.xlu1 %861  ;;  %v882_v48 = vmul.f32 0.03125, %v859_v43  ;;  %v912_v50 = vmul.f32 %v6240_v39, %v6240_v39 }
  0xee   : > { %v883_v49 = vmul.f32 0.03125, %v862_v46  ;;  %v913_v36 = vmul.f32 %v6243_v33, %v6243_v33 }
  0xef   : > { %v6252_v51 = vsub.f32 %v6169_v40, %v882_v48  ;;  %v948_v54 = vsel %vm820_vm1, %v912_v50, 0.0 }
  0xf0   : > { %v6255_v37 = vsub.f32 %v6171_v41, %v883_v49  ;;  %946 = vadd.xlane.f32.xlu1 %v945_v47  ;;  %949 = vadd.xlane.f32.xlu0 %v948_v54  ;;  %v865_v55 = vpop.xlane.xlu0 %864  ;;  %v951_v57 = vsel %vm820_vm1, %v913_v36, 0.0  ;;  %v6285_v47 = vld [vmem:[%s731_s18] ss:$0 sm:$0xff]  ;;  %s5858_s18 = smov 8  }
  0xf1   : > { %v868_v56 = vpop.xlane.xlu1 %867  ;;  %v884_v58 = vmul.f32 0.03125, %v865_v55  ;;  %v914_v62 = vmul.f32 %v6252_v51, %v6252_v51 }
  0xf2   : > { %v885_v59 = vmul.f32 0.03125, %v868_v56  ;;  %v915_v40 = vmul.f32 %v6255_v37, %v6255_v37 }
  0xf3   : > { %v6264_v41 = vsub.f32 %v6177_v44, %v884_v58  ;;  %v954_v0 = vsel %vm820_vm1, %v914_v62, 0.0 }
  0xf4   : > { %v6267_v63 = vsub.f32 %v6179_v45, %v885_v59  ;;  %952 = vadd.xlane.f32.xlu1 %v951_v57  ;;  %955 = vadd.xlane.f32.xlu0 %v954_v0  ;;  %v957_v1 = vsel %vm820_vm1, %v915_v40, 0.0  ;;  %v5364_v45 = vld [vmem:[%s6050_s29] sm:$0xff]   ;;  %s5856_s29 = smov 104  }
  0xf5   : > { %v916_v2 = vmul.f32 %v6264_v41, %v6264_v41  ;;  %4862 = vmatprep.subr.bf16.mxu0 %v5364_v45  ;;  %v6294_v59 = vld [vmem:[%s7977_s23] ss:$0 sm:$0xff]  ;;  %s5857_s23 = smov 40  }
  0xf6   : > { %v917_v3 = vmul.f32 %v6267_v63, %v6267_v63  ;;  %4863 = vmatpush3.bf16.msra.mxu0 %v5364_v45 }
  0xf7   : > { %v960_v4 = vsel %vm820_vm1, %v916_v2, 0.0  ;;  %4864 = vmatprep.subr.bf16.mxu0 %v5365_v5 }
  0xf8   : > { %958 = vadd.xlane.f32.xlu1 %v957_v1  ;;  %961 = vadd.xlane.f32.xlu0 %v960_v4  ;;  %v963_v44 = vsel %vm820_vm1, %v917_v3, 0.0 }
  0xfa   : > { %4865 = vmatpush3.bf16.msra.mxu0 %v5365_v5 }
  0xfc   : > { %964 = vadd.xlane.f32.xlu1 %v963_v44 }
 0x169   : > { %v920_v8 = vpop.xlane.xlu0 %919 }
 0x16a   : > { %v966_v9 = vmul.f32 0.03125, %v920_v8 }
 0x16c   : > { %v982_v10 = vadd.f32 1e-05, %v966_v9 }
 0x16d   : > { %v923_v11 = vpop.xlane.xlu1 %922  ;;  %v926_v12 = vpop.xlane.xlu0 %925 }
 0x16e   : > { %5378 = vrsqrt.f32 %v982_v10  ;;  %v967_v13 = vmul.f32 0.03125, %v923_v11  ;;  %v968_v14 = vmul.f32 0.03125, %v926_v12 }
 0x170   : > { %v983_v15 = vadd.f32 1e-05, %v967_v13  ;;  %v984_v18 = vadd.f32 1e-05, %v968_v14 }
 0x171   : > { %v929_v19 = vpop.xlane.xlu1 %928  ;;  %v932_v20 = vpop.xlane.xlu0 %931 }
 0x172   : > { %5380 = vrsqrt.f32 %v983_v15  ;;  %v969_v21 = vmul.f32 0.03125, %v929_v19  ;;  %v970_v22 = vmul.f32 0.03125, %v932_v20 }
 0x173   : > { %5382 = vrsqrt.f32 %v984_v18 }
 0x174   : > { %v985_v23 = vadd.f32 1e-05, %v969_v21  ;;  %v986_v24 = vadd.f32 1e-05, %v970_v22 }
 0x175   : > { %v935_v25 = vpop.xlane.xlu1 %934  ;;  %v938_v28 = vpop.xlane.xlu0 %937 }
 0x176   : > { %5384 = vrsqrt.f32 %v985_v23  ;;  %v971_v29 = vmul.f32 0.03125, %v935_v25  ;;  %v972_v30 = vmul.f32 0.03125, %v938_v28 }
 0x177   : > { %5386 = vrsqrt.f32 %v986_v24 }
 0x178   : > { %v5379_v31 = vpop.eup %5378  ;;  %v987_v34 = vadd.f32 1e-05, %v971_v29  ;;  %v988_v35 = vadd.f32 1e-05, %v972_v30 }
 0x179   : > { %v941_v38 = vpop.xlane.xlu1 %940  ;;  %v944_v32 = vpop.xlane.xlu0 %943  ;;  %v1014_v42 = vmul.f32 %v5379_v31, %v6185_v52 }
 0x17a   : > { %5388 = vrsqrt.f32 %v987_v34  ;;  %v973_v43 = vmul.f32 0.03125, %v941_v38  ;;  %v974_v46 = vmul.f32 0.03125, %v944_v32 }
 0x17b   : > { %5390 = vrsqrt.f32 %v988_v35  ;;  %v1036_v52 = vmul.f32 %v6285_v47, %v1014_v42 }
 0x17c   : > { %v5381_v48 = vpop.eup %5380  ;;  %v989_v49 = vadd.f32 1e-05, %v973_v43  ;;  %v990_v50 = vadd.f32 1e-05, %v974_v46 }
 0x17d   : > { %v5383_v36 = vpop.eup %5382  ;;  %v947_v54 = vpop.xlane.xlu1 %946  ;;  %v1015_v56 = vmul.f32 %v5381_v48, %v6193_v60  ;;  %v1058_v44 = vadd.f32 %v6294_v59, %v1036_v52 }
 0x17e   : > { %v950_v55 = vpop.xlane.xlu0 %949  ;;  %5392 = vrsqrt.f32 %v989_v49  ;;  %v975_v57 = vmul.f32 0.03125, %v947_v54  ;;  %v1016_v62 = vmul.f32 %v5383_v36, %v6187_v53 }
 0x17f   : > { %v976_v58 = vmul.f32 0.03125, %v950_v55  ;;  %5394 = vrsqrt.f32 %v990_v50  ;;  %v1037_v40 = vmul.f32 %v6285_v47, %v1015_v56 }
 0x180   : > { %v5385_v0 = vpop.eup %5384  ;;  %v991_v1 = vadd.f32 1e-05, %v975_v57  ;;  %v1038_v8 = vmul.f32 %v6285_v47, %v1016_v62 }
 0x181   : > { %v992_v2 = vadd.f32 1e-05, %v976_v58  ;;  %v5387_v60 = vpop.eup %5386  ;;  %v953_v3 = vpop.xlane.xlu1 %952  ;;  %v1059_v45 = vadd.f32 %v6294_v59, %v1037_v40  ;;  %v1017_v5 = vmul.f32 %v5385_v0, %v6195_v61 }
 0x182   : > { %v956_v4 = vpop.xlane.xlu0 %955  ;;  %5396 = vrsqrt.f32 %v991_v1  ;;  %v977_v9 = vmul.f32 0.03125, %v953_v3  ;;  %v1018_v12 = vmul.f32 %v5387_v60, %v6204_v6  ;;  %v1060_v61 = vadd.f32 %v6294_v59, %v1038_v8 }
 0x183   : > { %v978_v53 = vmul.f32 0.03125, %v956_v4  ;;  %5398 = vrsqrt.f32 %v992_v2  ;;  %v1074_v10 = vpack.c.bf16 %v1059_v45, %v1058_v44  ;;  %v1039_v11 = vmul.f32 %v6285_v47, %v1017_v5 }
 0x184   : > { %v5389_v13 = vpop.eup %5388  ;;  %v993_v14 = vadd.f32 1e-05, %v977_v9  ;;  %v1040_v23 = vmul.f32 %v6285_v47, %v1018_v12 }
 0x185   : > { %v994_v15 = vadd.f32 1e-05, %v978_v53  ;;  %v5391_v18 = vpop.eup %5390  ;;  %v959_v19 = vpop.xlane.xlu1 %958  ;;  %4866 = vmatprep.mubr.msk.bf16.mxu0 %vm820_vm1, %v1074_v10  ;;  %v1061_v21 = vadd.f32 %v6294_v59, %v1039_v11  ;;  %v1019_v22 = vmul.f32 %v5389_v13, %v6207_v7 }
 0x186   : > { %v962_v20 = vpop.xlane.xlu0 %961  ;;  %5400 = vrsqrt.f32 %v993_v14  ;;  %v979_v24 = vmul.f32 0.03125, %v959_v19  ;;  %v1020_v6 = vmul.f32 %v5391_v18, %v6216_v16  ;;  %v1062_v7 = vadd.f32 %v6294_v59, %v1040_v23 }
 0x187   : > { %v980_v25 = vmul.f32 0.03125, %v962_v20  ;;  %5402 = vrsqrt.f32 %v994_v15  ;;  %v1075_v28 = vpack.c.bf16 %v1061_v21, %v1060_v61  ;;  %v1041_v29 = vmul.f32 %v6285_v47, %v1019_v22 }
 0x188   : > { %v5393_v30 = vpop.eup %5392  ;;  %v995_v31 = vadd.f32 1e-05, %v979_v24  ;;  %v1042_v43 = vmul.f32 %v6285_v47, %v1020_v6 }
 0x189   : > { %v996_v34 = vadd.f32 1e-05, %v980_v25  ;;  %v5395_v35 = vpop.eup %5394  ;;  %v965_v38 = vpop.xlane.xlu1 %964  ;;  %4867 = vmatmul.mubr.msk.bf16.vlgmr.msra.gmra.mrb[0].mxu0 %vm820_vm1, %v1075_v28  ;;  %v1063_v32 = vadd.f32 %v6294_v59, %v1041_v29  ;;  %v1021_v42 = vmul.f32 %v5393_v30, %v6219_v17 }
 0x18a   : > { %5404 = vrsqrt.f32 %v995_v31  ;;  %v981_v16 = vmul.f32 0.03125, %v965_v38  ;;  %v1022_v46 = vmul.f32 %v5395_v35, %v6228_v26  ;;  %v1064_v55 = vadd.f32 %v6294_v59, %v1042_v43 }
 0x18b   : > { %5406 = vrsqrt.f32 %v996_v34  ;;  %v1076_v48 = vpack.c.bf16 %v1063_v32, %v1062_v7  ;;  %v1043_v49 = vmul.f32 %v6285_v47, %v1021_v42 }
 0x18c   : > { %v5397_v50 = vpop.eup %5396  ;;  %v997_v36 = vadd.f32 1e-05, %v981_v16  ;;  %v1044_v52 = vmul.f32 %v6285_v47, %v1022_v46 }
 0x18d   : > { %v5399_v54 = vpop.eup %5398  ;;  %4870 = vmatprep.mubr.msk.bf16.mxu0 %vm820_vm1, %v1076_v48  ;;  %v1065_v56 = vadd.f32 %v6294_v59, %v1043_v49  ;;  %v1023_v17 = vmul.f32 %v5397_v50, %v6231_v27 }
 0x18e   : > { %5408 = vrsqrt.f32 %v997_v36  ;;  %v1024_v26 = vmul.f32 %v5399_v54, %v6240_v39  ;;  %v1066_v0 = vadd.f32 %v6294_v59, %v1044_v52 }
 0x18f   : > { %v1077_v57 = vpack.c.bf16 %v1065_v56, %v1064_v55  ;;  %v1045_v58 = vmul.f32 %v6285_v47, %v1023_v17 }
 0x190   : > { %v5401_v62 = vpop.eup %5400  ;;  %v1046_v27 = vmul.f32 %v6285_v47, %v1024_v26 }
 0x191   : > { %v5403_v40 = vpop.eup %5402  ;;  %4871 = vmatmul.mubr.msk.bf16.gmra.mrb[4].mxu0 %vm820_vm1, %v1077_v57  ;;  %v1067_v1 = vadd.f32 %v6294_v59, %v1045_v58  ;;  %v1025_v2 = vmul.f32 %v5401_v62, %v6243_v33 }
 0x192   : > { %v1026_v60 = vmul.f32 %v5403_v40, %v6252_v51  ;;  %v1068_v45 = vadd.f32 %v6294_v59, %v1046_v27 }
 0x193   : > { %v1078_v3 = vpack.c.bf16 %v1067_v1, %v1066_v0  ;;  %v1047_v39 = vmul.f32 %v6285_v47, %v1025_v2 }
 0x194   : > { %v5405_v4 = vpop.eup %5404  ;;  %v1048_v9 = vmul.f32 %v6285_v47, %v1026_v60 }
 0x195   : > { %v5407_v44 = vpop.eup %5406  ;;  %4874 = vmatprep.mubr.msk.bf16.mxu0 %vm820_vm1, %v1078_v3  ;;  %v1069_v5 = vadd.f32 %v6294_v59, %v1047_v39  ;;  %v1027_v8 = vmul.f32 %v5405_v4, %v6255_v37 }
 0x196   : > { %v1028_v33 = vmul.f32 %v5407_v44, %v6264_v41  ;;  %v1070_v11 = vadd.f32 %v6294_v59, %v1048_v9 }
 0x197   : > { %v1079_v53 = vpack.c.bf16 %v1069_v5, %v1068_v45  ;;  %v1049_v51 = vmul.f32 %v6285_v47, %v1027_v8 }
 0x198   : > { %v5409_v10 = vpop.eup %5408  ;;  %v1050_v14 = vmul.f32 %v6285_v47, %v1028_v33 }
 0x199   : > { %4875 = vmatmul.mubr.msk.bf16.gmra.mrb[8].mxu0 %vm820_vm1, %v1079_v53  ;;  %v1071_v12 = vadd.f32 %v6294_v59, %v1049_v51  ;;  %v1029_v13 = vmul.f32 %v5409_v10, %v6267_v63  ;;  %v4596_v63 = vld [vmem:[%s7978_s16] ss:$0 sm:$0xff]  ;;  %s7993_s16 = sld [smem:[#allocation21_spill]] }
 0x19a   : > { %v1072_v41 = vadd.f32 %v6294_v59, %v1050_v14 }
 0x19b   : > { %v1080_v37 = vpack.c.bf16 %v1071_v12, %v1070_v11  ;;  %v1051_v15 = vmul.f32 %v6285_v47, %v1029_v13 }
 0x19d   : > { %4878 = vmatprep.mubr.msk.bf16.mxu0 %vm820_vm1, %v1080_v37  ;;  %v1073_v18 = vadd.f32 %v6294_v59, %v1051_v15 }
 0x19f   : > { %v1081_v19 = vpack.c.bf16 %v1073_v18, %v1072_v41 }
 0x1a1   : > { %4879 = vmatmul.mubr.msk.bf16.gmra.mrb[12].mxu0 %vm820_vm1, %v1081_v19 }
 0x25c   : > { %v4868_v20 = vpop.f32.mrb[0].mxu0 }
 0x25d   : > { %v1163_v61 = vpop.f32.mrb[1].mxu0  ;;  %v1172_v22 = vadd.f32 %v4868_v20, %v4596_v63 }
 0x25e   : > { %v4869_v21 = vpop.f32.mrb[2].mxu0  ;;  %v1164_v24 = vadd.f32 %v4596_v63, %v1163_v61  ;;  %v6435_v61 = vld [vmem:[%s7979_s17] ss:$0 sm:$0xff] }
 0x25f   : > { %v1175_v23 = vadd.f32 %v4869_v21, %v4596_v63  ;;  %v1166_v47 = vpop.f32.mrb[3].mxu0 }
 0x260   : > { %v1167_v25 = vadd.f32 %v4596_v63, %v1166_v47 }
 0x261   : > { %v6354_v6 = vpack.c.bf16 %v1175_v23, %v1172_v22 }
 0x262   : > { %v6356_v59 = vpack.c.bf16 %v1167_v25, %v1164_v24 }
 0x263   : > { %1244 = vrot.lane.b32.xlu1 %v6354_v6, %s5847_s2 }
 0x264   : > { %1242 = vrot.lane.b32.xlu0 %v6356_v59, %s5847_s2  ;;  %v4872_v28 = vpop.f32.mrb[4].mxu0  ;;  %4898 = vmatprep.mubr.msk.bf16.mxu1 %vm1258_vm2, %v6356_v59 }
 0x265   : > { %v1179_v29 = vpop.f32.mrb[5].mxu0  ;;  %v1188_v31 = vadd.f32 %v4872_v28, %v4596_v63 }
 0x266   : > { %v4873_v30 = vpop.f32.mrb[6].mxu0  ;;  %v1180_v38 = vadd.f32 %v4596_v63, %v1179_v29 }
 0x267   : > { %v1191_v34 = vadd.f32 %v4873_v30, %v4596_v63  ;;  %v1182_v35 = vpop.f32.mrb[7].mxu0 }
 0x268   : > { %v1183_v7 = vadd.f32 %v4596_v63, %v1182_v35 }
 0x269   : > { %v6364_v32 = vpack.c.bf16 %v1191_v34, %v1188_v31 }
 0x26a   : > { %v6366_v42 = vpack.c.bf16 %v1183_v7, %v1180_v38 }
 0x26c   : > { %1246 = vrot.lane.b32.xlu1 %v6366_v42, %s5847_s2  ;;  %v4876_v43 = vpop.f32.mrb[8].mxu0 }
 0x26d   : > { %v1195_v16 = vpop.f32.mrb[9].mxu0  ;;  %v1204_v48 = vadd.f32 %v4876_v43, %v4596_v63 }
 0x26e   : > { %v4877_v46 = vpop.f32.mrb[10].mxu0  ;;  %v1196_v36 = vadd.f32 %v4596_v63, %v1195_v16 }
 0x26f   : > { %v1207_v49 = vadd.f32 %v4877_v46, %v4596_v63  ;;  %v1198_v50 = vpop.f32.mrb[11].mxu0 }
 0x270   : > { %v1199_v54 = vadd.f32 %v4596_v63, %v1198_v50  ;;  %1248 = vrot.lane.b32.xlu1 %v6364_v32, %s5847_s2 }
 0x271   : > { %v6372_v55 = vpack.c.bf16 %v1207_v49, %v1204_v48 }
 0x272   : > { %v6374_v56 = vpack.c.bf16 %v1199_v54, %v1196_v36 }
 0x274   : > { %1252 = vrot.lane.b32.xlu1 %v6372_v55, %s5847_s2  ;;  %1250 = vrot.lane.b32.xlu0 %v6374_v56, %s5847_s2  ;;  %v4880_v17 = vpop.f32.mrb[12].mxu0 }
 0x275   : > { %v1211_v52 = vpop.f32.mrb[13].mxu0  ;;  %v1220_v57 = vadd.f32 %v4880_v17, %v4596_v63 }
 0x276   : > { %v4881_v26 = vpop.f32.mrb[14].mxu0  ;;  %v1212_v40 = vadd.f32 %v4596_v63, %v1211_v52 }
 0x277   : > { %v1223_v58 = vadd.f32 %v4881_v26, %v4596_v63  ;;  %v1214_v62 = vpop.f32.mrb[15].mxu0 }
 0x278   : > { %v1215_v0 = vadd.f32 %v4596_v63, %v1214_v62 }
 0x279   : > { %v6380_v1 = vpack.c.bf16 %v1223_v58, %v1220_v57 }
 0x27a   : > { %v6382_v2 = vpack.c.bf16 %v1215_v0, %v1212_v40 }
 0x27b   : > { %1256 = vrot.lane.b32.xlu1 %v6380_v1, %s5847_s2 }
 0x27c   : > { %1254 = vrot.lane.b32.xlu0 %v6382_v2, %s5847_s2  ;;  %s5860_s2 = smov 24  }
 0x27f   : > { %1558 = vrot.lane.b32.xlu1 %v6354_v6, %s5848_s15 }
 0x280   : > { %1556 = vrot.lane.b32.xlu0 %v6356_v59, %s5848_s15 }
 0x283   : > { %1562 = vrot.lane.b32.xlu1 %v6364_v32, %s5848_s15 }
 0x284   : > { %1560 = vrot.lane.b32.xlu0 %v6366_v42, %s5848_s15 }
 0x287   : > { %1566 = vrot.lane.b32.xlu1 %v6372_v55, %s5848_s15 }
 0x288   : > { %1564 = vrot.lane.b32.xlu0 %v6374_v56, %s5848_s15 }
 0x28b   : > { %1570 = vrot.lane.b32.xlu1 %v6380_v1, %s5848_s15 }
 0x28c   : > { %1709 = vrot.lane.b32.xlu0 %v6356_v59, %s5849_s24 }
 0x28f   : > { %1711 = vrot.lane.b32.xlu1 %v6354_v6, %s5849_s24 }
 0x290   : > { %1568 = vrot.lane.b32.xlu0 %v6382_v2, %s5848_s15 }
 0x2d5   : > { %v1245_v3 = vpop.permute.xlu1 %1244 }
 0x2d6   : > { %v1243_v27 = vpop.permute.xlu0 %1242  ;;  %v1287_v4 = vsel %vm1258_vm2, %v1245_v3, 0 }
 0x2d7   : > { %5243 = vmatprep.subr.msk.bf16.mxu1 %vm1258_vm2, %v1243_v27  ;;  %v1284_v60 = vsel %vm1258_vm2, %v1243_v27, 0 }
 0x2d8   : > { %4883 = vmatpush3.bf16.xpose.msra.mxu1 %v1284_v60 }
 0x2d9   : > { %5244 = vmatprep.subr.msk.bf16.mxu1 %vm1258_vm2, %v1245_v3 }
 0x2de   : > { %v1247_v39 = vpop.permute.xlu1 %1246 }
 0x2df   : > { %v1290_v45 = vsel %vm1258_vm2, %v1247_v39, 0 }
 0x2e0   : > { %4885 = vmatpush3.bf16.xpose.msra.mxu1 %v1287_v4 }
 0x2e1   : > { %5245 = vmatprep.subr.msk.bf16.mxu1 %vm1258_vm2, %v1247_v39 }
 0x2e2   : > { %v1249_v44 = vpop.permute.xlu1 %1248 }
 0x2e3   : > { %v1293_v53 = vsel %vm1258_vm2, %v1249_v44, 0 }
 0x2e6   : > { %v1253_v5 = vpop.permute.xlu1 %1252  ;;  %v1251_v8 = vpop.permute.xlu0 %1250 }
 0x2e7   : > { %v1296_v12 = vsel %vm1258_vm2, %v1251_v8, 0  ;;  %v1299_v37 = vsel %vm1258_vm2, %v1253_v5, 0 }
 0x2e8   : > { %4887 = vmatpush3.bf16.xpose.msra.mxu1 %v1290_v45 }
 0x2e9   : > { %5246 = vmatprep.subr.msk.bf16.mxu1 %vm1258_vm2, %v1249_v44 }
 0x2ed   : > { %v1257_v9 = vpop.permute.xlu1 %1256 }
 0x2ee   : > { %v1255_v33 = vpop.permute.xlu0 %1254  ;;  %v1305_v63 = vsel %vm1258_vm2, %v1257_v9, 0 }
 0x2ef   : > { %v1302_v18 = vsel %vm1258_vm2, %v1255_v33, 0 }
 0x2f0   : > { %4889 = vmatpush3.bf16.xpose.msra.mxu1 %v1293_v53 }
 0x2f1   : > { %5247 = vmatprep.subr.msk.bf16.mxu1 %vm1258_vm2, %v1251_v8  ;;  %v1559_v10 = vpop.permute.xlu1 %1558 }
 0x2f2   : > { %v1557_v51 = vpop.permute.xlu0 %1556 }
 0x2f3   : > { %4914 = vmatprep.subr.bf16.mxu0 %v1557_v51 }
 0x2f4   : > { %4915 = vmatpush3.bf16.msra.mxu0 %v1557_v51 }
 0x2f5   : > { %4916 = vmatprep.subr.bf16.mxu0 %v1559_v10  ;;  %v1563_v13 = vpop.permute.xlu1 %1562 }
 0x2f6   : > { %v1561_v11 = vpop.permute.xlu0 %1560 }
 0x2f8   : > { %4891 = vmatpush3.bf16.xpose.msra.mxu1 %v1296_v12  ;;  %4917 = vmatpush3.bf16.msra.mxu0 %v1559_v10 }
 0x2f9   : > { %5248 = vmatprep.subr.msk.bf16.mxu1 %vm1258_vm2, %v1253_v5  ;;  %4918 = vmatprep.subr.bf16.mxu0 %v1561_v11  ;;  %v1567_v41 = vpop.permute.xlu1 %1566 }
 0x2fa   : > { %v1565_v14 = vpop.permute.xlu0 %1564 }
 0x2fc   : > { %4919 = vmatpush3.bf16.msra.mxu0 %v1561_v11 }
 0x2fd   : > { %4920 = vmatprep.subr.bf16.mxu0 %v1563_v13  ;;  %v1571_v20 = vpop.permute.xlu1 %1570 }
 0x2fe   : > { %v6413_v15 = vpop.permute.xlu0 %1709 }
 0x300   : > { %4893 = vmatpush3.bf16.xpose.msra.mxu1 %v1299_v37  ;;  %4921 = vmatpush3.bf16.msra.mxu0 %v1563_v13 }
 0x301   : > { %5249 = vmatprep.subr.msk.bf16.mxu1 %vm1258_vm2, %v1255_v33  ;;  %4922 = vmatprep.subr.bf16.mxu0 %v1565_v14  ;;  %v6493_v3 = vpop.permute.xlu1 %1711 }
 0x302   : > { %v1569_v19 = vpop.permute.xlu0 %1568 }
 0x304   : > { %4923 = vmatpush3.bf16.msra.mxu0 %v1565_v14 }
 0x305   : > { %4924 = vmatprep.subr.bf16.mxu0 %v1567_v41 }
 0x308   : > { %4895 = vmatpush3.bf16.xpose.msra.mxu1 %v1302_v18  ;;  %4925 = vmatpush3.bf16.msra.mxu0 %v1567_v41 }
 0x309   : > { %5250 = vmatprep.subr.msk.bf16.mxu1 %vm1258_vm2, %v1257_v9  ;;  %4926 = vmatprep.subr.bf16.mxu0 %v1569_v19 }
 0x30c   : > { %4927 = vmatpush3.bf16.msra.mxu0 %v1569_v19 }
 0x30d   : > { %4928 = vmatprep.subr.bf16.mxu0 %v1571_v20 }
 0x310   : > { %4897 = vmatpush3.bf16.xpose.msra.mxu1 %v1305_v63  ;;  %4929 = vmatpush3.bf16.msra.mxu0 %v1571_v20 }
 0x311   : > { %5251 = vmatprep.subr.msk.bf16.mxu0 %vm1258_vm2, %v6413_v15 }
 0x317   : > { %4899 = vmatmul.mubr.msk.bf16.vlgmr.msra.gmra.mrb[0].mxu1 %vm1258_vm2, %v6354_v6 }
 0x318   : > { %4902 = vmatprep.mubr.msk.bf16.mxu1 %vm1258_vm2, %v6366_v42 }
 0x31f   : > { %4903 = vmatmul.mubr.msk.bf16.gmra.mrb[4].mxu1 %vm1258_vm2, %v6364_v32 }
 0x320   : > { %4906 = vmatprep.mubr.msk.bf16.mxu1 %vm1258_vm2, %v6374_v56 }
 0x327   : > { %4907 = vmatmul.mubr.msk.bf16.gmra.mrb[8].mxu1 %vm1258_vm2, %v6372_v55 }
 0x328   : > { %4910 = vmatprep.mubr.msk.bf16.mxu1 %vm1258_vm2, %v6382_v2 }
 0x32f   : > { %4911 = vmatmul.mubr.msk.bf16.gmra.mrb[12].mxu1 %vm1258_vm2, %v6380_v1 }
 0x3ea   : > { %v4900_v21 = vpop.f32.mrb[0].mxu1 }
 0x3eb   : > { %v1350_v22 = vadd.f32 %v4900_v21, %v6435_v61  ;;  %v1341_v23 = vpop.f32.mrb[1].mxu1 }
 0x3ec   : > { %v4901_v47 = vpop.f32.mrb[2].mxu1  ;;  %v1342_v28 = vadd.f32 %v6435_v61, %v1341_v23 }
 0x3ed   : > { %1408 = vmax.xlane.f32.xlu0 %v1350_v22  ;;  %v1344_v24 = vpop.f32.mrb[3].mxu1  ;;  %v1353_v30 = vadd.f32 %v4901_v47, %v6435_v61 }
 0x3ee   : > { %v1345_v25 = vadd.f32 %v6435_v61, %v1344_v24 }
 0x3f0   : > { %1406 = vmax.xlane.f32.xlu1 %v1345_v25 }
 0x3f1   : > { %1404 = vmax.xlane.f32.xlu0 %v1342_v28 }
 0x3f2   : > { %v4904_v29 = vpop.f32.mrb[4].mxu1 }
 0x3f3   : > { %v1357_v31 = vpop.f32.mrb[5].mxu1  ;;  %v6445_v7 = vadd.f32 %v4904_v29, %v6435_v61 }
 0x3f4   : > { %v4905_v34 = vpop.f32.mrb[6].mxu1  ;;  %v6453_v46 = vadd.f32 %v6435_v61, %v1357_v31 }
 0x3f5   : > { %v6442_v35 = vadd.f32 %v4905_v34, %v6435_v61  ;;  %v1360_v38 = vpop.f32.mrb[7].mxu1  ;;  %1410 = vmax.xlane.f32.xlu0 %v1353_v30 }
 0x3f6   : > { %v6449_v43 = vadd.f32 %v6435_v61, %v1360_v38 }
 0x3f7   : > { %1418 = vmax.xlane.f32.xlu1 %v6442_v35 }
 0x3f9   : > { %1416 = vmax.xlane.f32.xlu0 %v6445_v7 }
 0x3fa   : > { %v4908_v16 = vpop.f32.mrb[8].mxu1 }
 0x3fb   : > { %v1373_v48 = vpop.f32.mrb[9].mxu1  ;;  %1414 = vmax.xlane.f32.xlu1 %v6449_v43  ;;  %v6461_v54 = vadd.f32 %v4908_v16, %v6435_v61 }
 0x3fc   : > { %v4909_v49 = vpop.f32.mrb[10].mxu1  ;;  %v6469_v26 = vadd.f32 %v6435_v61, %v1373_v48 }
 0x3fd   : > { %v6457_v50 = vadd.f32 %v4909_v49, %v6435_v61  ;;  %v1376_v36 = vpop.f32.mrb[11].mxu1  ;;  %1412 = vmax.xlane.f32.xlu0 %v6453_v46 }
 0x3fe   : > { %v6465_v17 = vadd.f32 %v6435_v61, %v1376_v36 }
 0x3ff   : > { %1426 = vmax.xlane.f32.xlu1 %v6457_v50 }
 0x401   : > { %1424 = vmax.xlane.f32.xlu0 %v6461_v54 }
 0x402   : > { %v4912_v52 = vpop.f32.mrb[12].mxu1 }
 0x403   : > { %v1389_v57 = vpop.f32.mrb[13].mxu1  ;;  %1422 = vmax.xlane.f32.xlu1 %v6465_v17  ;;  %v6474_v40 = vadd.f32 %v4912_v52, %v6435_v61 }
 0x404   : > { %v4913_v58 = vpop.f32.mrb[14].mxu1  ;;  %v6478_v0 = vadd.f32 %v6435_v61, %v1389_v57 }
 0x405   : > { %v1392_v62 = vpop.f32.mrb[15].mxu1  ;;  %1420 = vmax.xlane.f32.xlu0 %v6469_v26  ;;  %v6486_v27 = vadd.f32 %v4913_v58, %v6435_v61 }
 0x406   : > { %v6490_v60 = vadd.f32 %v6435_v61, %v1392_v62 }
 0x409   : > { %1432 = vmax.xlane.f32.xlu0 %v6474_v40 }
 0x40d   : > { %1428 = vmax.xlane.f32.xlu0 %v6478_v0 }
 0x414   : > { %1715 = vrot.lane.b32.xlu1 %v6364_v32, %s5849_s24 }
 0x423   : > { %1713 = vrot.lane.b32.xlu0 %v6366_v42, %s5849_s24 }
 0x438   : > { %1434 = vmax.xlane.f32.xlu1 %v6486_v27 }
 0x43c   : > { %1430 = vmax.xlane.f32.xlu1 %v6490_v60 }
 0x47a   : > { %v1409_v39 = vpop.xlane.xlu0 %1408 }
 0x47b   : > { %v1438_v4 = vsub.f32 %v1350_v22, %v1409_v39 }
 0x47d   : > { %v1456_v44 = vmul.f32 1.442695, %v1438_v4  ;;  %v1407_v45 = vpop.xlane.xlu1 %1406 }
 0x47e   : > { %v1437_v5 = vsub.f32 %v1345_v25, %v1407_v45  ;;  %v1405_v8 = vpop.xlane.xlu0 %1404 }
 0x47f   : > { %5410 = vpow2.f32 %v1456_v44  ;;  %v1436_v9 = vsub.f32 %v1342_v28, %v1405_v8 }
 0x480   : > { %v1454_v33 = vmul.f32 1.442695, %v1437_v5 }
 0x481   : > { %v1452_v53 = vmul.f32 1.442695, %v1436_v9 }
 0x482   : > { %5412 = vpow2.f32 %v1454_v33  ;;  %v1411_v51 = vpop.xlane.xlu0 %1410 }
 0x483   : > { %5414 = vpow2.f32 %v1452_v53  ;;  %v1439_v10 = vsub.f32 %v1353_v30, %v1411_v51 }
 0x484   : > { %v1419_v19 = vpop.xlane.xlu1 %1418 }
 0x485   : > { %v1458_v11 = vmul.f32 1.442695, %v1439_v10  ;;  %v1443_v29 = vsub.f32 %v6442_v35, %v1419_v19 }
 0x486   : > { %v1417_v41 = vpop.xlane.xlu0 %1416 }
 0x487   : > { %5416 = vpow2.f32 %v1458_v11  ;;  %v1442_v63 = vsub.f32 %v6445_v7, %v1417_v41  ;;  %v1466_v38 = vmul.f32 1.442695, %v1443_v29 }
 0x488   : > { %v1415_v21 = vpop.xlane.xlu1 %1414 }
 0x489   : > { %v6495_v12 = vpop.eup %5410  ;;  %v1464_v23 = vmul.f32 1.442695, %v1442_v63  ;;  %v1441_v24 = vsub.f32 %v6449_v43, %v1415_v21 }
 0x48a   : > { %1488 = vadd.xlane.f32.xlu1 %v6495_v12  ;;  %v1413_v18 = vpop.xlane.xlu0 %1412 }
 0x48b   : > { %v1440_v47 = vsub.f32 %v6453_v46, %v1413_v18  ;;  %5418 = vpow2.f32 %v1464_v23  ;;  %v1462_v31 = vmul.f32 1.442695, %v1441_v24 }
 0x48c   : > { %v6498_v13 = vpop.eup %5412  ;;  %v1427_v25 = vpop.xlane.xlu1 %1426 }
 0x48d   : > { %v6500_v14 = vpop.eup %5414  ;;  %1486 = vadd.xlane.f32.xlu0 %v6498_v13  ;;  %v1460_v30 = vmul.f32 1.442695, %v1440_v47  ;;  %v1447_v35 = vsub.f32 %v6457_v50, %v1427_v25 }
 0x48e   : > { %1484 = vadd.xlane.f32.xlu1 %v6500_v14  ;;  %v1425_v20 = vpop.xlane.xlu0 %1424 }
 0x48f   : > { %v1446_v34 = vsub.f32 %v6461_v54, %v1425_v20  ;;  %5420 = vpow2.f32 %v1460_v30  ;;  %v1474_v62 = vmul.f32 1.442695, %v1447_v35 }
 0x490   : > { %v1423_v16 = vpop.xlane.xlu1 %1422  ;;  %5422 = vpow2.f32 %v1462_v31 }
 0x491   : > { %v6504_v37 = vpop.eup %5416  ;;  %v1472_v48 = vmul.f32 1.442695, %v1446_v34  ;;  %5424 = vpow2.f32 %v1466_v38  ;;  %v1750_v34 = vsel %vm1258_vm2, %v6413_v15, 0 }
 0x492   : > { %1490 = vadd.xlane.f32.xlu1 %v6504_v37  ;;  %v1421_v22 = vpop.xlane.xlu0 %1420 }
 0x493   : > { %v1444_v46 = vsub.f32 %v6469_v26, %v1421_v22  ;;  %5426 = vpow2.f32 %v1472_v48  ;;  %v1445_v26 = vsub.f32 %v6465_v17, %v1423_v16 }
 0x494   : > { %v6522_v54 = vpop.permute.xlu1 %1715 }
 0x495   : > { %v1468_v52 = vmul.f32 1.442695, %v1444_v46  ;;  %v6520_v57 = vpop.eup %5418  ;;  %v1470_v4 = vmul.f32 1.442695, %v1445_v26 }
 0x496   : > { %v1433_v28 = vpop.xlane.xlu0 %1432 }
 0x497   : > { %v1450_v7 = vsub.f32 %v6474_v40, %v1433_v28 }
 0x499   : > { %v1480_v43 = vmul.f32 1.442695, %v1450_v7  ;;  %v6526_v40 = vpop.eup %5420 }
 0x49a   : > { %v1429_v49 = vpop.xlane.xlu0 %1428 }
 0x49b   : > { %v1448_v36 = vsub.f32 %v6478_v0, %v1429_v49  ;;  %5428 = vpow2.f32 %v1480_v43  ;;  %v6528_v0 = vpop.eup %5422 }
 0x49c   : > { %5430 = vpow2.f32 %v1468_v52  ;;  %v6533_v45 = vpop.eup %5424 }
 0x49d   : > { %v1476_v58 = vmul.f32 1.442695, %v1448_v36  ;;  %v6535_v17 = vpop.eup %5426 }
 0x49e   : > { %v1714_v41 = vpop.permute.xlu0 %1713 }
 0x49f   : > { %5432 = vpow2.f32 %v1476_v58 }
 0x4a0   : > { %5434 = vpow2.f32 %v1474_v62 }
 0x4a3   : > { %1717 = vrot.lane.b32.xlu0 %v6374_v56, %s5849_s24  ;;  %1719 = vrot.lane.b32.xlu1 %v6372_v55, %s5849_s24 }
 0x4a5   : > { %v6540_v9 = vpop.eup %5428 }
 0x4a6   : > { %v6542_v33 = vpop.eup %5430 }
 0x4a9   : > { %v6546_v53 = vpop.eup %5432 }
 0x4aa   : > { %v6548_v51 = vpop.eup %5434 }
 0x4c2   : > { %1496 = vadd.xlane.f32.xlu0 %v6520_v57 }
 0x4c5   : > { %v1435_v39 = vpop.xlane.xlu1 %1434 }
 0x4c6   : > { %v1451_v50 = vsub.f32 %v6486_v27, %v1435_v39  ;;  %1492 = vadd.xlane.f32.xlu0 %v6526_v40 }
 0x4c7   : > { %1494 = vadd.xlane.f32.xlu1 %v6528_v0 }
 0x4c8   : > { %v1482_v44 = vmul.f32 1.442695, %v1451_v50 }
 0x4c9   : > { %v1431_v5 = vpop.xlane.xlu1 %1430 }
 0x4ca   : > { %5436 = vpow2.f32 %v1482_v44  ;;  %v1449_v8 = vsub.f32 %v6490_v60, %v1431_v5  ;;  %1498 = vadd.xlane.f32.xlu0 %v6533_v45 }
 0x4cb   : > { %1504 = vadd.xlane.f32.xlu1 %v6535_v17  ;;  %5438 = vpow2.f32 %v1470_v4 }
 0x4cc   : > { %v1478_v27 = vmul.f32 1.442695, %v1449_v8 }
 0x4ce   : > { %1512 = vadd.xlane.f32.xlu0 %v6540_v9  ;;  %5440 = vpow2.f32 %v1478_v27 }
 0x4cf   : > { %1500 = vadd.xlane.f32.xlu1 %v6542_v33 }
 0x4d2   : > { %1508 = vadd.xlane.f32.xlu0 %v6546_v53 }
 0x4d3   : > { %1506 = vadd.xlane.f32.xlu1 %v6548_v51 }
 0x4d4   : > { %v6552_v60 = vpop.eup %5436 }
 0x4d5   : > { %v6554_v10 = vpop.eup %5438 }
 0x4d6   : > { %1514 = vadd.xlane.f32.xlu0 %v6552_v60 }
 0x4d7   : > { %1502 = vadd.xlane.f32.xlu1 %v6554_v10 }
 0x4d8   : > { %v6558_v11 = vpop.eup %5440 }
 0x4db   : > { %1510 = vadd.xlane.f32.xlu1 %v6558_v11 }
 0x4ec   : > { %1723 = vrot.lane.b32.xlu1 %v6380_v1, %s5849_s24  ;;  %1721 = vrot.lane.b32.xlu0 %v6382_v2, %s5849_s24 }
 0x4f0   : > { %1695 = vrot.lane.b32.xlu1 %v6354_v6, %s5850_s26  ;;  %1693 = vrot.lane.b32.xlu0 %v6356_v59, %s5850_s26 }
 0x4f4   : > { %1699 = vrot.lane.b32.xlu1 %v6364_v32, %s5850_s26  ;;  %1697 = vrot.lane.b32.xlu0 %v6366_v42, %s5850_s26 }
 0x4f8   : > { %1703 = vrot.lane.b32.xlu1 %v6372_v55, %s5850_s26  ;;  %1701 = vrot.lane.b32.xlu0 %v6374_v56, %s5850_s26 }
 0x4fc   : > { %1707 = vrot.lane.b32.xlu1 %v6380_v1, %s5850_s26  ;;  %1705 = vrot.lane.b32.xlu0 %v6382_v2, %s5850_s26 }
 0x500   : > { %2024 = vrot.lane.b32.xlu1 %v6354_v6, %s5851_s0  ;;  %2022 = vrot.lane.b32.xlu0 %v6356_v59, %s5851_s0 }
 0x504   : > { %2028 = vrot.lane.b32.xlu1 %v6364_v32, %s5851_s0  ;;  %2026 = vrot.lane.b32.xlu0 %v6366_v42, %s5851_s0 }
 0x508   : > { %2032 = vrot.lane.b32.xlu1 %v6372_v55, %s5851_s0  ;;  %2030 = vrot.lane.b32.xlu0 %v6374_v56, %s5851_s0 }
 0x50c   : > { %2036 = vrot.lane.b32.xlu1 %v6380_v1, %s5851_s0  ;;  %2034 = vrot.lane.b32.xlu0 %v6382_v2, %s5851_s0  ;;  %s8004_s0 = scalar_lea.vmem %s7916_s9, %s6025_s21 }
 0x510   : > { %2210 = vrot.lane.b32.xlu1 %v6354_v6, %s5852_s5  ;;  %2208 = vrot.lane.b32.xlu0 %v6356_v59, %s5852_s5 }
 0x517   : > { %v1489_v18 = vpop.xlane.xlu1 %1488 }
 0x51a   : > { %v1487_v19 = vpop.xlane.xlu0 %1486 }
 0x51b   : > { %5442 = vrcp.f32 %v1487_v19  ;;  %v1485_v20 = vpop.xlane.xlu1 %1484 }
 0x51c   : > { %5444 = vrcp.f32 %v1485_v20 }
 0x51d   : > { %5446 = vrcp.f32 %v1489_v18 }
 0x51e   : > { %v1718_v15 = vpop.permute.xlu0 %1717 }
 0x51f   : > { %v1491_v63 = vpop.xlane.xlu1 %1490 }
 0x520   : > { %5448 = vrcp.f32 %v1491_v63 }
 0x525   : > { %v5443_v21 = vpop.eup %5442 }
 0x526   : > { %v5445_v22 = vpop.eup %5444  ;;  %v1533_v23 = vmul.f32 %v5443_v21, %v6498_v13  ;;  %v1753_v13 = vsel %vm1258_vm2, %v6493_v3, 0 }
 0x527   : > { %v1532_v47 = vmul.f32 %v5445_v22, %v6500_v14  ;;  %v5447_v24 = vpop.eup %5446  ;;  %v1759_v14 = vsel %vm1258_vm2, %v6522_v54, 0 }
 0x528   : > { %v1534_v29 = vmul.f32 %v5447_v24, %v6495_v12  ;;  %v1756_v12 = vsel %vm1258_vm2, %v1714_v41, 0 }
 0x529   : > { %v1548_v25 = vpack.c.bf16 %v1533_v23, %v1532_v47 }
 0x52a   : > { %v5449_v28 = vpop.eup %5448 }
 0x52b   : > { %v1535_v30 = vmul.f32 %v5449_v28, %v6504_v37  ;;  %4930 = vmatprep.mubr.bf16.mxu0 %v1548_v25  ;;  %v1762_v37 = vsel %vm1258_vm2, %v1718_v15, 0 }
 0x52d   : > { %v1549_v31 = vpack.c.bf16 %v1535_v30, %v1534_v29 }
 0x52f   : > { %4931 = vmatmul.mubr.bf16.vlgmr.msra.gmra.mrb[16].mxu0 %v1549_v31 }
 0x530   : > { %4947 = vmatpush3.bf16.xpose.msra.mxu0 %v1750_v34 }
 0x531   : > { %5252 = vmatprep.subr.msk.bf16.mxu0 %vm1258_vm2, %v6493_v3  ;;  %v1720_v3 = vpop.permute.xlu1 %1719 }
 0x532   : > { %v1765_v48 = vsel %vm1258_vm2, %v1720_v3, 0 }
 0x538   : > { %4949 = vmatpush3.bf16.xpose.msra.mxu0 %v1753_v13 }
 0x539   : > { %5253 = vmatprep.subr.msk.bf16.mxu0 %vm1258_vm2, %v1714_v41 }
 0x540   : > { %4951 = vmatpush3.bf16.xpose.msra.mxu0 %v1756_v12 }
 0x541   : > { %5254 = vmatprep.subr.msk.bf16.mxu0 %vm1258_vm2, %v6522_v54 }
 0x548   : > { %4953 = vmatpush3.bf16.xpose.msra.mxu0 %v1759_v14 }
 0x549   : > { %5255 = vmatprep.subr.msk.bf16.mxu0 %vm1258_vm2, %v1718_v15 }
 0x54f   : > { %v1497_v38 = vpop.xlane.xlu0 %1496 }
 0x550   : > { %4955 = vmatpush3.bf16.xpose.msra.mxu0 %v1762_v37 }
 0x551   : > { %5256 = vmatprep.subr.msk.bf16.mxu0 %vm1258_vm2, %v1720_v3 }
 0x553   : > { %v1493_v16 = vpop.xlane.xlu0 %1492 }
 0x554   : > { %5450 = vrcp.f32 %v1493_v16  ;;  %v1495_v7 = vpop.xlane.xlu1 %1494 }
 0x555   : > { %5452 = vrcp.f32 %v1495_v7 }
 0x556   : > { %5454 = vrcp.f32 %v1497_v38 }
 0x557   : > { %v1499_v46 = vpop.xlane.xlu0 %1498 }
 0x558   : > { %4957 = vmatpush3.bf16.xpose.msra.mxu0 %v1765_v48  ;;  %5456 = vrcp.f32 %v1499_v46  ;;  %v1505_v49 = vpop.xlane.xlu1 %1504 }
 0x55b   : > { %v1513_v43 = vpop.xlane.xlu0 %1512 }
 0x55c   : > { %v1501_v36 = vpop.xlane.xlu1 %1500 }
 0x55e   : > { %v5451_v35 = vpop.eup %5450 }
 0x55f   : > { %v5453_v52 = vpop.eup %5452  ;;  %v1509_v54 = vpop.xlane.xlu0 %1508  ;;  %v1536_v58 = vmul.f32 %v5451_v35, %v6526_v40 }
 0x560   : > { %v5455_v62 = vpop.eup %5454  ;;  %v1507_v26 = vpop.xlane.xlu1 %1506  ;;  %v1537_v39 = vmul.f32 %v5453_v52, %v6528_v0 }
 0x561   : > { %5458 = vrcp.f32 %v1507_v26  ;;  %v1538_v5 = vmul.f32 %v5455_v62, %v6520_v57 }
 0x562   : > { %v5457_v50 = vpop.eup %5456  ;;  %v1550_v4 = vpack.c.bf16 %v1537_v39, %v1536_v58  ;;  %5460 = vrcp.f32 %v1501_v36 }
 0x563   : > { %v1515_v44 = vpop.xlane.xlu0 %1514  ;;  %v1539_v8 = vmul.f32 %v5457_v50, %v6533_v45  ;;  %5462 = vrcp.f32 %v1505_v49 }
 0x564   : > { %v1503_v27 = vpop.xlane.xlu1 %1502  ;;  %4934 = vmatprep.mubr.bf16.mxu0 %v1550_v4 }
 0x565   : > { %5464 = vrcp.f32 %v1503_v27  ;;  %v1551_v41 = vpack.c.bf16 %v1539_v8, %v1538_v5 }
 0x566   : > { %5466 = vrcp.f32 %v1509_v54 }
 0x567   : > { %4935 = vmatmul.mubr.bf16.gmra.mrb[20].mxu0 %v1551_v41  ;;  %v1722_v40 = vpop.permute.xlu0 %1721 }
 0x568   : > { %v1511_v18 = vpop.xlane.xlu1 %1510  ;;  %5257 = vmatprep.subr.msk.bf16.mxu0 %vm1258_vm2, %v1722_v40  ;;  %v1768_v0 = vsel %vm1258_vm2, %v1722_v40, 0 }
 0x569   : > { %5468 = vrcp.f32 %v1511_v18  ;;  %4959 = vmatpush3.bf16.xpose.msra.mxu0 %v1768_v0 }
 0x56a   : > { %5470 = vrcp.f32 %v1515_v44 }
 0x56b   : > { %v1694_v19 = vpop.permute.xlu0 %1693  ;;  %v5459_v57 = vpop.eup %5458  ;;  %5472 = vrcp.f32 %v1513_v43 }
 0x56c   : > { %v1724_v45 = vpop.permute.xlu1 %1723  ;;  %v5461_v20 = vpop.eup %5460  ;;  %v1543_v23 = vmul.f32 %v5459_v57, %v6548_v51 }
 0x56d   : > { %5258 = vmatprep.subr.msk.bf16.mxu0 %vm1258_vm2, %v1724_v45  ;;  %v5463_v63 = vpop.eup %5462  ;;  %v1771_v24 = vsel %vm1258_vm2, %v1724_v45, 0  ;;  %v1540_v25 = vmul.f32 %v5461_v20, %v6542_v33 }
 0x56e   : > { %v1542_v30 = vmul.f32 %v5463_v63, %v6535_v17 }
 0x56f   : > { %v5465_v21 = vpop.eup %5464  ;;  %v1698_v22 = vpop.permute.xlu0 %1697 }
 0x570   : > { %v1696_v47 = vpop.permute.xlu1 %1695  ;;  %v1541_v28 = vmul.f32 %v5465_v21, %v6554_v10  ;;  %v5467_v29 = vpop.eup %5466  ;;  %v1553_v12 = vpack.c.bf16 %v1543_v23, %v1542_v30 }
 0x571   : > { %4961 = vmatpush3.bf16.xpose.msra.mxu0 %v1771_v24  ;;  %v1544_v51 = vmul.f32 %v5467_v29, %v6546_v53 }
 0x572   : > { %v1552_v31 = vpack.c.bf16 %v1541_v28, %v1540_v25 }
 0x573   : > { %v5469_v34 = vpop.eup %5468  ;;  %v1702_v13 = vpop.permute.xlu0 %1701 }
 0x574   : > { %v5471_v14 = vpop.eup %5470  ;;  %v1700_v15 = vpop.permute.xlu1 %1699  ;;  %4938 = vmatprep.mubr.bf16.mxu0 %v1552_v31  ;;  %v1545_v37 = vmul.f32 %v5469_v34, %v6558_v11 }
 0x575   : > { %4939 = vmatmul.mubr.bf16.gmra.mrb[24].mxu0 %v1553_v12  ;;  %v5473_v38 = vpop.eup %5472  ;;  %v1547_v10 = vmul.f32 %v5471_v14, %v6552_v60 }
 0x576   : > { %v1554_v33 = vpack.c.bf16 %v1545_v37, %v1544_v51  ;;  %v1546_v17 = vmul.f32 %v5473_v38, %v6540_v9 }
 0x577   : > { %v1706_v3 = vpop.permute.xlu0 %1705 }
 0x578   : > { %v1704_v16 = vpop.permute.xlu1 %1703  ;;  %4942 = vmatprep.mubr.bf16.mxu0 %v1554_v33  ;;  %v1555_v48 = vpack.c.bf16 %v1547_v10, %v1546_v17 }
 0x57b   : > { %v2023_v7 = vpop.permute.xlu0 %2022 }
 0x57c   : > { %v1708_v46 = vpop.permute.xlu1 %1707  ;;  %4978 = vmatprep.subr.bf16.mxu1 %v2023_v7 }
 0x57d   : > { %4943 = vmatmul.mubr.bf16.gmra.mrb[28].mxu0 %v1555_v48  ;;  %4979 = vmatpush3.bf16.msra.mxu1 %v2023_v7 }
 0x57e   : > { %4962 = vmatprep.mubr.msk.bf16.mxu0 %vm1258_vm2, %v1694_v19 }
 0x57f   : > { %v2027_v11 = vpop.permute.xlu0 %2026 }
 0x580   : > { %v2025_v53 = vpop.permute.xlu1 %2024 }
 0x581   : > { %4980 = vmatprep.subr.bf16.mxu1 %v2025_v53 }
 0x582   : > { %4981 = vmatpush3.bf16.msra.mxu1 %v2025_v53 }
 0x583   : > { %4982 = vmatprep.subr.bf16.mxu1 %v2027_v11  ;;  %v2031_v9 = vpop.permute.xlu0 %2030 }
 0x584   : > { %v2029_v60 = vpop.permute.xlu1 %2028 }
 0x585   : > { %4963 = vmatmul.mubr.msk.bf16.vlgmr.msra.gmra.mrb[32].mxu0 %vm1258_vm2, %v1696_v47 }
 0x586   : > { %4966 = vmatprep.mubr.msk.bf16.mxu0 %vm1258_vm2, %v1698_v22  ;;  %4983 = vmatpush3.bf16.msra.mxu1 %v2027_v11 }
 0x587   : > { %4984 = vmatprep.subr.bf16.mxu1 %v2029_v60  ;;  %v2035_v43 = vpop.permute.xlu0 %2034 }
 0x588   : > { %v2033_v49 = vpop.permute.xlu1 %2032 }
 0x58a   : > { %4985 = vmatpush3.bf16.msra.mxu1 %v2029_v60 }
 0x58b   : > { %4986 = vmatprep.subr.bf16.mxu1 %v2031_v9  ;;  %v6628_v35 = vpop.permute.xlu0 %2208 }
 0x58c   : > { %v2037_v36 = vpop.permute.xlu1 %2036 }
 0x58d   : > { %4967 = vmatmul.mubr.msk.bf16.gmra.mrb[36].mxu0 %vm1258_vm2, %v1700_v15 }
 0x58e   : > { %4970 = vmatprep.mubr.msk.bf16.mxu0 %vm1258_vm2, %v1702_v13  ;;  %4987 = vmatpush3.bf16.msra.mxu1 %v2031_v9 }
 0x58f   : > { %4988 = vmatprep.subr.bf16.mxu1 %v2033_v49 }
 0x592   : > { %4989 = vmatpush3.bf16.msra.mxu1 %v2033_v49 }
 0x593   : > { %4990 = vmatprep.subr.bf16.mxu1 %v2035_v43 }
 0x595   : > { %4971 = vmatmul.mubr.msk.bf16.gmra.mrb[40].mxu0 %vm1258_vm2, %v1704_v16 }
 0x596   : > { %4974 = vmatprep.mubr.msk.bf16.mxu0 %vm1258_vm2, %v1706_v3  ;;  %4991 = vmatpush3.bf16.msra.mxu1 %v2035_v43 }
 0x597   : > { %4992 = vmatprep.subr.bf16.mxu1 %v2037_v36 }
 0x59a   : > { %4993 = vmatpush3.bf16.msra.mxu1 %v2037_v36 }
 0x59b   : > { %5259 = vmatprep.subr.msk.bf16.mxu1 %vm1258_vm2, %v6628_v35 }
 0x59d   : > { %4975 = vmatmul.mubr.msk.bf16.gmra.mrb[44].mxu0 %vm1258_vm2, %v1708_v46 }
 0x602   : > { %v4932_v52 = vpop.f32.mrb[16].mxu0 }
 0x603   : > { %v1614_v54 = vpop.f32.mrb[17].mxu0 }
 0x604   : > { %v4933_v58 = vpop.f32.mrb[18].mxu0 }
 0x605   : > { %v1678_v62 = vpack.c.bf16 %v4933_v58, %v4932_v52  ;;  %v1617_v26 = vpop.f32.mrb[19].mxu0  ;;  %v6697_v58 = vpop.permute.xlu1 %2210 }
 0x606   : > { %v1677_v39 = vpack.c.bf16 %v1617_v26, %v1614_v54 }
 0x607   : > { %1686 = vst.msk [vmem:[#allocation3 + $0x8] sm:$0xff] %vm1258_vm2, %v1678_v62 }
 0x608   : > { %1685 = vst.msk [vmem:[#allocation3] sm:$0xff] %vm1258_vm2, %v1677_v39 }
 0x63a   : > { %v4936_v50 = vpop.f32.mrb[20].mxu0 }
 0x63b   : > { %v1630_v4 = vpop.f32.mrb[21].mxu0 }
 0x63c   : > { %v4937_v44 = vpop.f32.mrb[22].mxu0 }
 0x63d   : > { %v1680_v5 = vpack.c.bf16 %v4937_v44, %v4936_v50  ;;  %v1633_v8 = vpop.f32.mrb[23].mxu0 }
 0x63e   : > { %v1679_v27 = vpack.c.bf16 %v1633_v8, %v1630_v4 }
 0x63f   : > { %1688 = vst.msk [vmem:[#allocation3 + $0x18] sm:$0xff] %vm1258_vm2, %v1680_v5 }
 0x640   : > { %1687 = vst.msk [vmem:[#allocation3 + $0x10] sm:$0xff] %vm1258_vm2, %v1679_v27 }
 0x648   : > { %v4940_v41 = vpop.f32.mrb[24].mxu0 }
 0x649   : > { %v1646_v40 = vpop.f32.mrb[25].mxu0 }
 0x64a   : > { %v4941_v18 = vpop.f32.mrb[26].mxu0 }
 0x64b   : > { %v1682_v0 = vpack.c.bf16 %v4941_v18, %v4940_v41  ;;  %v1649_v19 = vpop.f32.mrb[27].mxu0 }
 0x64c   : > { %v1681_v57 = vpack.c.bf16 %v1649_v19, %v1646_v40 }
 0x64d   : > { %1690 = vst.msk [vmem:[#allocation3 + $0x28] sm:$0xff] %vm1258_vm2, %v1682_v0 }
 0x64e   : > { %1689 = vst.msk [vmem:[#allocation3 + $0x20] sm:$0xff] %vm1258_vm2, %v1681_v57 }
 0x650   : > { %v4944_v45 = vpop.f32.mrb[28].mxu0 }
 0x651   : > { %v1662_v20 = vpop.f32.mrb[29].mxu0 }
 0x652   : > { %v4945_v63 = vpop.f32.mrb[30].mxu0 }
 0x653   : > { %v1684_v21 = vpack.c.bf16 %v4945_v63, %v4944_v45  ;;  %v1665_v22 = vpop.f32.mrb[31].mxu0 }
 0x654   : > { %v1683_v23 = vpack.c.bf16 %v1665_v22, %v1662_v20 }
 0x655   : > { %1692 = vst.msk [vmem:[#allocation3 + $0x38] sm:$0xff] %vm1258_vm2, %v1684_v21 }
 0x656   : > { %1691 = vst.msk [vmem:[#allocation3 + $0x30] sm:$0xff] %vm1258_vm2, %v1683_v23 }
 0x658   : > { %v4964_v47 = vpop.f32.mrb[32].mxu0 }
 0x659   : > { %v1816_v24 = vadd.f32 %v4964_v47, %v6435_v61  ;;  %v1807_v25 = vpop.f32.mrb[33].mxu0 }
 0x65a   : > { %v4965_v28 = vpop.f32.mrb[34].mxu0  ;;  %v1808_v31 = vadd.f32 %v6435_v61, %v1807_v25 }
 0x65b   : > { %1874 = vmax.xlane.f32.xlu0 %v1816_v24  ;;  %v1810_v29 = vpop.f32.mrb[35].mxu0  ;;  %v1819_v13 = vadd.f32 %v4965_v28, %v6435_v61 }
 0x65c   : > { %v1811_v30 = vadd.f32 %v6435_v61, %v1810_v29 }
 0x65e   : > { %1872 = vmax.xlane.f32.xlu1 %v1811_v30 }
 0x65f   : > { %1870 = vmax.xlane.f32.xlu0 %v1808_v31 }
 0x660   : > { %v4968_v34 = vpop.f32.mrb[36].mxu0 }
 0x661   : > { %v1823_v12 = vpop.f32.mrb[37].mxu0  ;;  %v6649_v37 = vadd.f32 %v4968_v34, %v6435_v61 }
 0x662   : > { %v4969_v14 = vpop.f32.mrb[38].mxu0  ;;  %v6657_v3 = vadd.f32 %v6435_v61, %v1823_v12 }
 0x663   : > { %v6646_v15 = vadd.f32 %v4969_v14, %v6435_v61  ;;  %1876 = vmax.xlane.f32.xlu0 %v1819_v13  ;;  %v1826_v51 = vpop.f32.mrb[39].mxu0 }
 0x664   : > { %v6653_v38 = vadd.f32 %v6435_v61, %v1826_v51 }
 0x665   : > { %1884 = vmax.xlane.f32.xlu1 %v6646_v15 }
 0x667   : > { %1882 = vmax.xlane.f32.xlu0 %v6649_v37 }
 0x668   : > { %v4972_v33 = vpop.f32.mrb[40].mxu0 }
 0x669   : > { %1880 = vmax.xlane.f32.xlu1 %v6653_v38  ;;  %v1839_v10 = vpop.f32.mrb[41].mxu0  ;;  %v6665_v48 = vadd.f32 %v4972_v33, %v6435_v61 }
 0x66a   : > { %v4973_v16 = vpop.f32.mrb[42].mxu0  ;;  %v6673_v11 = vadd.f32 %v6435_v61, %v1839_v10 }
 0x66b   : > { %v6661_v17 = vadd.f32 %v4973_v16, %v6435_v61  ;;  %1878 = vmax.xlane.f32.xlu0 %v6657_v3  ;;  %v1842_v7 = vpop.f32.mrb[43].mxu0 }
 0x66c   : > { %v6669_v46 = vadd.f32 %v6435_v61, %v1842_v7 }
 0x66d   : > { %1892 = vmax.xlane.f32.xlu1 %v6661_v17 }
 0x66f   : > { %1890 = vmax.xlane.f32.xlu0 %v6665_v48 }
 0x670   : > { %v4976_v53 = vpop.f32.mrb[44].mxu0 }
 0x671   : > { %1888 = vmax.xlane.f32.xlu1 %v6669_v46  ;;  %v1855_v60 = vpop.f32.mrb[45].mxu0  ;;  %v6678_v43 = vadd.f32 %v4976_v53, %v6435_v61 }
 0x672   : > { %v4977_v9 = vpop.f32.mrb[46].mxu0  ;;  %v6682_v36 = vadd.f32 %v6435_v61, %v1855_v60 }
 0x673   : > { %1886 = vmax.xlane.f32.xlu0 %v6673_v11  ;;  %v1858_v49 = vpop.f32.mrb[47].mxu0  ;;  %v6690_v52 = vadd.f32 %v4977_v9, %v6435_v61 }
 0x674   : > { %v6694_v54 = vadd.f32 %v6435_v61, %v1858_v49 }
 0x677   : > { %1898 = vmax.xlane.f32.xlu0 %v6678_v43 }
 0x67b   : > { %1894 = vmax.xlane.f32.xlu0 %v6682_v36 }
 0x682   : > { %2214 = vrot.lane.b32.xlu1 %v6364_v32, %s5852_s5 }
 0x691   : > { %2212 = vrot.lane.b32.xlu0 %v6366_v42, %s5852_s5 }
 0x6a6   : > { %1900 = vmax.xlane.f32.xlu1 %v6690_v52 }
 0x6aa   : > { %1896 = vmax.xlane.f32.xlu1 %v6694_v54 }
 0x6e8   : > { %v1875_v62 = vpop.xlane.xlu0 %1874 }
 0x6e9   : > { %v1904_v26 = vsub.f32 %v1816_v24, %v1875_v62 }
 0x6eb   : > { %v1922_v39 = vmul.f32 1.442695, %v1904_v26  ;;  %v1873_v50 = vpop.xlane.xlu1 %1872 }
 0x6ec   : > { %v1903_v4 = vsub.f32 %v1811_v30, %v1873_v50  ;;  %v1871_v44 = vpop.xlane.xlu0 %1870 }
 0x6ed   : > { %5474 = vpow2.f32 %v1922_v39  ;;  %v1902_v5 = vsub.f32 %v1808_v31, %v1871_v44 }
 0x6ee   : > { %v1920_v8 = vmul.f32 1.442695, %v1903_v4 }
 0x6ef   : > { %v1918_v27 = vmul.f32 1.442695, %v1902_v5 }
 0x6f0   : > { %5476 = vpow2.f32 %v1920_v8  ;;  %v1877_v41 = vpop.xlane.xlu0 %1876 }
 0x6f1   : > { %5478 = vpow2.f32 %v1918_v27  ;;  %v1905_v40 = vsub.f32 %v1819_v13, %v1877_v41 }
 0x6f2   : > { %v1885_v63 = vpop.xlane.xlu1 %1884 }
 0x6f3   : > { %v1924_v61 = vmul.f32 1.442695, %v1905_v40  ;;  %v1909_v31 = vsub.f32 %v6646_v15, %v1885_v63 }
 0x6f4   : > { %v1883_v45 = vpop.xlane.xlu0 %1882 }
 0x6f5   : > { %5480 = vpow2.f32 %v1924_v61  ;;  %v1908_v22 = vsub.f32 %v6649_v37, %v1883_v45  ;;  %v1932_v14 = vmul.f32 1.442695, %v1909_v31 }
 0x6f6   : > { %v1881_v23 = vpop.xlane.xlu1 %1880 }
 0x6f7   : > { %v6699_v18 = vpop.eup %5474  ;;  %v1930_v24 = vmul.f32 1.442695, %v1908_v22  ;;  %v1907_v28 = vsub.f32 %v6653_v38, %v1881_v23 }
 0x6f8   : > { %1954 = vadd.xlane.f32.xlu1 %v6699_v18  ;;  %v1879_v20 = vpop.xlane.xlu0 %1878 }
 0x6f9   : > { %v1906_v25 = vsub.f32 %v6657_v3, %v1879_v20  ;;  %5482 = vpow2.f32 %v1930_v24  ;;  %v1928_v13 = vmul.f32 1.442695, %v1907_v28 }
 0x6fa   : > { %v6702_v0 = vpop.eup %5476  ;;  %v1893_v29 = vpop.xlane.xlu1 %1892 }
 0x6fb   : > { %v6704_v19 = vpop.eup %5478  ;;  %1952 = vadd.xlane.f32.xlu0 %v6702_v0  ;;  %v1926_v34 = vmul.f32 1.442695, %v1906_v25  ;;  %v1913_v15 = vsub.f32 %v6661_v17, %v1893_v29 }
 0x6fc   : > { %1950 = vadd.xlane.f32.xlu1 %v6704_v19  ;;  %v1891_v21 = vpop.xlane.xlu0 %1890 }
 0x6fd   : > { %v1912_v12 = vsub.f32 %v6665_v48, %v1891_v21  ;;  %5484 = vpow2.f32 %v1926_v34  ;;  %v1940_v9 = vmul.f32 1.442695, %v1913_v15 }
 0x6fe   : > { %v1889_v51 = vpop.xlane.xlu1 %1888  ;;  %5486 = vpow2.f32 %v1928_v13  ;;  %v2249_v13 = vsel %vm1258_vm2, %v6628_v35, 0 }
 0x6ff   : > { %v6708_v57 = vpop.eup %5480  ;;  %v1938_v33 = vmul.f32 1.442695, %v1912_v12  ;;  %5488 = vpow2.f32 %v1932_v14 }
 0x700   : > { %1956 = vadd.xlane.f32.xlu1 %v6708_v57  ;;  %v1887_v47 = vpop.xlane.xlu0 %1886 }
 0x701   : > { %v1910_v3 = vsub.f32 %v6673_v11, %v1887_v47  ;;  %5490 = vpow2.f32 %v1938_v33  ;;  %v1911_v11 = vsub.f32 %v6669_v46, %v1889_v51 }
 0x702   : > { %v6726_v48 = vpop.permute.xlu1 %2214 }
 0x703   : > { %v1934_v7 = vmul.f32 1.442695, %v1910_v3  ;;  %v6724_v53 = vpop.eup %5482  ;;  %v1936_v62 = vmul.f32 1.442695, %v1911_v11 }
 0x704   : > { %v1899_v30 = vpop.xlane.xlu0 %1898 }
 0x705   : > { %v1916_v37 = vsub.f32 %v6678_v43, %v1899_v30 }
 0x707   : > { %v1946_v38 = vmul.f32 1.442695, %v1916_v37  ;;  %v6730_v49 = vpop.eup %5484 }
 0x708   : > { %v1895_v10 = vpop.xlane.xlu0 %1894 }
 0x709   : > { %v1914_v16 = vsub.f32 %v6682_v36, %v1895_v10  ;;  %5492 = vpow2.f32 %v1946_v38  ;;  %v6732_v36 = vpop.eup %5486 }
 0x70a   : > { %5494 = vpow2.f32 %v1934_v7  ;;  %v6737_v39 = vpop.eup %5488 }
 0x70b   : > { %v1942_v60 = vmul.f32 1.442695, %v1914_v16  ;;  %v6739_v46 = vpop.eup %5490 }
 0x70c   : > { %v2213_v61 = vpop.permute.xlu0 %2212 }
 0x70d   : > { %5496 = vpow2.f32 %v1942_v60 }
 0x70e   : > { %5498 = vpow2.f32 %v1940_v9 }
 0x711   : > { %2216 = vrot.lane.b32.xlu0 %v6374_v56, %s5852_s5  ;;  %2218 = vrot.lane.b32.xlu1 %v6372_v55, %s5852_s5 }
 0x713   : > { %v6744_v44 = vpop.eup %5492 }
 0x714   : > { %v6746_v5 = vpop.eup %5494 }
 0x717   : > { %v6750_v8 = vpop.eup %5496 }
 0x718   : > { %v6752_v27 = vpop.eup %5498 }
 0x730   : > { %1962 = vadd.xlane.f32.xlu0 %v6724_v53 }
 0x733   : > { %v1901_v43 = vpop.xlane.xlu1 %1900 }
 0x734   : > { %v1917_v17 = vsub.f32 %v6690_v52, %v1901_v43  ;;  %1958 = vadd.xlane.f32.xlu0 %v6730_v49 }
 0x735   : > { %1960 = vadd.xlane.f32.xlu1 %v6732_v36 }
 0x736   : > { %v1948_v26 = vmul.f32 1.442695, %v1917_v17 }
 0x737   : > { %v1897_v50 = vpop.xlane.xlu1 %1896 }
 0x738   : > { %5500 = vpow2.f32 %v1948_v26  ;;  %v1915_v4 = vsub.f32 %v6694_v54, %v1897_v50  ;;  %1964 = vadd.xlane.f32.xlu0 %v6737_v39 }
 0x739   : > { %1970 = vadd.xlane.f32.xlu1 %v6739_v46  ;;  %5502 = vpow2.f32 %v1936_v62 }
 0x73a   : > { %v1944_v52 = vmul.f32 1.442695, %v1915_v4 }
 0x73c   : > { %1978 = vadd.xlane.f32.xlu0 %v6744_v44  ;;  %5504 = vpow2.f32 %v1944_v52 }
 0x73d   : > { %1966 = vadd.xlane.f32.xlu1 %v6746_v5 }
 0x740   : > { %1974 = vadd.xlane.f32.xlu0 %v6750_v8 }
 0x741   : > { %1972 = vadd.xlane.f32.xlu1 %v6752_v27 }
 0x742   : > { %v6756_v54 = vpop.eup %5500 }
 0x743   : > { %v6758_v41 = vpop.eup %5502 }
 0x744   : > { %1980 = vadd.xlane.f32.xlu0 %v6756_v54 }
 0x745   : > { %1968 = vadd.xlane.f32.xlu1 %v6758_v41 }
 0x746   : > { %v6762_v40 = vpop.eup %5504 }
 0x749   : > { %1976 = vadd.xlane.f32.xlu1 %v6762_v40 }
 0x75a   : > { %2222 = vrot.lane.b32.xlu1 %v6380_v1, %s5852_s5  ;;  %2220 = vrot.lane.b32.xlu0 %v6382_v2, %s5852_s5 }
 0x75e   : > { %2194 = vrot.lane.b32.xlu1 %v6354_v6, %s5853_s3  ;;  %2192 = vrot.lane.b32.xlu0 %v6356_v59, %s5853_s3 }
 0x762   : > { %2198 = vrot.lane.b32.xlu1 %v6364_v32, %s5853_s3  ;;  %2196 = vrot.lane.b32.xlu0 %v6366_v42, %s5853_s3 }
 0x766   : > { %2202 = vrot.lane.b32.xlu1 %v6372_v55, %s5853_s3  ;;  %2200 = vrot.lane.b32.xlu0 %v6374_v56, %s5853_s3 }
 0x76a   : > { %2206 = vrot.lane.b32.xlu1 %v6380_v1, %s5853_s3  ;;  %2204 = vrot.lane.b32.xlu0 %v6382_v2, %s5853_s3 }
 0x76e   : > { %2523 = vrot.lane.b32.xlu1 %v6354_v6, %s5854_s25  ;;  %2521 = vrot.lane.b32.xlu0 %v6356_v59, %s5854_s25 }
 0x772   : > { %2527 = vrot.lane.b32.xlu1 %v6364_v32, %s5854_s25  ;;  %2525 = vrot.lane.b32.xlu0 %v6366_v42, %s5854_s25 }
 0x776   : > { %2531 = vrot.lane.b32.xlu1 %v6372_v55, %s5854_s25  ;;  %2529 = vrot.lane.b32.xlu0 %v6374_v56, %s5854_s25 }
 0x77a   : > { %2535 = vrot.lane.b32.xlu1 %v6380_v1, %s5854_s25  ;;  %2533 = vrot.lane.b32.xlu0 %v6382_v2, %s5854_s25  ;;  %s8005_s25 = scalar_lea.vmem %s7917_s10, %s6025_s21 }
 0x77e   : > { %2709 = vrot.lane.b32.xlu1 %v6354_v6, %s5855_s19  ;;  %2707 = vrot.lane.b32.xlu0 %v6356_v59, %s5855_s19 }
 0x785   : > { %v1955_v45 = vpop.xlane.xlu1 %1954 }
 0x788   : > { %v1953_v20 = vpop.xlane.xlu0 %1952 }
 0x789   : > { %5506 = vrcp.f32 %v1953_v20  ;;  %v1951_v63 = vpop.xlane.xlu1 %1950 }
 0x78a   : > { %5508 = vrcp.f32 %v1951_v63 }
 0x78b   : > { %5510 = vrcp.f32 %v1955_v45 }
 0x78c   : > { %v2217_v35 = vpop.permute.xlu0 %2216 }
 0x78d   : > { %v1957_v21 = vpop.xlane.xlu1 %1956 }
 0x78e   : > { %5512 = vrcp.f32 %v1957_v21 }
 0x793   : > { %v5507_v22 = vpop.eup %5506 }
 0x794   : > { %v5509_v23 = vpop.eup %5508  ;;  %v1999_v47 = vmul.f32 %v5507_v22, %v6702_v0  ;;  %v2252_v0 = vsel %vm1258_vm2, %v6697_v58, 0 }
 0x795   : > { %v1998_v24 = vmul.f32 %v5509_v23, %v6704_v19  ;;  %v5511_v25 = vpop.eup %5510  ;;  %v2258_v19 = vsel %vm1258_vm2, %v6726_v48, 0 }
 0x796   : > { %v2000_v30 = vmul.f32 %v5511_v25, %v6699_v18  ;;  %v2255_v18 = vsel %vm1258_vm2, %v2213_v61, 0 }
 0x797   : > { %v2014_v28 = vpack.c.bf16 %v1999_v47, %v1998_v24 }
 0x798   : > { %v5513_v29 = vpop.eup %5512 }
 0x799   : > { %v2001_v31 = vmul.f32 %v5513_v29, %v6708_v57  ;;  %4994 = vmatprep.mubr.bf16.mxu1 %v2014_v28  ;;  %v2261_v57 = vsel %vm1258_vm2, %v2217_v35, 0 }
 0x79b   : > { %v2015_v34 = vpack.c.bf16 %v2001_v31, %v2000_v30 }
 0x79d   : > { %4995 = vmatmul.mubr.bf16.vlgmr.msra.gmra.mrb[16].mxu1 %v2015_v34 }
 0x79e   : > { %5011 = vmatpush3.bf16.xpose.msra.mxu1 %v2249_v13 }
 0x79f   : > { %5260 = vmatprep.subr.msk.bf16.mxu1 %vm1258_vm2, %v6697_v58  ;;  %v2219_v58 = vpop.permute.xlu1 %2218 }
 0x7a0   : > { %v2264_v37 = vsel %vm1258_vm2, %v2219_v58, 0 }
 0x7a6   : > { %5013 = vmatpush3.bf16.xpose.msra.mxu1 %v2252_v0 }
 0x7a7   : > { %5261 = vmatprep.subr.msk.bf16.mxu1 %vm1258_vm2, %v2213_v61 }
 0x7ae   : > { %5015 = vmatpush3.bf16.xpose.msra.mxu1 %v2255_v18 }
 0x7af   : > { %5262 = vmatprep.subr.msk.bf16.mxu1 %vm1258_vm2, %v6726_v48 }
 0x7b6   : > { %5017 = vmatpush3.bf16.xpose.msra.mxu1 %v2258_v19 }
 0x7b7   : > { %5263 = vmatprep.subr.msk.bf16.mxu1 %vm1258_vm2, %v2217_v35 }
 0x7bd   : > { %v1963_v12 = vpop.xlane.xlu0 %1962 }
 0x7be   : > { %5019 = vmatpush3.bf16.xpose.msra.mxu1 %v2261_v57 }
 0x7bf   : > { %5264 = vmatprep.subr.msk.bf16.mxu1 %vm1258_vm2, %v2219_v58 }
 0x7c1   : > { %v1959_v14 = vpop.xlane.xlu0 %1958 }
 0x7c2   : > { %5514 = vrcp.f32 %v1959_v14  ;;  %v1961_v51 = vpop.xlane.xlu1 %1960 }
 0x7c3   : > { %5516 = vrcp.f32 %v1961_v51 }
 0x7c4   : > { %5518 = vrcp.f32 %v1963_v12 }
 0x7c5   : > { %v1965_v33 = vpop.xlane.xlu0 %1964 }
 0x7c6   : > { %5021 = vmatpush3.bf16.xpose.msra.mxu1 %v2264_v37  ;;  %5520 = vrcp.f32 %v1965_v33  ;;  %v1971_v3 = vpop.xlane.xlu1 %1970 }
 0x7c9   : > { %v1979_v10 = vpop.xlane.xlu0 %1978 }
 0x7ca   : > { %v1967_v38 = vpop.xlane.xlu1 %1966 }
 0x7cc   : > { %v5515_v16 = vpop.eup %5514 }
 0x7cd   : > { %v5517_v15 = vpop.eup %5516  ;;  %v1975_v7 = vpop.xlane.xlu0 %1974  ;;  %v2002_v48 = vmul.f32 %v5515_v16, %v6730_v49 }
 0x7ce   : > { %v5519_v60 = vpop.eup %5518  ;;  %v1973_v9 = vpop.xlane.xlu1 %1972  ;;  %v2003_v11 = vmul.f32 %v5517_v15, %v6732_v36 }
 0x7cf   : > { %5522 = vrcp.f32 %v1973_v9  ;;  %v2004_v26 = vmul.f32 %v5519_v60, %v6724_v53 }
 0x7d0   : > { %v5521_v43 = vpop.eup %5520  ;;  %v2016_v17 = vpack.c.bf16 %v2003_v11, %v2002_v48  ;;  %5524 = vrcp.f32 %v1967_v38 }
 0x7d1   : > { %v1981_v62 = vpop.xlane.xlu0 %1980  ;;  %v2005_v50 = vmul.f32 %v5521_v43, %v6737_v39  ;;  %5526 = vrcp.f32 %v1971_v3 }
 0x7d2   : > { %v1969_v4 = vpop.xlane.xlu1 %1968  ;;  %4998 = vmatprep.mubr.bf16.mxu1 %v2016_v17 }
 0x7d3   : > { %5528 = vrcp.f32 %v1969_v4  ;;  %v2017_v52 = vpack.c.bf16 %v2005_v50, %v2004_v26 }
 0x7d4   : > { %5530 = vrcp.f32 %v1975_v7 }
 0x7d5   : > { %4999 = vmatmul.mubr.bf16.gmra.mrb[20].mxu1 %v2017_v52  ;;  %v2221_v49 = vpop.permute.xlu0 %2220 }
 0x7d6   : > { %v1977_v61 = vpop.xlane.xlu1 %1976  ;;  %5265 = vmatprep.subr.msk.bf16.mxu1 %vm1258_vm2, %v2221_v49  ;;  %v2267_v36 = vsel %vm1258_vm2, %v2221_v49, 0 }
 0x7d7   : > { %5532 = vrcp.f32 %v1977_v61  ;;  %5023 = vmatpush3.bf16.xpose.msra.mxu1 %v2267_v36 }
 0x7d8   : > { %5534 = vrcp.f32 %v1981_v62 }
 0x7d9   : > { %v2193_v45 = vpop.permute.xlu0 %2192  ;;  %v5523_v53 = vpop.eup %5522  ;;  %5536 = vrcp.f32 %v1979_v10 }
 0x7da   : > { %v2223_v39 = vpop.permute.xlu1 %2222  ;;  %v5525_v20 = vpop.eup %5524  ;;  %v2009_v23 = vmul.f32 %v5523_v53, %v6752_v27 }
 0x7db   : > { %5266 = vmatprep.subr.msk.bf16.mxu1 %vm1258_vm2, %v2223_v39  ;;  %v5527_v63 = vpop.eup %5526  ;;  %v2270_v24 = vsel %vm1258_vm2, %v2223_v39, 0  ;;  %v2006_v25 = vmul.f32 %v5525_v20, %v6746_v5 }
 0x7dc   : > { %v2008_v30 = vmul.f32 %v5527_v63, %v6739_v46 }
 0x7dd   : > { %v5529_v21 = vpop.eup %5528  ;;  %v2197_v22 = vpop.permute.xlu0 %2196 }
 0x7de   : > { %v2195_v47 = vpop.permute.xlu1 %2194  ;;  %v2007_v28 = vmul.f32 %v5529_v21, %v6758_v41  ;;  %v5531_v29 = vpop.eup %5530  ;;  %v2019_v0 = vpack.c.bf16 %v2009_v23, %v2008_v30 }
 0x7df   : > { %5025 = vmatpush3.bf16.xpose.msra.mxu1 %v2270_v24  ;;  %v2010_v27 = vmul.f32 %v5531_v29, %v6750_v8 }
 0x7e0   : > { %v2018_v31 = vpack.c.bf16 %v2007_v28, %v2006_v25 }
 0x7e1   : > { %v5533_v34 = vpop.eup %5532  ;;  %v2201_v13 = vpop.permute.xlu0 %2200 }
 0x7e2   : > { %v5535_v18 = vpop.eup %5534  ;;  %v2199_v19 = vpop.permute.xlu1 %2198  ;;  %5002 = vmatprep.mubr.bf16.mxu1 %v2018_v31  ;;  %v2011_v35 = vmul.f32 %v5533_v34, %v6762_v40 }
 0x7e3   : > { %5003 = vmatmul.mubr.bf16.gmra.mrb[24].mxu1 %v2019_v0  ;;  %v5537_v57 = vpop.eup %5536  ;;  %v2013_v41 = vmul.f32 %v5535_v18, %v6756_v54 }
 0x7e4   : > { %v2020_v5 = vpack.c.bf16 %v2011_v35, %v2010_v27  ;;  %v2012_v46 = vmul.f32 %v5537_v57, %v6744_v44 }
 0x7e5   : > { %v2205_v12 = vpop.permute.xlu0 %2204 }
 0x7e6   : > { %v2203_v58 = vpop.permute.xlu1 %2202  ;;  %5006 = vmatprep.mubr.bf16.mxu1 %v2020_v5  ;;  %v2021_v51 = vpack.c.bf16 %v2013_v41, %v2012_v46 }
 0x7e9   : > { %v2522_v14 = vpop.permute.xlu0 %2521 }
 0x7ea   : > { %v2207_v37 = vpop.permute.xlu1 %2206  ;;  %5042 = vmatprep.subr.bf16.mxu0 %v2522_v14 }
 0x7eb   : > { %5007 = vmatmul.mubr.bf16.gmra.mrb[28].mxu1 %v2021_v51  ;;  %5043 = vmatpush3.bf16.msra.mxu0 %v2522_v14 }
 0x7ec   : > { %5026 = vmatprep.mubr.msk.bf16.mxu1 %vm1258_vm2, %v2193_v45 }
 0x7ed   : > { %v2526_v40 = vpop.permute.xlu0 %2525 }
 0x7ee   : > { %v2524_v8 = vpop.permute.xlu1 %2523 }
 0x7ef   : > { %5044 = vmatprep.subr.bf16.mxu0 %v2524_v8 }
 0x7f0   : > { %5045 = vmatpush3.bf16.msra.mxu0 %v2524_v8 }
 0x7f1   : > { %5046 = vmatprep.subr.bf16.mxu0 %v2526_v40  ;;  %v2530_v44 = vpop.permute.xlu0 %2529 }
 0x7f2   : > { %v2528_v54 = vpop.permute.xlu1 %2527 }
 0x7f3   : > { %5027 = vmatmul.mubr.msk.bf16.vlgmr.msra.gmra.mrb[32].mxu1 %vm1258_vm2, %v2195_v47  ;;  %v6886_v47 = vld [vmem:[%s7979_s17] ss:$0 sm:$0xff]  ;;  %s8003_s17 = scalar_lea.vmem %s7913_s6, %s6025_s21  ;;  %s8007_s21 = sld [smem:[#allocation9_spill]] }
 0x7f4   : > { %5030 = vmatprep.mubr.msk.bf16.mxu1 %vm1258_vm2, %v2197_v22  ;;  %5047 = vmatpush3.bf16.msra.mxu0 %v2526_v40 }
 0x7f5   : > { %5048 = vmatprep.subr.bf16.mxu0 %v2528_v54  ;;  %v2534_v3 = vpop.permute.xlu0 %2533 }
 0x7f6   : > { %v2532_v33 = vpop.permute.xlu1 %2531 }
 0x7f8   : > { %5049 = vmatpush3.bf16.msra.mxu0 %v2528_v54 }
 0x7f9   : > { %5050 = vmatprep.subr.bf16.mxu0 %v2530_v44  ;;  %v6832_v38 = vpop.permute.xlu0 %2707  ;;  %p4672_p1 = scmp.ne.s32.totalorder %s8007_s21, 1 }
 0x7fa   : > { %v2536_v10 = vpop.permute.xlu1 %2535  ;;  %vm5863_vm6 = vmmov (!%p4672_p1), 0   ;;  %vm4347_vm7 = vcmask (!%p4672_p1), 122880  }
 0x7fb   : > { %5031 = vmatmul.mubr.msk.bf16.gmra.mrb[36].mxu1 %vm1258_vm2, %v2199_v19 }
 0x7fc   : > { %5034 = vmatprep.mubr.msk.bf16.mxu1 %vm1258_vm2, %v2201_v13  ;;  %5051 = vmatpush3.bf16.msra.mxu0 %v2530_v44 }
 0x7fd   : > { %5052 = vmatprep.subr.bf16.mxu0 %v2532_v33 }
 0x800   : > { %5053 = vmatpush3.bf16.msra.mxu0 %v2532_v33 }
 0x801   : > { %5054 = vmatprep.subr.bf16.mxu0 %v2534_v3 }
 0x803   : > { %5035 = vmatmul.mubr.msk.bf16.gmra.mrb[40].mxu1 %vm1258_vm2, %v2203_v58 }
 0x804   : > { %5038 = vmatprep.mubr.msk.bf16.mxu1 %vm1258_vm2, %v2205_v12  ;;  %5055 = vmatpush3.bf16.msra.mxu0 %v2534_v3 }
 0x805   : > { %5056 = vmatprep.subr.bf16.mxu0 %v2536_v10 }
 0x808   : > { %5057 = vmatpush3.bf16.msra.mxu0 %v2536_v10 }
 0x809   : > { %5267 = vmatprep.subr.msk.bf16.mxu0 %vm1258_vm2, %v6832_v38 }
 0x80b   : > { %5039 = vmatmul.mubr.msk.bf16.gmra.mrb[44].mxu1 %vm1258_vm2, %v2207_v37 }
 0x870   : > { %v6837_v16 = vpop.f32.mrb[16].mxu1 }
 0x871   : > { %v6839_v15 = vpop.f32.mrb[17].mxu1 }
 0x872   : > { %v6841_v7 = vpop.f32.mrb[18].mxu1 }
 0x873   : > { %v6845_v60 = vpop.f32.mrb[19].mxu1 }
 0x8a8   : > { %v6849_v11 = vpop.f32.mrb[20].mxu1 }
 0x8a9   : > { %v6851_v43 = vpop.f32.mrb[21].mxu1 }
 0x8aa   : > { %v6853_v17 = vpop.f32.mrb[22].mxu1 }
 0x8ab   : > { %v6857_v26 = vpop.f32.mrb[23].mxu1 }
 0x8b6   : > { %v6861_v4 = vpop.f32.mrb[24].mxu1 }
 0x8b7   : > { %v6863_v52 = vpop.f32.mrb[25].mxu1 }
 0x8b8   : > { %v6865_v49 = vpop.f32.mrb[26].mxu1 }
 0x8b9   : > { %v6869_v36 = vpop.f32.mrb[27].mxu1 }
 0x8be   : > { %v6873_v53 = vpop.f32.mrb[28].mxu1 }
 0x8bf   : > { %v6875_v39 = vpop.f32.mrb[29].mxu1 }
 0x8c0   : > { %v6877_v20 = vpop.f32.mrb[30].mxu1 }
 0x8c1   : > { %v6881_v21 = vpop.f32.mrb[31].mxu1 }
 0x8c6   : > { %v5028_v23 = vpop.f32.mrb[32].mxu1 }
 0x8c7   : > { %v2315_v24 = vadd.f32 %v6886_v47, %v5028_v23  ;;  %v2306_v25 = vpop.f32.mrb[33].mxu1 }
 0x8c8   : > { %v5029_v28 = vpop.f32.mrb[34].mxu1  ;;  %v2307_v31 = vadd.f32 %v6886_v47, %v2306_v25 }
 0x8c9   : > { %2373 = vmax.xlane.f32.xlu0 %v2315_v24  ;;  %v2309_v29 = vpop.f32.mrb[35].mxu1  ;;  %v2318_v13 = vadd.f32 %v6886_v47, %v5029_v28  ;;  %v6944_v28 = vpop.permute.xlu1 %2709 }
 0x8ca   : > { %v2310_v30 = vadd.f32 %v6886_v47, %v2309_v29 }
 0x8cc   : > { %2371 = vmax.xlane.f32.xlu1 %v2310_v30 }
 0x8cd   : > { %2369 = vmax.xlane.f32.xlu0 %v2307_v31 }
 0x8ce   : > { %v5032_v34 = vpop.f32.mrb[36].mxu1 }
 0x8cf   : > { %v2322_v0 = vpop.f32.mrb[37].mxu1  ;;  %v6896_v35 = vadd.f32 %v6886_v47, %v5032_v34 }
 0x8d0   : > { %v5033_v18 = vpop.f32.mrb[38].mxu1  ;;  %v6904_v12 = vadd.f32 %v6886_v47, %v2322_v0 }
 0x8d1   : > { %v6893_v19 = vadd.f32 %v6886_v47, %v5033_v18  ;;  %2375 = vmax.xlane.f32.xlu0 %v2318_v13  ;;  %v2325_v27 = vpop.f32.mrb[39].mxu1 }
 0x8d2   : > { %v6900_v57 = vadd.f32 %v6886_v47, %v2325_v27 }
 0x8d3   : > { %2383 = vmax.xlane.f32.xlu1 %v6893_v19 }
 0x8d5   : > { %2381 = vmax.xlane.f32.xlu0 %v6896_v35 }
 0x8d6   : > { %v5036_v5 = vpop.f32.mrb[40].mxu1 }
 0x8d7   : > { %2379 = vmax.xlane.f32.xlu1 %v6900_v57  ;;  %v2338_v41 = vpop.f32.mrb[41].mxu1  ;;  %v6912_v51 = vadd.f32 %v6886_v47, %v5036_v5 }
 0x8d8   : > { %v5037_v58 = vpop.f32.mrb[42].mxu1  ;;  %v6920_v40 = vadd.f32 %v6886_v47, %v2338_v41 }
 0x8d9   : > { %v6908_v46 = vadd.f32 %v6886_v47, %v5037_v58  ;;  %2377 = vmax.xlane.f32.xlu0 %v6904_v12  ;;  %v2341_v14 = vpop.f32.mrb[43].mxu1 }
 0x8da   : > { %v6916_v37 = vadd.f32 %v6886_v47, %v2341_v14 }
 0x8db   : > { %2391 = vmax.xlane.f32.xlu1 %v6908_v46 }
 0x8dd   : > { %2389 = vmax.xlane.f32.xlu0 %v6912_v51 }
 0x8de   : > { %v5040_v8 = vpop.f32.mrb[44].mxu1 }
 0x8df   : > { %2387 = vmax.xlane.f32.xlu1 %v6916_v37  ;;  %v2354_v54 = vpop.f32.mrb[45].mxu1  ;;  %v6925_v3 = vadd.f32 %v6886_v47, %v5040_v8 }
 0x8e0   : > { %v5041_v44 = vpop.f32.mrb[46].mxu1  ;;  %v6929_v10 = vadd.f32 %v6886_v47, %v2354_v54 }
 0x8e1   : > { %2385 = vmax.xlane.f32.xlu0 %v6920_v40  ;;  %v2357_v33 = vpop.f32.mrb[47].mxu1  ;;  %v6937_v23 = vadd.f32 %v6886_v47, %v5041_v44 }
 0x8e2   : > { %v6941_v25 = vadd.f32 %v6886_v47, %v2357_v33 }
 0x8e5   : > { %2397 = vmax.xlane.f32.xlu0 %v6925_v3 }
 0x8e9   : > { %2393 = vmax.xlane.f32.xlu0 %v6929_v10 }
 0x8f0   : > { %2713 = vrot.lane.b32.xlu1 %v6364_v32, %s5855_s19 }
 0x8ff   : > { %2711 = vrot.lane.b32.xlu0 %v6366_v42, %s5855_s19 }
 0x914   : > { %2399 = vmax.xlane.f32.xlu1 %v6937_v23 }
 0x918   : > { %2395 = vmax.xlane.f32.xlu1 %v6941_v25 }
 0x956   : > { %v2374_v29 = vpop.xlane.xlu0 %2373 }
 0x957   : > { %v2403_v34 = vsub.f32 %v2315_v24, %v2374_v29 }
 0x959   : > { %v2421_v0 = vmul.f32 1.442695, %v2403_v34  ;;  %v2372_v18 = vpop.xlane.xlu1 %2371 }
 0x95a   : > { %v2402_v27 = vsub.f32 %v2310_v30, %v2372_v18  ;;  %v2370_v5 = vpop.xlane.xlu0 %2369 }
 0x95b   : > { %5538 = vpow2.f32 %v2421_v0  ;;  %v2401_v41 = vsub.f32 %v2307_v31, %v2370_v5 }
 0x95c   : > { %v2419_v58 = vmul.f32 1.442695, %v2402_v27 }
 0x95d   : > { %v2417_v14 = vmul.f32 1.442695, %v2401_v41 }
 0x95e   : > { %5540 = vpow2.f32 %v2419_v58  ;;  %v2376_v8 = vpop.xlane.xlu0 %2375 }
 0x95f   : > { %5542 = vpow2.f32 %v2417_v14  ;;  %v2404_v54 = vsub.f32 %v2318_v13, %v2376_v8 }
 0x960   : > { %v2384_v29 = vpop.xlane.xlu1 %2383 }
 0x961   : > { %v2423_v44 = vmul.f32 1.442695, %v2404_v54  ;;  %v2408_v54 = vsub.f32 %v6893_v19, %v2384_v29 }
 0x962   : > { %v2382_v31 = vpop.xlane.xlu0 %2381 }
 0x963   : > { %5544 = vpow2.f32 %v2423_v44  ;;  %v2407_v0 = vsub.f32 %v6896_v35, %v2382_v31  ;;  %v2431_v50 = vmul.f32 1.442695, %v2408_v54 }
 0x964   : > { %v2380_v18 = vpop.xlane.xlu1 %2379 }
 0x965   : > { %v6946_v33 = vpop.eup %5538  ;;  %v2429_v5 = vmul.f32 1.442695, %v2407_v0  ;;  %v2406_v58 = vsub.f32 %v6900_v57, %v2380_v18 }
 0x966   : > { %2453 = vadd.xlane.f32.xlu1 %v6946_v33  ;;  %v2378_v13 = vpop.xlane.xlu0 %2377 }
 0x967   : > { %v2405_v41 = vsub.f32 %v6904_v12, %v2378_v13  ;;  %5546 = vpow2.f32 %v2429_v5  ;;  %v2427_v63 = vmul.f32 1.442695, %v2406_v58 }
 0x968   : > { %v6949_v22 = vpop.eup %5540  ;;  %v2392_v14 = vpop.xlane.xlu1 %2391 }
 0x969   : > { %v6951_v24 = vpop.eup %5542  ;;  %2451 = vadd.xlane.f32.xlu0 %v6949_v22  ;;  %v2425_v44 = vmul.f32 1.442695, %v2405_v41  ;;  %v2412_v19 = vsub.f32 %v6908_v46, %v2392_v14 }
 0x96a   : > { %2449 = vadd.xlane.f32.xlu1 %v6951_v24  ;;  %v2390_v34 = vpop.xlane.xlu0 %2389 }
 0x96b   : > { %v2411_v45 = vsub.f32 %v6912_v51, %v2390_v34  ;;  %5548 = vpow2.f32 %v2425_v44 }
 0x96c   : > { %v2388_v9 = vpop.xlane.xlu1 %2387  ;;  %5550 = vpow2.f32 %v2427_v63 }
 0x96d   : > { %v6955_v30 = vpop.eup %5544  ;;  %v2437_v31 = vmul.f32 1.442695, %v2411_v45  ;;  %5552 = vpow2.f32 %v2431_v50  ;;  %v2439_v45 = vmul.f32 1.442695, %v2412_v19 }
 0x96e   : > { %2455 = vadd.xlane.f32.xlu1 %v6955_v30  ;;  %v2386_v27 = vpop.xlane.xlu0 %2385 }
 0x96f   : > { %v2409_v12 = vsub.f32 %v6920_v40, %v2386_v27  ;;  %5554 = vpow2.f32 %v2437_v31  ;;  %v2410_v40 = vsub.f32 %v6916_v37, %v2388_v9 }
 0x970   : > { %v6973_v51 = vpop.permute.xlu1 %2713 }
 0x971   : > { %v2433_v29 = vmul.f32 1.442695, %v2409_v12  ;;  %v6971_v18 = vpop.eup %5546  ;;  %v2435_v34 = vmul.f32 1.442695, %v2410_v40 }
 0x972   : > { %v2398_v8 = vpop.xlane.xlu0 %2397 }
 0x973   : > { %v2415_v35 = vsub.f32 %v6925_v3, %v2398_v8 }
 0x975   : > { %v2445_v57 = vmul.f32 1.442695, %v2415_v35  ;;  %v6977_v50 = vpop.eup %5548 }
 0x976   : > { %v2394_v13 = vpop.xlane.xlu0 %2393 }
 0x977   : > { %v2413_v0 = vsub.f32 %v6929_v10, %v2394_v13  ;;  %5556 = vpow2.f32 %v2445_v57  ;;  %v6979_v10 = vpop.eup %5550 }
 0x978   : > { %5558 = vpow2.f32 %v2433_v29  ;;  %v6984_v5 = vpop.eup %5552 }
 0x979   : > { %v2441_v63 = vmul.f32 1.442695, %v2413_v0  ;;  %v6986_v9 = vpop.eup %5554 }
 0x97a   : > { %v2712_v31 = vpop.permute.xlu0 %2711 }
 0x97b   : > { %5560 = vpow2.f32 %v2441_v63 }
 0x97c   : > { %5562 = vpow2.f32 %v2439_v45 }
 0x97f   : > { %2715 = vrot.lane.b32.xlu0 %v6374_v56, %s5855_s19  ;;  %2717 = vrot.lane.b32.xlu1 %v6372_v55, %s5855_s19 }
 0x981   : > { %v6991_v58 = vpop.eup %5556 }
 0x982   : > { %v6993_v14 = vpop.eup %5558 }
 0x985   : > { %v6997_v8 = vpop.eup %5560 }
 0x986   : > { %v6999_v54 = vpop.eup %5562 }
 0x99e   : > { %2461 = vadd.xlane.f32.xlu0 %v6971_v18 }
 0x9a1   : > { %v2400_v3 = vpop.xlane.xlu1 %2399 }
 0x9a2   : > { %v2416_v46 = vsub.f32 %v6937_v23, %v2400_v3  ;;  %2457 = vadd.xlane.f32.xlu0 %v6977_v50 }
 0x9a3   : > { %2459 = vadd.xlane.f32.xlu1 %v6979_v10 }
 0x9a4   : > { %v2447_v27 = vmul.f32 1.442695, %v2416_v46 }
 0x9a5   : > { %v2396_v41 = vpop.xlane.xlu1 %2395 }
 0x9a6   : > { %5564 = vpow2.f32 %v2447_v27  ;;  %v2414_v37 = vsub.f32 %v6941_v25, %v2396_v41  ;;  %2463 = vadd.xlane.f32.xlu0 %v6984_v5 }
 0x9a7   : > { %2469 = vadd.xlane.f32.xlu1 %v6986_v9  ;;  %5566 = vpow2.f32 %v2435_v34  ;;  %v2748_v34 = vsel %vm1258_vm2, %v6832_v38, 0 }
 0x9a8   : > { %v2443_v23 = vmul.f32 1.442695, %v2414_v37 }
 0x9aa   : > { %2477 = vadd.xlane.f32.xlu0 %v6991_v58  ;;  %5568 = vpow2.f32 %v2443_v23 }
 0x9ab   : > { %2465 = vadd.xlane.f32.xlu1 %v6993_v14 }
 0x9ae   : > { %2473 = vadd.xlane.f32.xlu0 %v6997_v8 }
 0x9af   : > { %2471 = vadd.xlane.f32.xlu1 %v6999_v54 }
 0x9b0   : > { %v7003_v25 = vpop.eup %5564 }
 0x9b1   : > { %v7005_v44 = vpop.eup %5566 }
 0x9b2   : > { %2479 = vadd.xlane.f32.xlu0 %v7003_v25 }
 0x9b3   : > { %2467 = vadd.xlane.f32.xlu1 %v7005_v44 }
 0x9b4   : > { %v7009_v35 = vpop.eup %5568 }
 0x9b7   : > { %2475 = vadd.xlane.f32.xlu1 %v7009_v35 }
 0x9c8   : > { %2721 = vrot.lane.b32.xlu1 %v6380_v1, %s5855_s19  ;;  %2719 = vrot.lane.b32.xlu0 %v6382_v2, %s5855_s19 }
 0x9cc   : > { %2693 = vrot.lane.b32.xlu1 %v6354_v6, %s5856_s29  ;;  %2691 = vrot.lane.b32.xlu0 %v6356_v59, %s5856_s29 }
 0x9d0   : > { %2697 = vrot.lane.b32.xlu1 %v6364_v32, %s5856_s29  ;;  %2695 = vrot.lane.b32.xlu0 %v6366_v42, %s5856_s29 }
 0x9d4   : > { %2701 = vrot.lane.b32.xlu1 %v6372_v55, %s5856_s29  ;;  %2699 = vrot.lane.b32.xlu0 %v6374_v56, %s5856_s29 }
 0x9d8   : > { %2705 = vrot.lane.b32.xlu1 %v6380_v1, %s5856_s29  ;;  %2703 = vrot.lane.b32.xlu0 %v6382_v2, %s5856_s29 }
 0x9dc   : > { %3022 = vrot.lane.b32.xlu1 %v6354_v6, %s5857_s23  ;;  %3020 = vrot.lane.b32.xlu0 %v6356_v59, %s5857_s23 }
 0x9e0   : > { %3024 = vrot.lane.b32.xlu0 %v6366_v42, %s5857_s23 }
 0x9f3   : > { %v2454_v12 = vpop.xlane.xlu1 %2453 }
 0x9f6   : > { %v2452_v13 = vpop.xlane.xlu0 %2451 }
 0x9f7   : > { %5570 = vrcp.f32 %v2452_v13  ;;  %v2450_v57 = vpop.xlane.xlu1 %2449 }
 0x9f8   : > { %5572 = vrcp.f32 %v2450_v57 }
 0x9f9   : > { %5574 = vrcp.f32 %v2454_v12 }
 0x9fa   : > { %v2716_v38 = vpop.permute.xlu0 %2715 }
 0x9fb   : > { %v2456_v0 = vpop.xlane.xlu1 %2455 }
 0x9fc   : > { %5576 = vrcp.f32 %v2456_v0 }
 0xa01   : > { %v5571_v19 = vpop.eup %5570 }
 0xa02   : > { %v5573_v29 = vpop.eup %5572  ;;  %v2498_v63 = vmul.f32 %v5571_v19, %v6949_v22  ;;  %v2751_v22 = vsel %vm1258_vm2, %v6944_v28, 0 }
 0xa03   : > { %v2497_v6 = vmul.f32 %v5573_v29, %v6951_v24  ;;  %v5575_v45 = vpop.eup %5574  ;;  %v2757_v24 = vsel %vm1258_vm2, %v6973_v51, 0 }
 0xa04   : > { %v2499_v42 = vmul.f32 %v5575_v45, %v6946_v33  ;;  %v2754_v33 = vsel %vm1258_vm2, %v2712_v31, 0 }
 0xa05   : > { %v2513_v59 = vpack.c.bf16 %v2498_v63, %v2497_v6 }
 0xa06   : > { %v5577_v40 = vpop.eup %5576 }
 0xa07   : > { %v2500_v3 = vmul.f32 %v5577_v40, %v6955_v30  ;;  %5058 = vmatprep.mubr.bf16.mxu0 %v2513_v59  ;;  %v2760_v30 = vsel %vm1258_vm2, %v2716_v38, 0 }
 0xa09   : > { %v2514_v46 = vpack.c.bf16 %v2500_v3, %v2499_v42 }
 0xa0b   : > { %5059 = vmatmul.mubr.bf16.vlgmr.msra.gmra.mrb[48].mxu0 %v2514_v46 }
 0xa0c   : > { %5075 = vmatpush3.bf16.xpose.msra.mxu0 %v2748_v34 }
 0xa0d   : > { %5268 = vmatprep.subr.msk.bf16.mxu0 %vm1258_vm2, %v6944_v28  ;;  %v2718_v28 = vpop.permute.xlu1 %2717 }
 0xa0e   : > { %v2763_v23 = vsel %vm1258_vm2, %v2718_v28, 0 }
 0xa14   : > { %5077 = vmatpush3.bf16.xpose.msra.mxu0 %v2751_v22 }
 0xa15   : > { %5269 = vmatprep.subr.msk.bf16.mxu0 %vm1258_vm2, %v2712_v31 }
 0xa1c   : > { %5079 = vmatpush3.bf16.xpose.msra.mxu0 %v2754_v33 }
 0xa1d   : > { %5270 = vmatprep.subr.msk.bf16.mxu0 %vm1258_vm2, %v6973_v51 }
 0xa24   : > { %5081 = vmatpush3.bf16.xpose.msra.mxu0 %v2757_v24 }
 0xa25   : > { %5271 = vmatprep.subr.msk.bf16.mxu0 %vm1258_vm2, %v2716_v38 }
 0xa2b   : > { %v2462_v27 = vpop.xlane.xlu0 %2461 }
 0xa2c   : > { %5083 = vmatpush3.bf16.xpose.msra.mxu0 %v2760_v30 }
 0xa2d   : > { %5272 = vmatprep.subr.msk.bf16.mxu0 %vm1258_vm2, %v2718_v28 }
 0xa2f   : > { %v2458_v41 = vpop.xlane.xlu0 %2457 }
 0xa30   : > { %5578 = vrcp.f32 %v2458_v41  ;;  %v2460_v37 = vpop.xlane.xlu1 %2459 }
 0xa31   : > { %5580 = vrcp.f32 %v2460_v37 }
 0xa32   : > { %5582 = vrcp.f32 %v2462_v27 }
 0xa33   : > { %v2464_v31 = vpop.xlane.xlu0 %2463 }
 0xa34   : > { %5085 = vmatpush3.bf16.xpose.msra.mxu0 %v2763_v23  ;;  %5584 = vrcp.f32 %v2464_v31  ;;  %v2470_v51 = vpop.xlane.xlu1 %2469 }
 0xa37   : > { %v2478_v12 = vpop.xlane.xlu0 %2477 }
 0xa38   : > { %v2466_v13 = vpop.xlane.xlu1 %2465 }
 0xa3a   : > { %v5579_v57 = vpop.eup %5578 }
 0xa3b   : > { %v5581_v0 = vpop.eup %5580  ;;  %v2474_v19 = vpop.xlane.xlu0 %2473  ;;  %v2501_v29 = vmul.f32 %v5579_v57, %v6977_v50 }
 0xa3c   : > { %v5583_v63 = vpop.eup %5582  ;;  %v2472_v6 = vpop.xlane.xlu1 %2471  ;;  %v2502_v45 = vmul.f32 %v5581_v0, %v6979_v10 }
 0xa3d   : > { %5586 = vrcp.f32 %v2472_v6  ;;  %v2503_v3 = vmul.f32 %v5583_v63, %v6971_v18 }
 0xa3e   : > { %v5585_v59 = vpop.eup %5584  ;;  %v2515_v40 = vpack.c.bf16 %v2502_v45, %v2501_v29  ;;  %5588 = vrcp.f32 %v2466_v13 }
 0xa3f   : > { %v2480_v42 = vpop.xlane.xlu0 %2479  ;;  %v2504_v46 = vmul.f32 %v5585_v59, %v6984_v5  ;;  %5590 = vrcp.f32 %v2470_v51 }
 0xa40   : > { %v2468_v34 = vpop.xlane.xlu1 %2467  ;;  %5062 = vmatprep.mubr.bf16.mxu0 %v2515_v40 }
 0xa41   : > { %5592 = vrcp.f32 %v2468_v34  ;;  %v2516_v22 = vpack.c.bf16 %v2504_v46, %v2503_v3 }
 0xa42   : > { %5594 = vrcp.f32 %v2474_v19 }
 0xa43   : > { %5063 = vmatmul.mubr.bf16.gmra.mrb[52].mxu0 %v2516_v22  ;;  %v2720_v50 = vpop.permute.xlu0 %2719 }
 0xa44   : > { %v2476_v33 = vpop.xlane.xlu1 %2475  ;;  %5273 = vmatprep.subr.msk.bf16.mxu0 %vm1258_vm2, %v2720_v50  ;;  %v2766_v10 = vsel %vm1258_vm2, %v2720_v50, 0 }
 0xa45   : > { %5596 = vrcp.f32 %v2476_v33  ;;  %5087 = vmatpush3.bf16.xpose.msra.mxu0 %v2766_v10 }
 0xa46   : > { %5598 = vrcp.f32 %v2480_v42 }
 0xa47   : > { %v2692_v24 = vpop.permute.xlu0 %2691  ;;  %v5587_v18 = vpop.eup %5586  ;;  %5600 = vrcp.f32 %v2478_v12 }
 0xa48   : > { %v2722_v5 = vpop.permute.xlu1 %2721  ;;  %v5589_v38 = vpop.eup %5588  ;;  %v2508_v41 = vmul.f32 %v5587_v18, %v6999_v54 }
 0xa49   : > { %5274 = vmatprep.subr.msk.bf16.mxu0 %vm1258_vm2, %v2722_v5  ;;  %v5591_v30 = vpop.eup %5590  ;;  %v2769_v23 = vsel %vm1258_vm2, %v2722_v5, 0  ;;  %v2505_v31 = vmul.f32 %v5589_v38, %v6993_v14 }
 0xa4a   : > { %v2507_v12 = vmul.f32 %v5591_v30, %v6986_v9 }
 0xa4b   : > { %v5593_v27 = vpop.eup %5592  ;;  %v2696_v28 = vpop.permute.xlu0 %2695 }
 0xa4c   : > { %v2694_v37 = vpop.permute.xlu1 %2693  ;;  %v2506_v51 = vmul.f32 %v5593_v27, %v7005_v44  ;;  %v5595_v13 = vpop.eup %5594  ;;  %v2518_v29 = vpack.c.bf16 %v2508_v41, %v2507_v12 }
 0xa4d   : > { %5089 = vmatpush3.bf16.xpose.msra.mxu0 %v2769_v23  ;;  %v2509_v54 = vmul.f32 %v5595_v13, %v6997_v8 }
 0xa4e   : > { %v2517_v57 = vpack.c.bf16 %v2506_v51, %v2505_v31 }
 0xa4f   : > { %v5597_v0 = vpop.eup %5596  ;;  %v2700_v19 = vpop.permute.xlu0 %2699 }
 0xa50   : > { %v5599_v63 = vpop.eup %5598  ;;  %v2698_v6 = vpop.permute.xlu1 %2697  ;;  %5066 = vmatprep.mubr.bf16.mxu0 %v2517_v57  ;;  %v2510_v45 = vmul.f32 %v5597_v0, %v7009_v35 }
 0xa51   : > { %5067 = vmatmul.mubr.bf16.gmra.mrb[56].mxu0 %v2518_v29  ;;  %v5601_v59 = vpop.eup %5600  ;;  %v2512_v44 = vmul.f32 %v5599_v63, %v7003_v25 }
 0xa52   : > { %v2519_v14 = vpack.c.bf16 %v2510_v45, %v2509_v54  ;;  %v2511_v9 = vmul.f32 %v5601_v59, %v6991_v58 }
 0xa53   : > { %v2704_v40 = vpop.permute.xlu0 %2703 }
 0xa54   : > { %v2702_v42 = vpop.permute.xlu1 %2701  ;;  %5070 = vmatprep.mubr.bf16.mxu0 %v2519_v14  ;;  %v2520_v46 = vpack.c.bf16 %v2512_v44, %v2511_v9 }
 0xa57   : > { %v3021_v3 = vpop.permute.xlu0 %3020 }
 0xa58   : > { %v2706_v34 = vpop.permute.xlu1 %2705  ;;  %5106 = vmatprep.subr.bf16.mxu0 %v3021_v3  ;;  %5227 = vmatprep.subr.bf16.mxu1 %v3021_v3 }
 0xa59   : > { %5071 = vmatmul.mubr.bf16.gmra.mrb[60].mxu0 %v2520_v46  ;;  %5235 = vmatpush3.bf16.msra.mxu1 %v3021_v3 }
 0xa5a   : > { %5090 = vmatprep.mubr.msk.bf16.mxu0 %vm1258_vm2, %v2692_v24 }
 0xa5b   : > { %v3025_v35 = vpop.permute.xlu0 %3024 }
 0xa5c   : > { %v3023_v8 = vpop.permute.xlu1 %3022 }
 0xa5d   : > { %5228 = vmatprep.subr.bf16.mxu1 %v3023_v8 }
 0xa5e   : > { %5236 = vmatpush3.bf16.msra.mxu1 %v3023_v8 }
 0xa5f   : > { %5229 = vmatprep.subr.bf16.mxu1 %v3025_v35 }
 0xa61   : > { %5091 = vmatmul.mubr.msk.bf16.vlgmr.msra.gmra.mrb[64].mxu0 %vm1258_vm2, %v2694_v37 }
 0xa62   : > { %5107 = vmatpush3.bf16.msra.mxu0 %v3021_v3  ;;  %5094 = vmatprep.mubr.msk.bf16.mxu0 %vm1258_vm2, %v2696_v28 }
 0xa63   : > { %5108 = vmatprep.subr.bf16.mxu0 %v3023_v8  ;;  %5237 = vmatpush3.bf16.msra.mxu1 %v3025_v35 }
 0xa66   : > { %5109 = vmatpush3.bf16.msra.mxu0 %v3023_v8 }
 0xa67   : > { %5110 = vmatprep.subr.bf16.mxu0 %v3025_v35 }
 0xa69   : > { %5095 = vmatmul.mubr.msk.bf16.gmra.mrb[68].mxu0 %vm1258_vm2, %v2698_v6 }
 0xa6a   : > { %5111 = vmatpush3.bf16.msra.mxu0 %v3025_v35  ;;  %5098 = vmatprep.mubr.msk.bf16.mxu0 %vm1258_vm2, %v2700_v19 }
 0xa71   : > { %5099 = vmatmul.mubr.msk.bf16.gmra.mrb[72].mxu0 %vm1258_vm2, %v2702_v42 }
 0xa72   : > { %5102 = vmatprep.mubr.msk.bf16.mxu0 %vm1258_vm2, %v2704_v40 }
 0xa79   : > { %5103 = vmatmul.mubr.msk.bf16.gmra.mrb[76].mxu0 %vm1258_vm2, %v2706_v34 }
 0xade   : > { %v7074_v58 = vpop.f32.mrb[48].mxu0 }
 0xadf   : > { %v7076_v25 = vpop.f32.mrb[49].mxu0 }
 0xae0   : > { %v7078_v22 = vpop.f32.mrb[50].mxu0 }
 0xae1   : > { %v7082_v33 = vpop.f32.mrb[51].mxu0 }
 0xb16   : > { %v7086_v24 = vpop.f32.mrb[52].mxu0 }
 0xb17   : > { %v7088_v18 = vpop.f32.mrb[53].mxu0 }
 0xb18   : > { %v7090_v5 = vpop.f32.mrb[54].mxu0 }
 0xb19   : > { %v7094_v30 = vpop.f32.mrb[55].mxu0 }
 0xb24   : > { %v7098_v28 = vpop.f32.mrb[56].mxu0 }
 0xb25   : > { %v7100_v41 = vpop.f32.mrb[57].mxu0 }
 0xb26   : > { %v7102_v37 = vpop.f32.mrb[58].mxu0 }
 0xb27   : > { %v7106_v31 = vpop.f32.mrb[59].mxu0 }
 0xb2c   : > { %v7110_v13 = vpop.f32.mrb[60].mxu0 }
 0xb2d   : > { %7980 = vst [vmem:[#allocation22_spill] sm:$0xff] %v7110_v13  ;;  %v7112_v12 = vpop.f32.mrb[61].mxu0 }
 0xb2e   : > { %7981 = vst [vmem:[#allocation23_spill] sm:$0xff] %v7112_v12  ;;  %v7114_v57 = vpop.f32.mrb[62].mxu0 }
 0xb2f   : > { %v7118_v19 = vpop.f32.mrb[63].mxu0 }
 0xb30   : > { %7982 = vst [vmem:[#allocation24_spill] sm:$0xff] %v7118_v19 }
 0xb34   : > { %v5092_v63 = vpop.f32.mrb[64].mxu0 }
 0xb35   : > { %v2814_v6 = vadd.f32 %v6886_v47, %v5092_v63  ;;  %v2805_v54 = vpop.f32.mrb[65].mxu0 }
 0xb36   : > { %v5093_v45 = vpop.f32.mrb[66].mxu0  ;;  %v2806_v40 = vadd.f32 %v6886_v47, %v2805_v54 }
 0xb37   : > { %2872 = vmax.xlane.f32.xlu0 %v2814_v6  ;;  %v2808_v59 = vpop.f32.mrb[67].mxu0  ;;  %v2817_v42 = vadd.f32 %v6886_v47, %v5093_v45 }
 0xb38   : > { %v2809_v14 = vadd.f32 %v6886_v47, %v2808_v59 }
 0xb3a   : > { %2870 = vmax.xlane.f32.xlu1 %v2809_v14 }
 0xb3b   : > { %2868 = vmax.xlane.f32.xlu0 %v2806_v40 }
 0xb3c   : > { %v5096_v44 = vpop.f32.mrb[68].mxu0 }
 0xb3d   : > { %v2821_v9 = vpop.f32.mrb[69].mxu0  ;;  %v2830_v8 = vadd.f32 %v6886_v47, %v5096_v44 }
 0xb3e   : > { %v5097_v3 = vpop.f32.mrb[70].mxu0  ;;  %v2822_v54 = vadd.f32 %v6886_v47, %v2821_v9 }
 0xb3f   : > { %v7127_v46 = vadd.f32 %v6886_v47, %v5097_v3  ;;  %2874 = vmax.xlane.f32.xlu0 %v2817_v42  ;;  %v2824_v34 = vpop.f32.mrb[71].mxu0 }
 0xb40   : > { %v2825_v35 = vadd.f32 %v6886_v47, %v2824_v34 }
 0xb41   : > { %2882 = vmax.xlane.f32.xlu1 %v7127_v46 }
 0xb43   : > { %2880 = vmax.xlane.f32.xlu0 %v2830_v8 }
 0xb44   : > { %v5100_v63 = vpop.f32.mrb[72].mxu0 }
 0xb45   : > { %2878 = vmax.xlane.f32.xlu1 %v2825_v35  ;;  %v2837_v59 = vpop.f32.mrb[73].mxu0  ;;  %v2846_v0 = vadd.f32 %v6886_v47, %v5100_v63 }
 0xb46   : > { %v5101_v45 = vpop.f32.mrb[74].mxu0  ;;  %v7142_v51 = vadd.f32 %v6886_v47, %v2837_v59 }
 0xb47   : > { %v7134_v29 = vadd.f32 %v6886_v47, %v5101_v45  ;;  %2876 = vmax.xlane.f32.xlu0 %v2822_v54  ;;  %v2840_v3 = vpop.f32.mrb[75].mxu0 }
 0xb48   : > { %v7139_v44 = vadd.f32 %v6886_v47, %v2840_v3 }
 0xb49   : > { %2890 = vmax.xlane.f32.xlu1 %v7134_v29 }
 0xb4b   : > { %2888 = vmax.xlane.f32.xlu0 %v2846_v0 }
 0xb4c   : > { %v5104_v34 = vpop.f32.mrb[76].mxu0 }
 0xb4d   : > { %2886 = vmax.xlane.f32.xlu1 %v7139_v44  ;;  %v2853_v9 = vpop.f32.mrb[77].mxu0  ;;  %v7147_v27 = vadd.f32 %v6886_v47, %v5104_v34 }
 0xb4e   : > { %v5105_v23 = vpop.f32.mrb[78].mxu0  ;;  %v7151_v63 = vadd.f32 %v6886_v47, %v2853_v9 }
 0xb4f   : > { %2884 = vmax.xlane.f32.xlu0 %v7142_v51  ;;  %v2856_v45 = vpop.f32.mrb[79].mxu0  ;;  %v7159_v59 = vadd.f32 %v6886_v47, %v5105_v23 }
 0xb50   : > { %v7163_v3 = vadd.f32 %v6886_v47, %v2856_v45 }
 0xb53   : > { %2896 = vmax.xlane.f32.xlu0 %v7147_v27 }
 0xb57   : > { %2892 = vmax.xlane.f32.xlu0 %v7151_v63 }
 0xb5e   : > { %3028 = vrot.lane.b32.xlu1 %v6374_v56, %s5857_s23 }
 0xb6d   : > { %3026 = vrot.lane.b32.xlu0 %v6364_v32, %s5857_s23 }
 0xb82   : > { %2898 = vmax.xlane.f32.xlu1 %v7159_v59 }
 0xb86   : > { %2894 = vmax.xlane.f32.xlu1 %v7163_v3 }
 0xb97   : > { %3030 = vrot.lane.b32.xlu1 %v6372_v55, %s5857_s23 }
 0xbc4   : > { %v2873_v34 = vpop.xlane.xlu0 %2872 }
 0xbc5   : > { %v2902_v9 = vsub.f32 %v2814_v6, %v2873_v34 }
 0xbc7   : > { %v2920_v61 = vmul.f32 1.442695, %v2902_v9  ;;  %v2871_v38 = vpop.xlane.xlu1 %2870 }
 0xbc8   : > { %v2869_v56 = vpop.xlane.xlu0 %2868  ;;  %v2901_v23 = vsub.f32 %v2809_v14, %v2871_v38 }
 0xbc9   : > { %5602 = vpow2.f32 %v2920_v61  ;;  %v2900_v32 = vsub.f32 %v2806_v40, %v2869_v56 }
 0xbca   : > { %v2918_v45 = vmul.f32 1.442695, %v2901_v23 }
 0xbcb   : > { %v2916_v62 = vmul.f32 1.442695, %v2900_v32 }
 0xbcc   : > { %v2875_v50 = vpop.xlane.xlu0 %2874 }
 0xbcd   : > { %5604 = vpow2.f32 %v2916_v62  ;;  %v2903_v10 = vsub.f32 %v2817_v42, %v2875_v50 }
 0xbce   : > { %v2883_v48 = vpop.xlane.xlu1 %2882 }
 0xbcf   : > { %v2922_v47 = vmul.f32 1.442695, %v2903_v10  ;;  %v2907_v38 = vsub.f32 %v7127_v46, %v2883_v48 }
 0xbd0   : > { %v2881_v12 = vpop.xlane.xlu0 %2880 }
 0xbd1   : > { %5606 = vpow2.f32 %v2922_v47  ;;  %v2906_v19 = vsub.f32 %v2830_v8, %v2881_v12  ;;  %v2930_v42 = vmul.f32 1.442695, %v2907_v38 }
 0xbd2   : > { %v2879_v13 = vpop.xlane.xlu1 %2878  ;;  %5608 = vpow2.f32 %v2918_v45 }
 0xbd3   : > { %v7168_v55 = vpop.eup %5602  ;;  %v2928_v6 = vmul.f32 1.442695, %v2906_v19  ;;  %v2905_v34 = vsub.f32 %v2825_v35, %v2879_v13 }
 0xbd4   : > { %2952 = vadd.xlane.f32.xlu1 %v7168_v55  ;;  %v2877_v61 = vpop.xlane.xlu0 %2876 }
 0xbd5   : > { %5610 = vpow2.f32 %v2928_v6  ;;  %v2926_v62 = vmul.f32 1.442695, %v2905_v34  ;;  %v2904_v50 = vsub.f32 %v2822_v54, %v2877_v61 }
 0xbd6   : > { %v2891_v40 = vpop.xlane.xlu1 %2890 }
 0xbd7   : > { %v7172_v14 = vpop.eup %5604  ;;  %v2924_v10 = vmul.f32 1.442695, %v2904_v50  ;;  %5612 = vpow2.f32 %v2926_v62  ;;  %v2911_v8 = vsub.f32 %v7134_v29, %v2891_v40 }
 0xbd8   : > { %2948 = vadd.xlane.f32.xlu1 %v7172_v14  ;;  %v2889_v12 = vpop.xlane.xlu0 %2888 }
 0xbd9   : > { %5614 = vpow2.f32 %v2924_v10  ;;  %v2910_v13 = vsub.f32 %v2846_v0, %v2889_v12  ;;  %v2938_v23 = vmul.f32 1.442695, %v2911_v8  ;;  %v7983_v8 = vpack.c.bf16 %v6841_v7, %v6837_v16 }
 0xbda   : > { %5616 = vpow2.f32 %v2930_v42  ;;  %v2887_v46 = vpop.xlane.xlu1 %2886  ;;  %v7986_v16 = vpack.c.bf16 %v6853_v17, %v6849_v11  ;;  %v7988_v11 = vpack.c.bf16 %v6865_v49, %v6861_v4  ;;  %v7990_v4 = vpack.c.bf16 %v6857_v26, %v6851_v43 }
 0xbdb   : > { %v7175_v19 = vpop.eup %5606  ;;  %v2936_v35 = vmul.f32 1.442695, %v2910_v13  ;;  %v2909_v0 = vsub.f32 %v7139_v44, %v2887_v46  ;;  %v7991_v49 = vpack.c.bf16 %v7094_v30, %v7088_v18 }
 0xbdc   : > { %2954 = vadd.xlane.f32.xlu1 %v7175_v19  ;;  %v2885_v48 = vpop.xlane.xlu0 %2884  ;;  %v7180_v9 = vpop.eup %5608 }
 0xbdd   : > { %v2908_v54 = vsub.f32 %v7142_v51, %v2885_v48  ;;  %5618 = vpow2.f32 %v2936_v35  ;;  %v2934_v34 = vmul.f32 1.442695, %v2909_v0  ;;  %v7984_v35 = vpack.c.bf16 %v7082_v33, %v7076_v25 }
 0xbde   : > { %v3029_v10 = vpop.permute.xlu1 %3028  ;;  %v7987_v25 = vpack.c.bf16 %v7090_v5, %v7086_v24  ;;  %v7989_v24 = vpack.c.bf16 %v6845_v60, %v6839_v15  ;;  %v7992_v5 = vpack.c.bf16 %v6869_v36, %v6863_v52 }
 0xbdf   : > { %v7182_v56 = vpop.eup %5610  ;;  %v2932_v32 = vmul.f32 1.442695, %v2908_v54 }
 0xbe0   : > { %2950 = vadd.xlane.f32.xlu1 %v7180_v9  ;;  %2960 = vadd.xlane.f32.xlu0 %v7182_v56  ;;  %v2897_v29 = vpop.xlane.xlu0 %2896 }
 0xbe1   : > { %5620 = vpow2.f32 %v2932_v32  ;;  %v2914_v47 = vsub.f32 %v7147_v27, %v2897_v29  ;;  %v7188_v45 = vpop.eup %5612 }
 0xbe2   : > { %5622 = vpow2.f32 %v2938_v23 }
 0xbe3   : > { %v7190_v51 = vpop.eup %5614  ;;  %v2944_v6 = vmul.f32 1.442695, %v2914_v47 }
 0xbe4   : > { %2958 = vadd.xlane.f32.xlu1 %v7188_v45  ;;  %2956 = vadd.xlane.f32.xlu0 %v7190_v51  ;;  %v2893_v44 = vpop.xlane.xlu0 %2892  ;;  %v7195_v38 = vpop.eup %5616 }
 0xbe5   : > { %5624 = vpow2.f32 %v2944_v6  ;;  %v2912_v61 = vsub.f32 %v7151_v63, %v2893_v44 }
 0xbe6   : > { %5626 = vpow2.f32 %v2934_v34 }
 0xbe7   : > { %v2940_v62 = vmul.f32 1.442695, %v2912_v61  ;;  %v7198_v50 = vpop.eup %5618 }
 0xbe8   : > { %2962 = vadd.xlane.f32.xlu0 %v7195_v38  ;;  %v3027_v27 = vpop.permute.xlu0 %3026 }
 0xbe9   : > { %5628 = vpow2.f32 %v2940_v62  ;;  %5112 = vmatprep.subr.bf16.mxu0 %v3027_v27  ;;  %5230 = vmatprep.subr.bf16.mxu1 %v3027_v27 }
 0xbea   : > { %5113 = vmatpush3.bf16.msra.mxu0 %v3027_v27  ;;  %5238 = vmatpush3.bf16.msra.mxu1 %v3027_v27 }
 0xbeb   : > { %v7200_v40 = vpop.eup %5620  ;;  %5114 = vmatprep.subr.bf16.mxu0 %v3029_v10  ;;  %5231 = vmatprep.subr.bf16.mxu1 %v3029_v10 }
 0xbec   : > { %2968 = vadd.xlane.f32.xlu0 %v7198_v50  ;;  %2964 = vadd.xlane.f32.xlu1 %v7200_v40  ;;  %v7204_v63 = vpop.eup %5622 }
 0xbee   : > { %5115 = vmatpush3.bf16.msra.mxu0 %v3029_v10  ;;  %5239 = vmatpush3.bf16.msra.mxu1 %v3029_v10 }
 0xbef   : > { %v7206_v12 = vpop.eup %5624 }
 0xbf0   : > { %2970 = vadd.xlane.f32.xlu0 %v7204_v63  ;;  %2976 = vadd.xlane.f32.xlu1 %v7206_v12  ;;  %v7210_v42 = vpop.eup %5626 }
 0xbf3   : > { %v7212_v13 = vpop.eup %5628 }
 0xbf4   : > { %2966 = vadd.xlane.f32.xlu0 %v7210_v42  ;;  %2972 = vadd.xlane.f32.xlu1 %v7212_v13 }
 0xc05   : > { %3034 = vrot.lane.b32.xlu1 %v6380_v1, %s5857_s23  ;;  %v7985_v1 = vpack.c.bf16 %v7078_v22, %v7074_v58 }
 0xc09   : > { %2161 = vrot.lane.b32.xlu1 %v7983_v8, %s5858_s18 }
 0xc0a   : > { %3032 = vrot.lane.b32.xlu0 %v6382_v2, %s5857_s23 }
 0xc0d   : > { %2658 = vrot.lane.b32.xlu1 %v7984_v35, %s5859_s28 }
 0xc0f   : > { %v2899_v48 = vpop.xlane.xlu1 %2898 }
 0xc10   : > { %v2915_v58 = vsub.f32 %v7159_v59, %v2899_v48 }
 0xc11   : > { %2660 = vrot.lane.b32.xlu1 %v7985_v1, %s5859_s28 }
 0xc12   : > { %v2946_v17 = vmul.f32 1.442695, %v2915_v58 }
 0xc13   : > { %v2895_v46 = vpop.xlane.xlu1 %2894 }
 0xc14   : > { %v2913_v2 = vsub.f32 %v7163_v3, %v2895_v46 }
 0xc15   : > { %2165 = vrot.lane.b32.xlu1 %v7986_v16, %s5858_s18 }
 0xc16   : > { %v2942_v22 = vmul.f32 1.442695, %v2913_v2 }
 0xc17   : > { %v3031_v7 = vpop.permute.xlu1 %3030 }
 0xc18   : > { %5116 = vmatprep.subr.bf16.mxu0 %v3031_v7  ;;  %5232 = vmatprep.subr.bf16.mxu1 %v3031_v7  ;;  %5630 = vpow2.f32 %v2942_v22 }
 0xc19   : > { %2664 = vrot.lane.b32.xlu1 %v7987_v25, %s5859_s28  ;;  %5117 = vmatpush3.bf16.msra.mxu0 %v3031_v7  ;;  %5632 = vpow2.f32 %v2946_v17 }
 0xc1a   : > { %5240 = vmatpush3.bf16.msra.mxu1 %v3031_v7 }
 0xc1d   : > { %2169 = vrot.lane.b32.xlu1 %v7988_v11, %s5858_s18 }
 0xc22   : > { %v7246_v33 = vpop.eup %5630 }
 0xc23   : > { %v7249_v3 = vpop.eup %5632 }
 0xc29   : > { %2974 = vadd.xlane.f32.xlu0 %v7246_v33 }
 0xc2d   : > { %2978 = vadd.xlane.f32.xlu0 %v7249_v3 }
 0xc43   : > { %2159 = vrot.lane.b32.xlu0 %v7989_v24, %s5858_s18 }
 0xc47   : > { %2163 = vrot.lane.b32.xlu0 %v7990_v4, %s5858_s18 }
 0xc4b   : > { %2662 = vrot.lane.b32.xlu0 %v7991_v49, %s5859_s28 }
 0xc4f   : > { %2167 = vrot.lane.b32.xlu0 %v7992_v5, %s5858_s18 }
 0xc61   : > { %v2953_v59 = vpop.xlane.xlu1 %2952 }
 0xc65   : > { %v2949_v54 = vpop.xlane.xlu1 %2948 }
 0xc66   : > { %5634 = vrcp.f32 %v2949_v54 }
 0xc69   : > { %v2955_v32 = vpop.xlane.xlu1 %2954 }
 0xc6d   : > { %v2951_v15 = vpop.xlane.xlu1 %2950  ;;  %v2961_v60 = vpop.xlane.xlu0 %2960 }
 0xc6e   : > { %5636 = vrcp.f32 %v2951_v15 }
 0xc70   : > { %v5635_v0 = vpop.eup %5634 }
 0xc71   : > { %v2959_v23 = vpop.xlane.xlu1 %2958  ;;  %v2957_v43 = vpop.xlane.xlu0 %2956  ;;  %v2996_v47 = vmul.f32 %v5635_v0, %v7172_v14 }
 0xc72   : > { %5638 = vrcp.f32 %v2959_v23 }
 0xc73   : > { %5640 = vrcp.f32 %v2957_v43 }
 0xc74   : > { %5642 = vrcp.f32 %v2955_v32 }
 0xc75   : > { %v2963_v26 = vpop.xlane.xlu0 %2962 }
 0xc76   : > { %5644 = vrcp.f32 %v2963_v26 }
 0xc77   : > { %5646 = vrcp.f32 %v2953_v59 }
 0xc78   : > { %v5637_v18 = vpop.eup %5636  ;;  %5648 = vrcp.f32 %v2961_v60 }
 0xc79   : > { %v2965_v30 = vpop.xlane.xlu1 %2964  ;;  %v2969_v29 = vpop.xlane.xlu0 %2968  ;;  %v2997_v52 = vmul.f32 %v5637_v18, %v7180_v9 }
 0xc7a   : > { %5650 = vrcp.f32 %v2965_v30 }
 0xc7b   : > { %v3012_v36 = vpack.c.bf16 %v2997_v52, %v2996_v47 }
 0xc7c   : > { %v5639_v6 = vpop.eup %5638 }
 0xc7d   : > { %v5641_v34 = vpop.eup %5640  ;;  %5122 = vmatprep.mubr.bf16.mxu0 %v3012_v36  ;;  %v2977_v44 = vpop.xlane.xlu1 %2976  ;;  %v3001_v62 = vmul.f32 %v5639_v6, %v7188_v45 }
 0xc7e   : > { %v2971_v61 = vpop.xlane.xlu0 %2970  ;;  %v3000_v27 = vmul.f32 %v5641_v34, %v7190_v51  ;;  %v5643_v9 = vpop.eup %5642 }
 0xc7f   : > { %5652 = vrcp.f32 %v2971_v61  ;;  %v2999_v45 = vmul.f32 %v5643_v9, %v7175_v19 }
 0xc80   : > { %v3014_v10 = vpack.c.bf16 %v3001_v62, %v3000_v27  ;;  %v5645_v35 = vpop.eup %5644 }
 0xc81   : > { %v2973_v8 = vpop.xlane.xlu1 %2972  ;;  %v5647_v46 = vpop.eup %5646  ;;  %v3003_v51 = vmul.f32 %v5645_v35, %v7195_v38 }
 0xc82   : > { %v2967_v14 = vpop.xlane.xlu0 %2966  ;;  %5126 = vmatprep.mubr.bf16.mxu1 %v3014_v10  ;;  %v5649_v16 = vpop.eup %5648  ;;  %v2998_v7 = vmul.f32 %v5647_v46, %v7168_v55 }
 0xc83   : > { %5654 = vrcp.f32 %v2967_v14  ;;  %v3002_v25 = vmul.f32 %v5649_v16, %v7182_v56  ;;  %v7994_v16 = vpack.c.bf16 %v7102_v37, %v7098_v28  ;;  %v7997_v28 = vpack.c.bf16 %v6881_v21, %v6875_v39 }
 0xc84   : > { %5656 = vrcp.f32 %v2969_v29  ;;  %v5651_v58 = vpop.eup %5650  ;;  %v3013_v11 = vpack.c.bf16 %v2999_v45, %v2998_v7 }
 0xc85   : > { %v3035_v48 = vpop.permute.xlu1 %3034  ;;  %v3015_v17 = vpack.c.bf16 %v3003_v51, %v3002_v25  ;;  %v3004_v19 = vmul.f32 %v5651_v58, %v7200_v40  ;;  %5658 = vrcp.f32 %v2973_v8  ;;  %v7995_v51 = vpack.c.bf16 %v7106_v31, %v7100_v41  ;;  %v7998_v41 = vld [vmem:[#allocation22_spill] sm:$0xff]  ;;  %v8000_v31 = vld [vmem:[#allocation24_spill] sm:$0xff] }
 0xc86   : > { %v3033_v1 = vpop.permute.xlu0 %3032  ;;  %v7996_v58 = vpack.c.bf16 %v6877_v20, %v6873_v53  ;;  %v7999_v37 = vpack.c.bf16 %v7114_v57, %v7998_v41 }
 0xc87   : > { %5118 = vmatprep.subr.bf16.mxu0 %v3033_v1  ;;  %5233 = vmatprep.subr.bf16.mxu1 %v3033_v1 }
 0xc88   : > { %5119 = vmatpush3.bf16.msra.mxu0 %v3033_v1  ;;  %5241 = vmatpush3.bf16.msra.mxu1 %v3033_v1 }
 0xc89   : > { %5120 = vmatprep.subr.bf16.mxu0 %v3035_v48  ;;  %5234 = vmatprep.subr.bf16.mxu1 %v3035_v48  ;;  %v2162_v2 = vpop.permute.xlu1 %2161  ;;  %v5653_v22 = vpop.eup %5652 }
 0xc8a   : > { %2185 = vst.msk [vmem:[#allocation3 + $0x8] sm:$0xff] %vm2183_vm3, %v2162_v2  ;;  %v3007_v56 = vmul.f32 %v5653_v22, %v7204_v63  ;;  %v8001_v22 = vld [vmem:[#allocation23_spill] sm:$0xff] }
 0xc8c   : > { %5121 = vmatpush3.bf16.msra.mxu0 %v3035_v48  ;;  %5242 = vmatpush3.bf16.msra.mxu1 %v3035_v48 }
 0xc8d   : > { %v5655_v24 = vpop.eup %5654  ;;  %v2659_v4 = vpop.permute.xlu1 %2658 }
 0xc8e   : > { %v3005_v38 = vmul.f32 %v5655_v24, %v7210_v42  ;;  %v5657_v49 = vpop.eup %5656 }
 0xc8f   : > { %5123 = vmatmul.mubr.bf16.vlgmr.msra.gmra.mrb[80].mxu0 %v3013_v11  ;;  %5127 = vmatmul.mubr.bf16.vlgmr.msra.gmra.mrb[48].mxu1 %v3015_v17  ;;  %v3006_v59 = vmul.f32 %v5657_v49, %v7198_v50  ;;  %v5659_v23 = vpop.eup %5658  ;;  %v8002_v11 = vpack.c.bf16 %v8000_v31, %v8001_v22  ;;  %v5737_v31 = vld [vmem:[#allocation2 + $0x38] sm:$0xff] }
 0xc90   : > { %v3016_v55 = vpack.c.bf16 %v3005_v38, %v3004_v19  ;;  %v3008_v26 = vmul.f32 %v5659_v23, %v7212_v13  ;;  %v5366_v13 = vld [vmem:[%s7993_s16] sm:$0xff]  }
 0xc91   : > { %v2661_v5 = vpop.permute.xlu1 %2660  ;;  %v3017_v54 = vpack.c.bf16 %v3007_v56, %v3006_v59  ;;  %5138 = vmatprep.subr.bf16.mxu1 %v5366_v13 }
 0xc92   : > { %2684 = vst.msk [vmem:[#allocation3 + $0x8] sm:$0xff] %vm2682_vm4, %v2661_v5  ;;  %5130 = vmatprep.mubr.bf16.mxu1 %v3016_v55  ;;  %5139 = vmatpush3.bf16.msra.mxu1 %v5366_v13  ;;  %v5731_v13 = vld [vmem:[#allocation2] sm:$0xff] }
 0xc95   : > { %v2166_v32 = vpop.permute.xlu1 %2165 }
 0xc96   : > { %2187 = vst.msk [vmem:[#allocation3 + $0x18] sm:$0xff] %vm2183_vm3, %v2166_v32 }
 0xc97   : > { %5131 = vmatmul.mubr.bf16.gmra.mrb[52].mxu1 %v3017_v54 }
 0xc99   : > { %v2665_v15 = vpop.permute.xlu1 %2664 }
 0xc9a   : > { %2686 = vst.msk [vmem:[#allocation3 + $0x18] sm:$0xff] %vm2682_vm4, %v2665_v15 }
 0xc9d   : > { %v2170_v40 = vpop.permute.xlu1 %2169 }
 0xc9e   : > { %2189 = vst.msk [vmem:[#allocation3 + $0x28] sm:$0xff] %vm2183_vm3, %v2170_v40 }
 0xcb6   : > { %v2975_v42 = vpop.xlane.xlu0 %2974 }
 0xcb7   : > { %5660 = vrcp.f32 %v2975_v42 }
 0xcb8   : > { %5662 = vrcp.f32 %v2977_v44 }
 0xcba   : > { %v2979_v63 = vpop.xlane.xlu0 %2978 }
 0xcbb   : > { %5664 = vrcp.f32 %v2979_v63 }
 0xcbe   : > { %v2160_v60 = vpop.permute.xlu0 %2159 }
 0xcbf   : > { %2184 = vst.msk [vmem:[#allocation3] sm:$0xff] %vm2183_vm3, %v2160_v60 }
 0xcc0   : > { %2683 = vst.msk [vmem:[#allocation3] sm:$0xff] %vm2682_vm4, %v2659_v4 }
 0xcc1   : > { %v5661_v50 = vpop.eup %5660 }
 0xcc2   : > { %v2164_v43 = vpop.permute.xlu0 %2163  ;;  %v3009_v0 = vmul.f32 %v5661_v50, %v7246_v33  ;;  %v5663_v18 = vpop.eup %5662  ;;  %v5367_v33 = vld [vmem:[%s7993_s16 + $0x8] sm:$0xff]   ;;  %s8009_s16 = sld [smem:[#allocation31_spill]] (!%p4672_p1) }
 0xcc3   : > { %2186 = vst.msk [vmem:[#allocation3 + $0x10] sm:$0xff] %vm2183_vm3, %v2164_v43  ;;  %v3010_v52 = vmul.f32 %v5663_v18, %v7206_v12  ;;  %5140 = vmatprep.subr.bf16.mxu1 %v5367_v33 }
 0xcc4   : > { %v3018_v30 = vpack.c.bf16 %v3009_v0, %v3008_v26  ;;  %5141 = vmatpush3.bf16.msra.mxu1 %v5367_v33 }
 0xcc5   : > { %v5665_v29 = vpop.eup %5664 }
 0xcc6   : > { %5134 = vmatprep.mubr.bf16.mxu1 %v3018_v30  ;;  %v2663_v47 = vpop.permute.xlu0 %2662  ;;  %v3011_v36 = vmul.f32 %v5665_v29, %v7249_v3  ;;  %v7347_v30 = vld [vmem:[%s8003_s17] ss:$0 sm:$0xff] }
 0xcc7   : > { %2685 = vst.msk [vmem:[#allocation3 + $0x10] sm:$0xff] %vm2682_vm4, %v2663_v47 }
 0xcc8   : > { %v3019_v6 = vpack.c.bf16 %v3011_v36, %v3010_v52 }
 0xcca   : > { %5135 = vmatmul.mubr.bf16.gmra.mrb[56].mxu1 %v3019_v6  ;;  %v2168_v34 = vpop.permute.xlu0 %2167 }
 0xccb   : > { %2188 = vst.msk [vmem:[#allocation3 + $0x20] sm:$0xff] %vm2183_vm3, %v2168_v34 }
 0xd62   : > { %v5124_v44 = vpop.f32.mrb[80].mxu0  ;;  %v5128_v61 = vpop.f32.mrb[48].mxu1 }
 0xd63   : > { %v3078_v62 = vpop.f32.mrb[81].mxu0  ;;  %v3094_v27 = vpop.f32.mrb[49].mxu1 }
 0xd64   : > { %v5125_v12 = vpop.f32.mrb[82].mxu0  ;;  %v5129_v10 = vpop.f32.mrb[50].mxu1 }
 0xd65   : > { %v3142_v3 = vpack.c.bf16 %v5125_v12, %v5124_v44  ;;  %v3144_v8 = vpack.c.bf16 %v5129_v10, %v5128_v61  ;;  %v3081_v14 = vpop.f32.mrb[83].mxu0  ;;  %v3097_v9 = vpop.f32.mrb[51].mxu1  ;;  %v5732_v61 = vld [vmem:[#allocation2 + $0x10] sm:$0xff]  ;;  %v5733_v12 = vld [vmem:[#allocation2 + $0x8] sm:$0xff] }
 0xd66   : > { %v3141_v35 = vpack.c.bf16 %v3081_v14, %v3078_v62  ;;  %v3143_v48 = vpack.c.bf16 %v3097_v9, %v3094_v27 }
 0xd67   : > { %3159 = vrot.lane.b32.xlu1 %v3142_v3, %s5860_s2 }
 0xd68   : > { %3157 = vrot.lane.b32.xlu0 %v3141_v35, %s5860_s2  ;;  %v5734_v35 = vld [vmem:[#allocation2 + $0x18] sm:$0xff] }
 0xd6a   : > { %v5132_v1 = vpop.f32.mrb[52].mxu1 }
 0xd6b   : > { %v3110_v46 = vpop.f32.mrb[53].mxu1  ;;  %2668 = vrot.lane.b32.xlu1 %v7994_v16, %s5859_s28 }
 0xd6c   : > { %v5133_v45 = vpop.f32.mrb[54].mxu1  ;;  %2666 = vrot.lane.b32.xlu0 %v7995_v51, %s5859_s28 }
 0xd6d   : > { %v3146_v2 = vpack.c.bf16 %v5133_v45, %v5132_v1  ;;  %v3113_v7 = vpop.f32.mrb[55].mxu1 }
 0xd6e   : > { %v3145_v25 = vpack.c.bf16 %v3113_v7, %v3110_v46 }
 0xd6f   : > { %3163 = vrot.lane.b32.xlu1 %v3144_v8, %s5860_s2 }
 0xd70   : > { %3161 = vrot.lane.b32.xlu0 %v3143_v48, %s5860_s2 }
 0xd73   : > { %2173 = vrot.lane.b32.xlu1 %v7996_v58, %s5858_s18 }
 0xd74   : > { %2171 = vrot.lane.b32.xlu0 %v7997_v28, %s5858_s18  ;;  %v5736_v28 = vld [vmem:[#allocation2 + $0x28] sm:$0xff] }
 0xd77   : > { %3167 = vrot.lane.b32.xlu1 %v3146_v2, %s5860_s2 }
 0xd78   : > { %3165 = vrot.lane.b32.xlu0 %v3145_v25, %s5860_s2  ;;  %v5735_v25 = vld [vmem:[#allocation2 + $0x20] sm:$0xff] }
 0xd7b   : > { %2672 = vrot.lane.b32.xlu1 %v7999_v37, %s5859_s28 }
 0xd7c   : > { %2670 = vrot.lane.b32.xlu0 %v8002_v11, %s5859_s28 }
 0xd9d   : > { %v5136_v17 = vpop.f32.mrb[56].mxu1 }
 0xd9e   : > { %v3126_v53 = vpop.f32.mrb[57].mxu1 }
 0xd9f   : > { %v5137_v20 = vpop.f32.mrb[58].mxu1 }
 0xda0   : > { %v3148_v24 = vpack.c.bf16 %v5137_v20, %v5136_v17  ;;  %v3129_v4 = vpop.f32.mrb[59].mxu1  ;;  %v5738_v20 = vld [vmem:[#allocation2 + $0x30] sm:$0xff] }
 0xda1   : > { %v3147_v19 = vpack.c.bf16 %v3129_v4, %v3126_v53 }
 0xda2   : > { %3171 = vrot.lane.b32.xlu1 %v3148_v24, %s5860_s2 }
 0xda3   : > { %3169 = vrot.lane.b32.xlu0 %v3147_v19, %s5860_s2 }
 0xdd9   : > { %v3160_v39 = vpop.permute.xlu1 %3159 }
 0xdda   : > { %3183 = vst.msk [vmem:[#allocation3 + $0x8] sm:$0xff] %vm3181_vm5, %v3160_v39  ;;  %v3158_v21 = vpop.permute.xlu0 %3157 }
 0xddb   : > { %3182 = vst.msk [vmem:[#allocation3] sm:$0xff] %vm3181_vm5, %v3158_v21 }
 0xddd   : > { %v2669_v57 = vpop.permute.xlu1 %2668 }
 0xdde   : > { %2688 = vst.msk [vmem:[#allocation3 + $0x28] sm:$0xff] %vm2682_vm4, %v2669_v57  ;;  %v2667_v38 = vpop.permute.xlu0 %2666 }
 0xddf   : > { %2687 = vst.msk [vmem:[#allocation3 + $0x20] sm:$0xff] %vm2682_vm4, %v2667_v38 }
 0xde1   : > { %v3164_v49 = vpop.permute.xlu1 %3163  ;;  %v3191_v5 = vld [vmem:[#allocation3 + $0x8] sm:$0xff] }
 0xde2   : > { %3185 = vst.msk [vmem:[#allocation3 + $0x18] sm:$0xff] %vm3181_vm5, %v3164_v49  ;;  %v3162_v55 = vpop.permute.xlu0 %3161  ;;  %v3190_v56 = vld [vmem:[#allocation3] sm:$0xff] }
 0xde3   : > { %3184 = vst.msk [vmem:[#allocation3 + $0x10] sm:$0xff] %vm3181_vm5, %v3162_v55  ;;  %5142 = vmatprep.mubr.msk.bf16.mxu1 %vm820_vm1, %v3190_v56  ;;  %v5739_v56 = vld [vmem:[#allocation2 + $0x40] sm:$0xff] }
 0xde4   : > { %5143 = vmatmul.mubr.msk.bf16.vlgmr.msra.gmra.mrb[60].mxu1 %vm820_vm1, %v3191_v5 }
 0xde5   : > { %v2174_v59 = vpop.permute.xlu1 %2173 }
 0xde6   : > { %2191 = vst.msk [vmem:[#allocation3 + $0x38] sm:$0xff] %vm2183_vm3, %v2174_v59  ;;  %v2172_v54 = vpop.permute.xlu0 %2171  ;;  %v5740_v59 = vld [vmem:[#allocation2 + $0x48] sm:$0xff] }
 0xde7   : > { %2190 = vst.msk [vmem:[#allocation3 + $0x30] sm:$0xff] %vm2183_vm3, %v2172_v54 }
 0xde9   : > { %v3168_v32 = vpop.permute.xlu1 %3167  ;;  %v3193_v42 = vld [vmem:[#allocation3 + $0x18] sm:$0xff] }
 0xdea   : > { %3187 = vst.msk [vmem:[#allocation3 + $0x28] sm:$0xff] %vm3181_vm5, %v3168_v32  ;;  %v3166_v15 = vpop.permute.xlu0 %3165  ;;  %v3192_v40 = vld [vmem:[#allocation3 + $0x10] sm:$0xff] }
 0xdeb   : > { %3186 = vst.msk [vmem:[#allocation3 + $0x20] sm:$0xff] %vm3181_vm5, %v3166_v15  ;;  %5146 = vmatprep.mubr.msk.bf16.mxu1 %vm820_vm1, %v3192_v40  ;;  %v5741_v15 = vld [vmem:[#allocation2 + $0x58] sm:$0xff] }
 0xdec   : > { %5147 = vmatmul.mubr.msk.bf16.gmra.mrb[64].mxu1 %vm820_vm1, %v3193_v42 }
 0xded   : > { %v2673_v63 = vpop.permute.xlu1 %2672 }
 0xdee   : > { %2690 = vst.msk [vmem:[#allocation3 + $0x38] sm:$0xff] %vm2682_vm4, %v2673_v63  ;;  %v2671_v60 = vpop.permute.xlu0 %2670  ;;  %v5742_v63 = vld [vmem:[#allocation2 + $0x50] sm:$0xff] }
 0xdef   : > { %2689 = vst.msk [vmem:[#allocation3 + $0x30] sm:$0xff] %vm2682_vm4, %v2671_v60 }
 0xdf1   : > { %v3195_v50 = vld [vmem:[#allocation3 + $0x28] sm:$0xff] }
 0xdf2   : > { %v3194_v23 = vld [vmem:[#allocation3 + $0x20] sm:$0xff] }
 0xdf3   : > { %5150 = vmatprep.mubr.msk.bf16.mxu1 %vm820_vm1, %v3194_v23 }
 0xdf4   : > { %5151 = vmatmul.mubr.msk.bf16.gmra.mrb[68].mxu1 %vm820_vm1, %v3195_v50 }
 0xe14   : > { %v3172_v43 = vpop.permute.xlu1 %3171 }
 0xe15   : > { %3189 = vst.msk [vmem:[#allocation3 + $0x38] sm:$0xff] %vm3181_vm5, %v3172_v43  ;;  %v3170_v26 = vpop.permute.xlu0 %3169 }
 0xe16   : > { %3188 = vst.msk [vmem:[#allocation3 + $0x30] sm:$0xff] %vm3181_vm5, %v3170_v26 }
 0xe1c   : > { %v3197_v18 = vld [vmem:[#allocation3 + $0x38] sm:$0xff] }
 0xe1d   : > { %v3196_v0 = vld [vmem:[#allocation3 + $0x30] sm:$0xff] }
 0xe1e   : > { %5154 = vmatprep.mubr.msk.bf16.mxu1 %vm820_vm1, %v3196_v0 }
 0xe1f   : > { %5155 = vmatmul.mubr.msk.bf16.gmra.mrb[72].mxu1 %vm820_vm1, %v3197_v18 }
 0xeb7   : > { %v5144_v29 = vpop.f32.mrb[60].mxu1 }
 0xeb8   : > { %v3279_v47 = vpop.f32.mrb[61].mxu1  ;;  %v3288_v52 = vadd.f32 %v5144_v29, %v7347_v30 }
 0xeb9   : > { %v3280_v36 = vadd.f32 %v7347_v30, %v3279_v47  ;;  %v5145_v6 = vpop.f32.mrb[62].mxu1 }
 0xeba   : > { %v3282_v34 = vpop.f32.mrb[63].mxu1  ;;  %v7354_v62 = vadd.f32 %v5732_v61, %v3288_v52  ;;  %v3291_v27 = vadd.f32 %v5145_v6, %v7347_v30  ;;  %v5743_v6 = vld [vmem:[#allocation2 + $0x60] sm:$0xff] }
 0xebb   : > { %v7351_v33 = vadd.f32 %v5731_v13, %v3280_v36  ;;  %v3283_v44 = vadd.f32 %v7347_v30, %v3282_v34 }
 0xebc   : > { %v7363_v48 = vadd.f32 %v5734_v35, %v3291_v27  ;;  %v3366_v16 = vsel %vm820_vm1, %v7354_v62, 0.0  ;;  %v5745_v27 = vld [vmem:[#allocation2 + $0x68] sm:$0xff] }
 0xebd   : > { %v7357_v10 = vadd.f32 %v5733_v12, %v3283_v44  ;;  %v3360_v3 = vsel %vm820_vm1, %v7351_v33, 0.0  ;;  %v5744_v44 = vld [vmem:[#allocation2 + $0x70] sm:$0xff] }
 0xebe   : > { %3361 = vadd.xlane.f32.xlu0 %v3360_v3  ;;  %v3369_v37 = vsel %vm820_vm1, %v7363_v48, 0.0 }
 0xebf   : > { %v5148_v8 = vpop.f32.mrb[64].mxu1  ;;  %v3363_v14 = vsel %vm820_vm1, %v7357_v10, 0.0 }
 0xec0   : > { %3364 = vadd.xlane.f32.xlu1 %v3363_v14  ;;  %v3295_v9 = vpop.f32.mrb[65].mxu1  ;;  %v3304_v7 = vadd.f32 %v5148_v8, %v7347_v30  ;;  %v5746_v8 = vld [vmem:[#allocation2 + $0x78] sm:$0xff] }
 0xec1   : > { %v3296_v1 = vadd.f32 %v7347_v30, %v3295_v9  ;;  %v5149_v46 = vpop.f32.mrb[66].mxu1 }
 0xec2   : > { %3367 = vadd.xlane.f32.xlu0 %v3366_v16  ;;  %v3298_v45 = vpop.f32.mrb[67].mxu1  ;;  %v3307_v51 = vadd.f32 %v5149_v46, %v7347_v30  ;;  %v7381_v24 = vadd.f32 %v5738_v20, %v3304_v7 }
 0xec3   : > { %v3299_v2 = vadd.f32 %v7347_v30, %v3298_v45  ;;  %v7371_v58 = vadd.f32 %v5735_v25, %v3296_v1 }
 0xec4   : > { %v7377_v22 = vadd.f32 %v5737_v31, %v3307_v51  ;;  %v3378_v32 = vsel %vm820_vm1, %v7381_v24, 0.0 }
 0xec5   : > { %v7373_v41 = vadd.f32 %v5736_v28, %v3299_v2  ;;  %v3372_v39 = vsel %vm820_vm1, %v7371_v58, 0.0 }
 0xec6   : > { %3370 = vadd.xlane.f32.xlu0 %v3369_v37  ;;  %v3381_v49 = vsel %vm820_vm1, %v7377_v22, 0.0 }
 0xec7   : > { %v5152_v11 = vpop.f32.mrb[68].mxu1  ;;  %v3375_v17 = vsel %vm820_vm1, %v7373_v41, 0.0 }
 0xec8   : > { %3376 = vadd.xlane.f32.xlu1 %v3375_v17  ;;  %v3311_v53 = vpop.f32.mrb[69].mxu1  ;;  %v3320_v55 = vadd.f32 %v5152_v11, %v7347_v30 }
 0xec9   : > { %v3312_v4 = vadd.f32 %v7347_v30, %v3311_v53  ;;  %v5153_v19 = vpop.f32.mrb[70].mxu1 }
 0xeca   : > { %3373 = vadd.xlane.f32.xlu0 %v3372_v39  ;;  %v3314_v21 = vpop.f32.mrb[71].mxu1  ;;  %v3323_v57 = vadd.f32 %v5153_v19, %v7347_v30  ;;  %v7401_v60 = vadd.f32 %v5742_v63, %v3320_v55 }
 0xecb   : > { %v3315_v38 = vadd.f32 %v7347_v30, %v3314_v21  ;;  %v7391_v5 = vadd.f32 %v5739_v56, %v3312_v4 }
 0xecc   : > { %3382 = vadd.xlane.f32.xlu1 %v3381_v49  ;;  %v7397_v40 = vadd.f32 %v5741_v15, %v3323_v57  ;;  %v3390_v43 = vsel %vm820_vm1, %v7401_v60, 0.0 }
 0xecd   : > { %v7393_v54 = vadd.f32 %v5740_v59, %v3315_v38  ;;  %v3384_v23 = vsel %vm820_vm1, %v7391_v5, 0.0 }
 0xece   : > { %3379 = vadd.xlane.f32.xlu0 %v3378_v32  ;;  %v3393_v50 = vsel %vm820_vm1, %v7397_v40, 0.0 }
 0xecf   : > { %v3387_v42 = vsel %vm820_vm1, %v7393_v54, 0.0 }
 0xed0   : > { %3388 = vadd.xlane.f32.xlu1 %v3387_v42 }
 0xed2   : > { %3385 = vadd.xlane.f32.xlu0 %v3384_v23 }
 0xed4   : > { %3394 = vadd.xlane.f32.xlu1 %v3393_v50 }
 0xed6   : > { %3391 = vadd.xlane.f32.xlu0 %v3390_v43 }
 0xef2   : > { %v5156_v26 = vpop.f32.mrb[72].mxu1 }
 0xef3   : > { %v3336_v0 = vadd.f32 %v5156_v26, %v7347_v30  ;;  %v3327_v18 = vpop.f32.mrb[73].mxu1 }
 0xef4   : > { %v3328_v29 = vadd.f32 %v7347_v30, %v3327_v18  ;;  %v5157_v47 = vpop.f32.mrb[74].mxu1 }
 0xef5   : > { %v3339_v52 = vadd.f32 %v5157_v47, %v7347_v30  ;;  %v3330_v36 = vpop.f32.mrb[75].mxu1  ;;  %v7415_v61 = vadd.f32 %v5744_v44, %v3336_v0 }
 0xef6   : > { %v7412_v34 = vadd.f32 %v5743_v6, %v3328_v29  ;;  %v3331_v13 = vadd.f32 %v7347_v30, %v3330_v36 }
 0xef7   : > { %v7421_v14 = vadd.f32 %v5746_v8, %v3339_v52  ;;  %v3402_v30 = vsel %vm820_vm1, %v7415_v61, 0.0 }
 0xef8   : > { %v7417_v12 = vadd.f32 %v5745_v27, %v3331_v13  ;;  %v3396_v3 = vsel %vm820_vm1, %v7412_v34, 0.0 }
 0xef9   : > { %3397 = vadd.xlane.f32.xlu0 %v3396_v3  ;;  %v3405_v35 = vsel %vm820_vm1, %v7421_v14, 0.0 }
 0xefa   : > { %v3399_v9 = vsel %vm820_vm1, %v7417_v12, 0.0 }
 0xefb   : > { %3400 = vadd.xlane.f32.xlu1 %v3399_v9 }
 0xefd   : > { %3403 = vadd.xlane.f32.xlu0 %v3402_v30 }
 0xeff   : > { %3406 = vadd.xlane.f32.xlu1 %v3405_v35 }
 0xf4b   : > { %v3362_v1 = vpop.xlane.xlu0 %3361 }
 0xf4c   : > { %v3408_v46 = vmul.f32 0.03125, %v3362_v1 }
 0xf4d   : > { %v3365_v16 = vpop.xlane.xlu1 %3364 }
 0xf4e   : > { %v7430_v45 = vsub.f32 %v7351_v33, %v3408_v46  ;;  %v3409_v51 = vmul.f32 0.03125, %v3365_v16 }
 0xf4f   : > { %v3368_v2 = vpop.xlane.xlu0 %3367 }
 0xf50   : > { %v7433_v7 = vsub.f32 %v7357_v10, %v3409_v51  ;;  %v3410_v25 = vmul.f32 0.03125, %v3368_v2  ;;  %v3440_v28 = vmul.f32 %v7430_v45, %v7430_v45 }
 0xf52   : > { %v7438_v37 = vsub.f32 %v7354_v62, %v3410_v25  ;;  %v3456_v31 = vsel %vm820_vm1, %v3440_v28, 0.0  ;;  %v3441_v11 = vmul.f32 %v7433_v7, %v7433_v7 }
 0xf53   : > { %3457 = vadd.xlane.f32.xlu0 %v3456_v31  ;;  %v3371_v17 = vpop.xlane.xlu0 %3370 }
 0xf54   : > { %v3411_v53 = vmul.f32 0.03125, %v3371_v17  ;;  %v3459_v20 = vsel %vm820_vm1, %v3441_v11, 0.0  ;;  %v3442_v4 = vmul.f32 %v7438_v37, %v7438_v37 }
 0xf55   : > { %v3377_v19 = vpop.xlane.xlu1 %3376  ;;  %3460 = vadd.xlane.f32.xlu1 %v3459_v20 }
 0xf56   : > { %v7447_v39 = vsub.f32 %v7363_v48, %v3411_v53  ;;  %v3413_v21 = vmul.f32 0.03125, %v3377_v19  ;;  %v3462_v57 = vsel %vm820_vm1, %v3442_v4, 0.0  ;;  %v5368_v4 = vld [vmem:[%s6080_s1] sm:$0xff]   ;;  %v5369_v19 = vld [vmem:[%s6080_s1 + $0x8] sm:$0xff]  }
 0xf57   : > { %3463 = vadd.xlane.f32.xlu0 %v3462_v57  ;;  %v3374_v38 = vpop.xlane.xlu0 %3373  ;;  %5158 = vmatprep.subr.bf16.mxu0 %v5368_v4 }
 0xf58   : > { %v7451_v49 = vsub.f32 %v7373_v41, %v3413_v21  ;;  %v3412_v55 = vmul.f32 0.03125, %v3374_v38  ;;  %v3443_v56 = vmul.f32 %v7447_v39, %v7447_v39  ;;  %5159 = vmatpush3.bf16.msra.mxu0 %v5368_v4 }
 0xf59   : > { %v3383_v59 = vpop.xlane.xlu1 %3382  ;;  %5160 = vmatprep.subr.bf16.mxu0 %v5369_v19 }
 0xf5a   : > { %v7456_v32 = vsub.f32 %v7371_v58, %v3412_v55  ;;  %v3415_v15 = vmul.f32 0.03125, %v3383_v59  ;;  %v3465_v42 = vsel %vm820_vm1, %v3443_v56, 0.0  ;;  %v3445_v63 = vmul.f32 %v7451_v49, %v7451_v49 }
 0xf5b   : > { %3466 = vadd.xlane.f32.xlu1 %v3465_v42  ;;  %v3380_v23 = vpop.xlane.xlu0 %3379 }
 0xf5c   : > { %v7462_v50 = vsub.f32 %v7377_v22, %v3415_v15  ;;  %v3414_v43 = vmul.f32 0.03125, %v3380_v23  ;;  %v3444_v26 = vmul.f32 %v7456_v32, %v7456_v32  ;;  %v3471_v18 = vsel %vm820_vm1, %v3445_v63, 0.0  ;;  %5161 = vmatpush3.bf16.msra.mxu0 %v5369_v19 }
 0xf5d   : > { %v3389_v0 = vpop.xlane.xlu1 %3388 }
 0xf5e   : > { %v7468_v29 = vsub.f32 %v7381_v24, %v3414_v43  ;;  %v3417_v47 = vmul.f32 0.03125, %v3389_v0  ;;  %v3468_v52 = vsel %vm820_vm1, %v3444_v26, 0.0  ;;  %v3447_v36 = vmul.f32 %v7462_v50, %v7462_v50 }
 0xf5f   : > { %3472 = vadd.xlane.f32.xlu1 %v3471_v18  ;;  %3469 = vadd.xlane.f32.xlu0 %v3468_v52  ;;  %v3386_v6 = vpop.xlane.xlu0 %3385 }
 0xf60   : > { %v7474_v13 = vsub.f32 %v7393_v54, %v3417_v47  ;;  %v3416_v44 = vmul.f32 0.03125, %v3386_v6  ;;  %v3446_v27 = vmul.f32 %v7468_v29, %v7468_v29  ;;  %v3477_v8 = vsel %vm820_vm1, %v3447_v36, 0.0 }
 0xf61   : > { %v3395_v3 = vpop.xlane.xlu1 %3394 }
 0xf62   : > { %v7480_v9 = vsub.f32 %v7391_v5, %v3416_v44  ;;  %v3419_v30 = vmul.f32 0.03125, %v3395_v3  ;;  %v3474_v35 = vsel %vm820_vm1, %v3446_v27, 0.0  ;;  %v3449_v1 = vmul.f32 %v7474_v13, %v7474_v13 }
 0xf63   : > { %3478 = vadd.xlane.f32.xlu1 %v3477_v8  ;;  %3475 = vadd.xlane.f32.xlu0 %v3474_v35  ;;  %v3392_v46 = vpop.xlane.xlu0 %3391 }
 0xf64   : > { %v7486_v16 = vsub.f32 %v7397_v40, %v3419_v30  ;;  %v3418_v51 = vmul.f32 0.03125, %v3392_v46  ;;  %v3448_v2 = vmul.f32 %v7480_v9, %v7480_v9  ;;  %v3483_v28 = vsel %vm820_vm1, %v3449_v1, 0.0 }
 0xf66   : > { %v7491_v25 = vsub.f32 %v7401_v60, %v3418_v51  ;;  %v3480_v31 = vsel %vm820_vm1, %v3448_v2, 0.0  ;;  %v3451_v11 = vmul.f32 %v7486_v16, %v7486_v16 }
 0xf67   : > { %3484 = vadd.xlane.f32.xlu1 %v3483_v28  ;;  %3481 = vadd.xlane.f32.xlu0 %v3480_v31 }
 0xf68   : > { %v3450_v17 = vmul.f32 %v7491_v25, %v7491_v25  ;;  %v3489_v53 = vsel %vm820_vm1, %v3451_v11, 0.0 }
 0xf6a   : > { %v3486_v20 = vsel %vm820_vm1, %v3450_v17, 0.0 }
 0xf6b   : > { %3490 = vadd.xlane.f32.xlu1 %v3489_v53  ;;  %3487 = vadd.xlane.f32.xlu0 %v3486_v20 }
 0xf86   : > { %v3398_v21 = vpop.xlane.xlu0 %3397 }
 0xf87   : > { %v3420_v57 = vmul.f32 0.03125, %v3398_v21 }
 0xf88   : > { %v3401_v38 = vpop.xlane.xlu1 %3400 }
 0xf89   : > { %v7504_v55 = vsub.f32 %v7412_v34, %v3420_v57  ;;  %v3421_v56 = vmul.f32 0.03125, %v3401_v38  ;;  %v7532_v57 = vld [vmem:[%s8004_s0] ss:$0 sm:$0xff] }
 0xf8a   : > { %v3404_v59 = vpop.xlane.xlu0 %3403 }
 0xf8b   : > { %v7507_v15 = vsub.f32 %v7417_v12, %v3421_v56  ;;  %v3422_v42 = vmul.f32 0.03125, %v3404_v59  ;;  %v3452_v63 = vmul.f32 %v7504_v55, %v7504_v55 }
 0xf8c   : > { %v3407_v23 = vpop.xlane.xlu1 %3406 }
 0xf8d   : > { %v7512_v43 = vsub.f32 %v7415_v61, %v3422_v42  ;;  %v3423_v26 = vmul.f32 0.03125, %v3407_v23  ;;  %v3492_v0 = vsel %vm820_vm1, %v3452_v63, 0.0  ;;  %v3453_v18 = vmul.f32 %v7507_v15, %v7507_v15 }
 0xf8e   : > { %3493 = vadd.xlane.f32.xlu0 %v3492_v0 }
 0xf8f   : > { %v7518_v47 = vsub.f32 %v7421_v14, %v3423_v26  ;;  %v3495_v52 = vsel %vm820_vm1, %v3453_v18, 0.0  ;;  %v3454_v36 = vmul.f32 %v7512_v43, %v7512_v43 }
 0xf90   : > { %3496 = vadd.xlane.f32.xlu1 %v3495_v52 }
 0xf91   : > { %v3498_v6 = vsel %vm820_vm1, %v3454_v36, 0.0  ;;  %v3455_v44 = vmul.f32 %v7518_v47, %v7518_v47 }
 0xf92   : > { %3499 = vadd.xlane.f32.xlu0 %v3498_v6 }
 0xf93   : > { %v3501_v27 = vsel %vm820_vm1, %v3455_v44, 0.0 }
 0xf94   : > { %3502 = vadd.xlane.f32.xlu1 %v3501_v27  ;;  %v7542_v27 = vld [vmem:[%s8005_s25] ss:$0 sm:$0xff] }
 0xfe0   : > { %v3458_v3 = vpop.xlane.xlu0 %3457 }
 0xfe1   : > { %v3504_v8 = vmul.f32 0.03125, %v3458_v3 }
 0xfe2   : > { %v3461_v30 = vpop.xlane.xlu1 %3460 }
 0xfe3   : > { %v3520_v35 = vadd.f32 1e-05, %v3504_v8  ;;  %v3505_v1 = vmul.f32 0.03125, %v3461_v30 }
 0xfe4   : > { %v3464_v46 = vpop.xlane.xlu0 %3463 }
 0xfe5   : > { %5666 = vrsqrt.f32 %v3520_v35  ;;  %v3521_v51 = vadd.f32 1e-05, %v3505_v1  ;;  %v3506_v2 = vmul.f32 0.03125, %v3464_v46 }
 0xfe7   : > { %5668 = vrsqrt.f32 %v3521_v51  ;;  %v3522_v28 = vadd.f32 1e-05, %v3506_v2 }
 0xfe8   : > { %v3467_v31 = vpop.xlane.xlu1 %3466 }
 0xfe9   : > { %5670 = vrsqrt.f32 %v3522_v28  ;;  %v3507_v11 = vmul.f32 0.03125, %v3467_v31 }
 0xfeb   : > { %v3523_v17 = vadd.f32 1e-05, %v3507_v11 }
 0xfec   : > { %v3473_v53 = vpop.xlane.xlu1 %3472  ;;  %v3470_v20 = vpop.xlane.xlu0 %3469 }
 0xfed   : > { %5672 = vrsqrt.f32 %v3523_v17  ;;  %v3509_v4 = vmul.f32 0.03125, %v3473_v53  ;;  %v3508_v19 = vmul.f32 0.03125, %v3470_v20 }
 0xfef   : > { %v5667_v21 = vpop.eup %5666  ;;  %v3525_v38 = vadd.f32 1e-05, %v3509_v4  ;;  %v3524_v56 = vadd.f32 1e-05, %v3508_v19 }
 0xff0   : > { %v3552_v59 = vmul.f32 %v5667_v21, %v7430_v45  ;;  %v3479_v42 = vpop.xlane.xlu1 %3478  ;;  %v3476_v63 = vpop.xlane.xlu0 %3475 }
 0xff1   : > { %v5669_v23 = vpop.eup %5668  ;;  %5674 = vrsqrt.f32 %v3525_v38  ;;  %v3511_v26 = vmul.f32 0.03125, %v3479_v42  ;;  %v3510_v0 = vmul.f32 0.03125, %v3476_v63 }
 0xff2   : > { %v3553_v18 = vmul.f32 %v5669_v23, %v7433_v7  ;;  %5676 = vrsqrt.f32 %v3524_v56  ;;  %v3574_v52 = vmul.f32 %v7532_v57, %v3552_v59 }
 0xff3   : > { %v5671_v36 = vpop.eup %5670  ;;  %v3527_v6 = vadd.f32 1e-05, %v3511_v26  ;;  %v3526_v44 = vadd.f32 1e-05, %v3510_v0 }
 0xff4   : > { %v3554_v45 = vmul.f32 %v5671_v36, %v7438_v37  ;;  %v3485_v3 = vpop.xlane.xlu1 %3484  ;;  %v3482_v8 = vpop.xlane.xlu0 %3481  ;;  %v3575_v30 = vmul.f32 %v7532_v57, %v3553_v18  ;;  %v3596_v1 = vadd.f32 %v7542_v27, %v3574_v52 }
 0xff5   : > { %5678 = vrsqrt.f32 %v3527_v6  ;;  %v3513_v7 = vmul.f32 0.03125, %v3485_v3  ;;  %v3512_v35 = vmul.f32 0.03125, %v3482_v8 }
 0xff6   : > { %5680 = vrsqrt.f32 %v3526_v44  ;;  %v3597_v46 = vadd.f32 %v7542_v27, %v3575_v30  ;;  %v3576_v31 = vmul.f32 %v7532_v57, %v3554_v45 }
 0xff7   : > { %v5673_v51 = vpop.eup %5672  ;;  %v3529_v2 = vadd.f32 1e-05, %v3513_v7  ;;  %v3528_v28 = vadd.f32 1e-05, %v3512_v35 }
 0xff8   : > { %v3555_v11 = vmul.f32 %v5673_v51, %v7447_v39  ;;  %v3491_v37 = vpop.xlane.xlu1 %3490  ;;  %v3488_v17 = vpop.xlane.xlu0 %3487  ;;  %v3612_v53 = vpack.c.bf16 %v3597_v46, %v3596_v1  ;;  %v3598_v63 = vadd.f32 %v7542_v27, %v3576_v31 }
 0xff9   : > { %5682 = vrsqrt.f32 %v3529_v2  ;;  %v3515_v20 = vmul.f32 0.03125, %v3491_v37  ;;  %v3514_v4 = vmul.f32 0.03125, %v3488_v17 }
 0xffa   : > { %v3577_v19 = vmul.f32 %v7532_v57, %v3555_v11  ;;  %5684 = vrsqrt.f32 %v3528_v28  ;;  %5162 = vmatprep.mubr.msk.bf16.mxu0 %vm820_vm1, %v3612_v53 }
 0xffb   : > { %v5675_v21 = vpop.eup %5674  ;;  %v3531_v38 = vadd.f32 1e-05, %v3515_v20  ;;  %v3530_v56 = vadd.f32 1e-05, %v3514_v4 }
 0xffc   : > { %v5677_v59 = vpop.eup %5676  ;;  %v3557_v42 = vmul.f32 %v5675_v21, %v7451_v49  ;;  %v3599_v39 = vadd.f32 %v7542_v27, %v3577_v19 }
 0xffd   : > { %v3556_v23 = vmul.f32 %v5677_v59, %v7456_v32  ;;  %5686 = vrsqrt.f32 %v3531_v38 }
 0xffe   : > { %5688 = vrsqrt.f32 %v3530_v56  ;;  %v3613_v26 = vpack.c.bf16 %v3599_v39, %v3598_v63  ;;  %v3579_v0 = vmul.f32 %v7532_v57, %v3557_v42 }
 0xfff   : > { %v5679_v18 = vpop.eup %5678  ;;  %v3578_v52 = vmul.f32 %v7532_v57, %v3556_v23 }
0x1000   : > { %v5681_v36 = vpop.eup %5680  ;;  %v3559_v6 = vmul.f32 %v5679_v18, %v7462_v50  ;;  %5163 = vmatmul.mubr.msk.bf16.vlgmr.msra.gmra.mrb[84].mxu0 %vm820_vm1, %v3613_v26  ;;  %v3601_v49 = vadd.f32 %v7542_v27, %v3579_v0 }
0x1001   : > { %v3558_v44 = vmul.f32 %v5681_v36, %v7468_v29  ;;  %v3600_v45 = vadd.f32 %v7542_v27, %v3578_v52 }
0x1002   : > { %v3581_v32 = vmul.f32 %v7532_v57, %v3559_v6 }
0x1003   : > { %v5683_v3 = vpop.eup %5682  ;;  %v3614_v8 = vpack.c.bf16 %v3601_v49, %v3600_v45  ;;  %v3580_v30 = vmul.f32 %v7532_v57, %v3558_v44 }
0x1004   : > { %v5685_v7 = vpop.eup %5684  ;;  %v3561_v35 = vmul.f32 %v5683_v3, %v7474_v13  ;;  %v3603_v1 = vadd.f32 %v7542_v27, %v3581_v32 }
0x1005   : > { %v3560_v50 = vmul.f32 %v5685_v7, %v7480_v9  ;;  %5166 = vmatprep.mubr.msk.bf16.mxu0 %vm820_vm1, %v3614_v8  ;;  %v3602_v46 = vadd.f32 %v7542_v27, %v3580_v30 }
0x1006   : > { %v3583_v29 = vmul.f32 %v7532_v57, %v3561_v35 }
0x1007   : > { %v5687_v51 = vpop.eup %5686  ;;  %v3615_v2 = vpack.c.bf16 %v3603_v1, %v3602_v46  ;;  %v3582_v28 = vmul.f32 %v7532_v57, %v3560_v50 }
0x1008   : > { %v5689_v31 = vpop.eup %5688  ;;  %v3563_v11 = vmul.f32 %v5687_v51, %v7486_v16  ;;  %v3605_v37 = vadd.f32 %v7542_v27, %v3583_v29  ;;  %v5371_v29 = vld [vmem:[%s6090_s14 + $0x8] sm:$0xff]   ;;  %v5373_v51 = vld [vmem:[%s6090_s14 + $0x18] sm:$0xff]  }
0x1009   : > { %v3562_v13 = vmul.f32 %v5689_v31, %v7491_v25  ;;  %5167 = vmatmul.mubr.msk.bf16.gmra.mrb[88].mxu0 %vm820_vm1, %v3615_v2  ;;  %v3604_v9 = vadd.f32 %v7542_v27, %v3582_v28  ;;  %v5375_v2 = vld [vmem:[%s6090_s14 + $0x28] sm:$0xff]   ;;  %v5376_v28 = vld [vmem:[%s6090_s14 + $0x30] sm:$0xff]   ;;  %v5377_v31 = vld [vmem:[%s6090_s14 + $0x38] sm:$0xff]  }
0x100a   : > { %v3585_v17 = vmul.f32 %v7532_v57, %v3563_v11  ;;  %v7610_v11 = vld [vmem:[%s748_s20] ss:$0 sm:$0xff] }
0x100b   : > { %v3616_v53 = vpack.c.bf16 %v3605_v37, %v3604_v9  ;;  %v3584_v20 = vmul.f32 %v7532_v57, %v3562_v13 }
0x100c   : > { %v3607_v4 = vadd.f32 %v7542_v27, %v3585_v17 }
0x100d   : > { %5170 = vmatprep.mubr.msk.bf16.mxu0 %vm820_vm1, %v3616_v53  ;;  %v3606_v19 = vadd.f32 %v7542_v27, %v3584_v20 }
0x100f   : > { %v3617_v16 = vpack.c.bf16 %v3607_v4, %v3606_v19 }
0x1011   : > { %5171 = vmatmul.mubr.msk.bf16.gmra.mrb[92].mxu0 %vm820_vm1, %v3617_v16 }
0x101b   : > { %v3494_v21 = vpop.xlane.xlu0 %3493 }
0x101c   : > { %v3516_v25 = vmul.f32 0.03125, %v3494_v21 }
0x101d   : > { %v3497_v38 = vpop.xlane.xlu1 %3496 }
0x101e   : > { %v3532_v56 = vadd.f32 1e-05, %v3516_v25  ;;  %v3517_v59 = vmul.f32 0.03125, %v3497_v38 }
0x101f   : > { %v3500_v42 = vpop.xlane.xlu0 %3499 }
0x1020   : > { %5690 = vrsqrt.f32 %v3532_v56  ;;  %v3533_v63 = vadd.f32 1e-05, %v3517_v59  ;;  %v3518_v39 = vmul.f32 0.03125, %v3500_v42 }
0x1021   : > { %v3503_v23 = vpop.xlane.xlu1 %3502 }
0x1022   : > { %5692 = vrsqrt.f32 %v3533_v63  ;;  %v3534_v26 = vadd.f32 1e-05, %v3518_v39  ;;  %v3519_v0 = vmul.f32 0.03125, %v3503_v23 }
0x1024   : > { %5694 = vrsqrt.f32 %v3534_v26  ;;  %v3535_v18 = vadd.f32 1e-05, %v3519_v0 }
0x1026   : > { %5696 = vrsqrt.f32 %v3535_v18 }
0x102a   : > { %v5691_v52 = vpop.eup %5690 }
0x102b   : > { %v3564_v36 = vmul.f32 %v5691_v52, %v7504_v55 }
0x102c   : > { %v5693_v6 = vpop.eup %5692 }
0x102d   : > { %v3565_v49 = vmul.f32 %v5693_v6, %v7507_v15  ;;  %v3586_v44 = vmul.f32 %v7532_v57, %v3564_v36 }
0x102e   : > { %v5695_v45 = vpop.eup %5694 }
0x102f   : > { %v3566_v32 = vmul.f32 %v5695_v45, %v7512_v43  ;;  %v3587_v3 = vmul.f32 %v7532_v57, %v3565_v49  ;;  %v3608_v7 = vadd.f32 %v7542_v27, %v3586_v44 }
0x1030   : > { %v5697_v8 = vpop.eup %5696 }
0x1031   : > { %v3567_v30 = vmul.f32 %v5697_v8, %v7518_v47  ;;  %v3609_v55 = vadd.f32 %v7542_v27, %v3587_v3  ;;  %v3588_v35 = vmul.f32 %v7532_v57, %v3566_v32  ;;  %v5370_v47 = vld [vmem:[%s6090_s14] sm:$0xff]  }
0x1032   : > { %5178 = vmatprep.subr.bf16.mxu1 %v5370_v47 }
0x1033   : > { %v3618_v15 = vpack.c.bf16 %v3609_v55, %v3608_v7  ;;  %v3589_v1 = vmul.f32 %v7532_v57, %v3567_v30  ;;  %v3610_v50 = vadd.f32 %v7542_v27, %v3588_v35  ;;  %5179 = vmatpush3.bf16.msra.mxu1 %v5370_v47  ;;  %v5372_v57 = vld [vmem:[%s6090_s14 + $0x10] sm:$0xff]  }
0x1034   : > { %5180 = vmatprep.subr.bf16.mxu1 %v5371_v29 }
0x1035   : > { %5174 = vmatprep.mubr.msk.bf16.mxu0 %vm820_vm1, %v3618_v15  ;;  %v3611_v43 = vadd.f32 %v7542_v27, %v3589_v1  ;;  %v5374_v27 = vld [vmem:[%s6090_s14 + $0x20] sm:$0xff]  }
0x1037   : > { %v3619_v46 = vpack.c.bf16 %v3611_v43, %v3610_v50  ;;  %5181 = vmatpush3.bf16.msra.mxu1 %v5371_v29 }
0x1038   : > { %5182 = vmatprep.subr.bf16.mxu1 %v5372_v57 }
0x1039   : > { %5175 = vmatmul.mubr.msk.bf16.gmra.mrb[96].mxu0 %vm820_vm1, %v3619_v46 }
0x103b   : > { %5183 = vmatpush3.bf16.msra.mxu1 %v5372_v57 }
0x103c   : > { %5184 = vmatprep.subr.bf16.mxu1 %v5373_v51 }
0x103f   : > { %5185 = vmatpush3.bf16.msra.mxu1 %v5373_v51 }
0x1040   : > { %5186 = vmatprep.subr.bf16.mxu1 %v5374_v27 }
0x1043   : > { %5187 = vmatpush3.bf16.msra.mxu1 %v5374_v27 }
0x1044   : > { %5188 = vmatprep.subr.bf16.mxu1 %v5375_v2 }
0x1047   : > { %5189 = vmatpush3.bf16.msra.mxu1 %v5375_v2 }
0x1048   : > { %5190 = vmatprep.subr.bf16.mxu1 %v5376_v28 }
0x104b   : > { %5191 = vmatpush3.bf16.msra.mxu1 %v5376_v28 }
0x104c   : > { %5192 = vmatprep.subr.bf16.mxu1 %v5377_v31 }
0x104f   : > { %5193 = vmatpush3.bf16.msra.mxu1 %v5377_v31 }
0x10d3   : > { %v5164_v37 = vpop.f32.mrb[84].mxu0 }
0x10d4   : > { %v3710_v13 = vadd.f32 %v5164_v37, %v7610_v11  ;;  %v3701_v9 = vpop.f32.mrb[85].mxu0 }
0x10d5   : > { %v7614_v17 = vadd.f32 %v7610_v11, %v3701_v9  ;;  %v5165_v53 = vpop.f32.mrb[86].mxu0 }
0x10d6   : > { %v3782_v20 = vmul.f32 0.044715, %v3710_v13  ;;  %v7617_v4 = vadd.f32 %v5165_v53, %v7610_v11  ;;  %v3704_v19 = vpop.f32.mrb[87].mxu0 }
0x10d7   : > { %v3780_v16 = vmul.f32 0.044715, %v7614_v17  ;;  %v7621_v21 = vadd.f32 %v7610_v11, %v3704_v19  ;;  %v3766_v19 = vmul.f32 0.5, %v3710_v13 }
0x10d8   : > { %v3798_v25 = vmul.f32 %v3782_v20, %v3710_v13  ;;  %v3783_v38 = vmul.f32 0.044715, %v7617_v4 }
0x10d9   : > { %v3796_v56 = vmul.f32 %v3780_v16, %v7614_v17  ;;  %v3781_v59 = vmul.f32 0.044715, %v7621_v21 }
0x10da   : > { %v3814_v42 = vmul.f32 %v3798_v25, %v3710_v13  ;;  %v3799_v63 = vmul.f32 %v3783_v38, %v7617_v4 }
0x10db   : > { %v3812_v39 = vmul.f32 %v3796_v56, %v7614_v17  ;;  %v3797_v23 = vmul.f32 %v3781_v59, %v7621_v21 }
0x10dc   : > { %v3830_v26 = vadd.f32 %v3814_v42, %v3710_v13  ;;  %v3815_v0 = vmul.f32 %v3799_v63, %v7617_v4  ;;  %v5168_v18 = vpop.f32.mrb[88].mxu0 }
0x10dd   : > { %v3813_v52 = vmul.f32 %v3797_v23, %v7621_v21  ;;  %v7632_v36 = vadd.f32 %v5168_v18, %v7610_v11  ;;  %v3717_v6 = vpop.f32.mrb[89].mxu0  ;;  %v3828_v49 = vadd.f32 %v3812_v39, %v7614_v17 }
0x10de   : > { %v3846_v44 = vmul.f32 0.7978846, %v3830_v26  ;;  %v3831_v45 = vadd.f32 %v3815_v0, %v7617_v4  ;;  %v7637_v32 = vadd.f32 %v7610_v11, %v3717_v6  ;;  %v5169_v3 = vpop.f32.mrb[90].mxu0 }
0x10df   : > { %v3786_v8 = vmul.f32 0.044715, %v7632_v36  ;;  %v7641_v30 = vadd.f32 %v5169_v3, %v7610_v11  ;;  %v3720_v7 = vpop.f32.mrb[91].mxu0  ;;  %v3829_v55 = vadd.f32 %v3813_v52, %v7621_v21  ;;  %v3844_v35 = vmul.f32 0.7978846, %v3828_v49 }
0x10e0   : > { %5698 = vtanh.f32 %v3846_v44  ;;  %v3847_v15 = vmul.f32 0.7978846, %v3831_v45  ;;  %v3784_v1 = vmul.f32 0.044715, %v7637_v32  ;;  %v7646_v50 = vadd.f32 %v7610_v11, %v3720_v7 }
0x10e1   : > { %v3802_v43 = vmul.f32 %v3786_v8, %v7632_v36  ;;  %v3787_v46 = vmul.f32 0.044715, %v7641_v30  ;;  %v3845_v47 = vmul.f32 0.7978846, %v3829_v55  ;;  %5700 = vtanh.f32 %v3844_v35 }
0x10e2   : > { %5702 = vtanh.f32 %v3847_v15  ;;  %v3800_v29 = vmul.f32 %v3784_v1, %v7637_v32  ;;  %v3785_v57 = vmul.f32 0.044715, %v7646_v50 }
0x10e3   : > { %v3818_v51 = vmul.f32 %v3802_v43, %v7632_v36  ;;  %v3803_v27 = vmul.f32 %v3787_v46, %v7641_v30  ;;  %5704 = vtanh.f32 %v3845_v47 }
0x10e4   : > { %v3816_v2 = vmul.f32 %v3800_v29, %v7637_v32  ;;  %v3801_v28 = vmul.f32 %v3785_v57, %v7646_v50  ;;  %v5172_v31 = vpop.f32.mrb[92].mxu0  ;;  %v3767_v57 = vmul.f32 0.5, %v7617_v4 }
0x10e5   : > { %v3819_v37 = vmul.f32 %v3803_v27, %v7641_v30  ;;  %v7658_v9 = vadd.f32 %v5172_v31, %v7610_v11  ;;  %v3733_v53 = vpop.f32.mrb[93].mxu0  ;;  %v3834_v20 = vadd.f32 %v3818_v51, %v7632_v36  ;;  %v3764_v27 = vmul.f32 0.5, %v7614_v17 }
0x10e6   : > { %v3817_v16 = vmul.f32 %v3801_v28, %v7646_v50  ;;  %v7663_v25 = vadd.f32 %v7610_v11, %v3733_v53  ;;  %v5173_v38 = vpop.f32.mrb[94].mxu0  ;;  %v3832_v56 = vadd.f32 %v3816_v2, %v7637_v32  ;;  %v3765_v31 = vmul.f32 0.5, %v7621_v21 }
0x10e7   : > { %v3790_v59 = vmul.f32 0.044715, %v7658_v9  ;;  %v7668_v42 = vadd.f32 %v5173_v38, %v7610_v11  ;;  %v3736_v63 = vpop.f32.mrb[95].mxu0  ;;  %v3835_v39 = vadd.f32 %v3819_v37, %v7641_v30  ;;  %v3850_v23 = vmul.f32 0.7978846, %v3834_v20 }
0x10e8   : > { %v3788_v26 = vmul.f32 0.044715, %v7663_v25  ;;  %v7673_v13 = vadd.f32 %v7610_v11, %v3736_v63  ;;  %v3833_v0 = vadd.f32 %v3817_v16, %v7646_v50  ;;  %v3848_v18 = vmul.f32 0.7978846, %v3832_v56 }
0x10e9   : > { %v3806_v52 = vmul.f32 %v3790_v59, %v7658_v9  ;;  %v3791_v6 = vmul.f32 0.044715, %v7668_v42  ;;  %v3851_v49 = vmul.f32 0.7978846, %v3835_v39  ;;  %5706 = vtanh.f32 %v3850_v23 }
0x10ea   : > { %v5699_v44 = vpop.eup %5698  ;;  %v3804_v45 = vmul.f32 %v3788_v26, %v7663_v25  ;;  %v3789_v3 = vmul.f32 0.044715, %v7673_v13  ;;  %v3849_v8 = vmul.f32 0.7978846, %v3833_v0  ;;  %5708 = vtanh.f32 %v3848_v18 }
0x10eb   : > { %v5701_v7 = vpop.eup %5700  ;;  %v3822_v55 = vmul.f32 %v3806_v52, %v7658_v9  ;;  %v3807_v35 = vmul.f32 %v3791_v6, %v7668_v42  ;;  %v3878_v15 = vadd.f32 1.0, %v5699_v44  ;;  %5710 = vtanh.f32 %v3851_v49 }
0x10ec   : > { %v5703_v1 = vpop.eup %5702  ;;  %v3820_v43 = vmul.f32 %v3804_v45, %v7663_v25  ;;  %v3805_v46 = vmul.f32 %v3789_v3, %v7673_v13  ;;  %v3876_v47 = vadd.f32 1.0, %v5701_v7  ;;  %5712 = vtanh.f32 %v3849_v8 }
0x10ed   : > { %v5705_v29 = vpop.eup %5704  ;;  %v3823_v51 = vmul.f32 %v3807_v35, %v7668_v42  ;;  %v3879_v2 = vadd.f32 1.0, %v5703_v1  ;;  %v3894_v20 = vmul.f32 %v3878_v15, %v3766_v19  ;;  %v3838_v4 = vadd.f32 %v3822_v55, %v7658_v9 }
0x10ee   : > { %v3821_v28 = vmul.f32 %v3805_v46, %v7673_v13  ;;  %v3877_v37 = vadd.f32 1.0, %v5705_v29  ;;  %v3892_v53 = vmul.f32 %v3876_v47, %v3764_v27  ;;  %v3836_v38 = vadd.f32 %v3820_v43, %v7663_v25 }
0x10ef   : > { %v3895_v16 = vmul.f32 %v3879_v2, %v3767_v57  ;;  %v3839_v63 = vadd.f32 %v3823_v51, %v7668_v42  ;;  %v3854_v0 = vmul.f32 0.7978846, %v3838_v4  ;;  %v3770_v45 = vmul.f32 0.5, %v7632_v36 }
0x10f0   : > { %v3893_v56 = vmul.f32 %v3877_v37, %v3765_v31  ;;  %v3837_v59 = vadd.f32 %v3821_v28, %v7673_v13  ;;  %v3852_v17 = vmul.f32 0.7978846, %v3836_v38  ;;  %v3771_v3 = vmul.f32 0.5, %v7641_v30 }
0x10f1   : > { %v3909_v39 = vpack.c.bf16 %v3895_v16, %v3894_v20  ;;  %v3855_v18 = vmul.f32 0.7978846, %v3839_v63  ;;  %v3768_v7 = vmul.f32 0.5, %v7637_v32  ;;  %v3769_v55 = vmul.f32 0.5, %v7646_v50 }
0x10f2   : > { %v3908_v23 = vpack.c.bf16 %v3893_v56, %v3892_v53  ;;  %v3853_v26 = vmul.f32 0.7978846, %v3837_v59  ;;  %5714 = vtanh.f32 %v3852_v17  ;;  %v3772_v30 = vmul.f32 0.5, %v7663_v25 }
0x10f3   : > { %v5707_v21 = vpop.eup %5706  ;;  %v3773_v2 = vmul.f32 0.5, %v7673_v13  ;;  %v3774_v50 = vmul.f32 0.5, %v7658_v9  ;;  %v3775_v20 = vmul.f32 0.5, %v7668_v42 }
0x10f4   : > { %v5709_v52 = vpop.eup %5708  ;;  %5194 = vmatprep.mubr.bf16.mxu1 %v3908_v23  ;;  %v3882_v19 = vadd.f32 1.0, %v5707_v21  ;;  %5716 = vtanh.f32 %v3853_v26 }
0x10f5   : > { %v5711_v6 = vpop.eup %5710  ;;  %5195 = vmatmul.mubr.bf16.vlgmr.msra.gmra.mrb[76].mxu1 %v3909_v39  ;;  %v3880_v49 = vadd.f32 1.0, %v5709_v52  ;;  %5718 = vtanh.f32 %v3854_v0 }
0x10f6   : > { %v5713_v44 = vpop.eup %5712  ;;  %v3883_v8 = vadd.f32 1.0, %v5711_v6  ;;  %5720 = vtanh.f32 %v3855_v18  ;;  %v3898_v15 = vmul.f32 %v3882_v19, %v3770_v45 }
0x10f7   : > { %v3881_v35 = vadd.f32 1.0, %v5713_v44  ;;  %v3896_v43 = vmul.f32 %v3880_v49, %v3768_v7 }
0x10f8   : > { %v3899_v1 = vmul.f32 %v3883_v8, %v3771_v3 }
0x10f9   : > { %v3897_v46 = vmul.f32 %v3881_v35, %v3769_v55 }
0x10fa   : > { %v3911_v47 = vpack.c.bf16 %v3899_v1, %v3898_v15 }
0x10fb   : > { %v3910_v29 = vpack.c.bf16 %v3897_v46, %v3896_v43 }
0x10fc   : > { %v5715_v57 = vpop.eup %5714 }
0x10fd   : > { %5198 = vmatprep.mubr.bf16.mxu1 %v3910_v29  ;;  %v3884_v36 = vadd.f32 1.0, %v5715_v57 }
0x10fe   : > { %v5717_v51 = vpop.eup %5716  ;;  %5199 = vmatmul.mubr.bf16.gmra.mrb[80].mxu1 %v3911_v47 }
0x10ff   : > { %v5719_v27 = vpop.eup %5718  ;;  %v3885_v32 = vadd.f32 1.0, %v5717_v51  ;;  %v3900_v37 = vmul.f32 %v3884_v36, %v3772_v30 }
0x1100   : > { %v5721_v28 = vpop.eup %5720  ;;  %v3886_v31 = vadd.f32 1.0, %v5719_v27 }
0x1101   : > { %v3901_v53 = vmul.f32 %v3885_v32, %v3773_v2  ;;  %v3887_v16 = vadd.f32 1.0, %v5721_v28 }
0x1102   : > { %v3902_v56 = vmul.f32 %v3886_v31, %v3774_v50 }
0x1103   : > { %v3912_v38 = vpack.c.bf16 %v3901_v53, %v3900_v37  ;;  %v3903_v59 = vmul.f32 %v3887_v16, %v3775_v20 }
0x1105   : > { %5202 = vmatprep.mubr.bf16.mxu1 %v3912_v38  ;;  %v3913_v4 = vpack.c.bf16 %v3903_v59, %v3902_v56  ;;  %v4663_v59 = vld [vmem:[%s756_s27] ss:$0 sm:$0xff]  ;;  %s8008_s27 = sld [smem:[#allocation20_spill]] (!%p4672_p1) }
0x1107   : > { %5203 = vmatmul.mubr.bf16.gmra.mrb[84].mxu1 %v3913_v4 }
0x110c   : > { %v5176_v63 = vpop.f32.mrb[96].mxu0 }
0x110d   : > { %v3758_v25 = vadd.f32 %v5176_v63, %v7610_v11  ;;  %v3749_v13 = vpop.f32.mrb[97].mxu0 }
0x110e   : > { %v3750_v39 = vadd.f32 %v7610_v11, %v3749_v13  ;;  %v5177_v17 = vpop.f32.mrb[98].mxu0 }
0x110f   : > { %v3794_v9 = vmul.f32 0.044715, %v3758_v25  ;;  %v3761_v23 = vadd.f32 %v5177_v17, %v7610_v11  ;;  %v3752_v26 = vpop.f32.mrb[99].mxu0  ;;  %v3778_v30 = vmul.f32 0.5, %v3758_v25 }
0x1110   : > { %v3792_v0 = vmul.f32 0.044715, %v3750_v39  ;;  %v3753_v42 = vadd.f32 %v7610_v11, %v3752_v26  ;;  %v3776_v28 = vmul.f32 0.5, %v3750_v39 }
0x1111   : > { %v3810_v18 = vmul.f32 %v3794_v9, %v3758_v25  ;;  %v3795_v21 = vmul.f32 0.044715, %v3761_v23  ;;  %v3779_v2 = vmul.f32 0.5, %v3761_v23 }
0x1112   : > { %v3808_v52 = vmul.f32 %v3792_v0, %v3750_v39  ;;  %v3793_v19 = vmul.f32 0.044715, %v3753_v42  ;;  %v3777_v50 = vmul.f32 0.5, %v3753_v42 }
0x1113   : > { %v3826_v6 = vmul.f32 %v3810_v18, %v3758_v25  ;;  %v3811_v49 = vmul.f32 %v3795_v21, %v3761_v23 }
0x1114   : > { %v3824_v44 = vmul.f32 %v3808_v52, %v3750_v39  ;;  %v3809_v45 = vmul.f32 %v3793_v19, %v3753_v42 }
0x1115   : > { %v3827_v3 = vmul.f32 %v3811_v49, %v3761_v23  ;;  %v3842_v8 = vadd.f32 %v3826_v6, %v3758_v25 }
0x1116   : > { %v3825_v7 = vmul.f32 %v3809_v45, %v3753_v42  ;;  %v3840_v55 = vadd.f32 %v3824_v44, %v3750_v39 }
0x1117   : > { %v3843_v35 = vadd.f32 %v3827_v3, %v3761_v23  ;;  %v3858_v15 = vmul.f32 0.7978846, %v3842_v8 }
0x1118   : > { %v3841_v1 = vadd.f32 %v3825_v7, %v3753_v42  ;;  %v3856_v43 = vmul.f32 0.7978846, %v3840_v55 }
0x1119   : > { %v3859_v46 = vmul.f32 0.7978846, %v3843_v35  ;;  %5722 = vtanh.f32 %v3858_v15 }
0x111a   : > { %v3857_v47 = vmul.f32 0.7978846, %v3841_v1  ;;  %5724 = vtanh.f32 %v3856_v43 }
0x111b   : > { %5726 = vtanh.f32 %v3859_v46 }
0x111c   : > { %5728 = vtanh.f32 %v3857_v47 }
0x1123   : > { %v5723_v11 = vpop.eup %5722 }
0x1124   : > { %v5725_v29 = vpop.eup %5724  ;;  %v3890_v57 = vadd.f32 1.0, %v5723_v11 }
0x1125   : > { %v5727_v51 = vpop.eup %5726  ;;  %v3888_v36 = vadd.f32 1.0, %v5725_v29 }
0x1126   : > { %v5729_v27 = vpop.eup %5728  ;;  %v3891_v32 = vadd.f32 1.0, %v5727_v51  ;;  %v3906_v37 = vmul.f32 %v3890_v57, %v3778_v30 }
0x1127   : > { %v3889_v31 = vadd.f32 1.0, %v5729_v27  ;;  %v3904_v20 = vmul.f32 %v3888_v36, %v3776_v28  ;;  %v4124_v28 = vld [vmem:[%s8008_s27 + $0x20] sm:$0xff] (!%p4672_p1) }
0x1128   : > { %v3907_v53 = vmul.f32 %v3891_v32, %v3779_v2  ;;  %v4121_v2 = vld [vmem:[%s8008_s27 + $0x8] sm:$0xff] (!%p4672_p1) }
0x1129   : > { %v3905_v16 = vmul.f32 %v3889_v31, %v3777_v50  ;;  %v4125_v32 = vld [vmem:[%s8008_s27 + $0x28] sm:$0xff] (!%p4672_p1)  ;;  %v4127_v50 = vld [vmem:[%s8008_s27 + $0x38] sm:$0xff] (!%p4672_p1)  ;;  %v4126_v31 = vld [vmem:[%s8008_s27 + $0x30] sm:$0xff] (!%p4672_p1) }
0x112a   : > { %v3915_v38 = vpack.c.bf16 %v3907_v53, %v3906_v37  ;;  %v4129_v37 = vld [vmem:[%s8008_s27 + $0x48] sm:$0xff] (!%p4672_p1)  ;;  %v4128_v53 = vld [vmem:[%s8008_s27 + $0x40] sm:$0xff] (!%p4672_p1) }
0x112b   : > { %v3914_v56 = vpack.c.bf16 %v3905_v16, %v3904_v20  ;;  %v4131_v20 = vld [vmem:[%s8008_s27 + $0x58] sm:$0xff] (!%p4672_p1)  ;;  %v4130_v16 = vld [vmem:[%s8008_s27 + $0x50] sm:$0xff] (!%p4672_p1) }
0x112d   : > { %5206 = vmatprep.mubr.bf16.mxu1 %v3914_v56  ;;  %v4132_v56 = vld [vmem:[%s8008_s27 + $0x60] sm:$0xff] (!%p4672_p1) }
0x112e   : > { %5207 = vmatmul.mubr.bf16.gmra.mrb[88].mxu1 %v3915_v38  ;;  %v4133_v38 = vld [vmem:[%s8008_s27 + $0x68] sm:$0xff] (!%p4672_p1) }
0x11c8   : > { %v5196_v4 = vpop.f32.mrb[76].mxu1 }
0x11c9   : > { %v4030_v63 = vadd.f32 %v5196_v4, %v4663_v59  ;;  %v4021_v25 = vpop.f32.mrb[77].mxu1  ;;  %v4134_v4 = vld [vmem:[%s8008_s27 + $0x70] sm:$0xff] (!%p4672_p1) }
0x11ca   : > { %v4022_v13 = vadd.f32 %v4663_v59, %v4021_v25  ;;  %v5197_v39 = vpop.f32.mrb[78].mxu1  ;;  %v4270_v25 = vld [vmem:[%s8009_s16 + $0x8] sm:$0xff] (!%p4672_p1) }
0x11cb   : > { %v7711_v17 = vadd.f32 %v4030_v63, %v7354_v62  ;;  %v4033_v9 = vadd.f32 %v5197_v39, %v4663_v59  ;;  %v4024_v23 = vpop.f32.mrb[79].mxu1  ;;  %v4269_v63 = vld [vmem:[%s8009_s16] sm:$0xff] (!%p4672_p1)  ;;  %v5862_v39 = vmov (!%p4672_p1), 0.0|0.0  }
0x11cc   : > { %v7714_v26 = vadd.f32 %v4022_v13, %v7351_v33  ;;  %v4025_v0 = vadd.f32 %v4663_v59, %v4024_v23  ;;  %v4271_v13 = vld [vmem:[%s8009_s16 + $0x10] sm:$0xff] (!%p4672_p1)  ;;  %5221 = vmatprep.subr.bf16.mxu0 (!%p4672_p1), %v5862_v39  ;;  %v4272_v23 = vld [vmem:[%s8009_s16 + $0x18] sm:$0xff] (!%p4672_p1) }
0x11cd   : > { %4102 = vst.msk [vmem:[#allocation2 + $0x10] sm:$0xff] %vm820_vm1, %v7711_v17  ;;  %v7719_v42 = vadd.f32 %v4033_v9, %v7363_v48  ;;  %v5222_v9 = vpack.c.bf16 (!%p4672_p1), %v4270_v25, %v4269_v63 }
0x11ce   : > { %4100 = vst.msk [vmem:[#allocation2] sm:$0xff] %vm820_vm1, %v7714_v26  ;;  %v7724_v18 = vadd.f32 %v4025_v0, %v7357_v10  ;;  %v5864_v0 = vmov (!%p4672_p1), 0.0  }
0x11cf   : > { %4103 = vst.msk [vmem:[#allocation2 + $0x18] sm:$0xff] %vm820_vm1, %v7719_v42  ;;  %5218 = vmatprep.mubr.msk.f32.mxu0 (!%p4672_p1), %vm5863_vm6, %v5864_v0  ;;  %5223 = vmatpush3.bf16.msra.mxu0 (!%p4672_p1), %v5222_v9 }
0x11d0   : > { %4101 = vst.msk [vmem:[#allocation2 + $0x8] sm:$0xff] %vm820_vm1, %v7724_v18  ;;  %5224 = vmatprep.subr.bf16.mxu0 (!%p4672_p1), %v5862_v39 }
0x11d1   : > { %v5200_v33 = vpop.f32.mrb[80].mxu1 }
0x11d2   : > { %v4046_v62 = vadd.f32 %v5200_v33, %v4663_v59  ;;  %v4037_v21 = vpop.f32.mrb[81].mxu1  ;;  %v5225_v33 = vpack.c.bf16 (!%p4672_p1), %v4272_v23, %v4271_v13 }
0x11d3   : > { %v4038_v52 = vadd.f32 %v4663_v59, %v4037_v21  ;;  %v5201_v19 = vpop.f32.mrb[82].mxu1 }
0x11d4   : > { %v7731_v48 = vadd.f32 %v4046_v62, %v7381_v24  ;;  %v4049_v6 = vadd.f32 %v5201_v19, %v4663_v59  ;;  %v4040_v49 = vpop.f32.mrb[83].mxu1  ;;  %5226 = vmatpush3.bf16.msra.mxu0 (!%p4672_p1), %v5225_v33 }
0x11d5   : > { %v7734_v44 = vadd.f32 %v4038_v52, %v7371_v58  ;;  %v4041_v10 = vadd.f32 %v4663_v59, %v4040_v49 }
0x11d6   : > { %4106 = vst.msk [vmem:[#allocation2 + $0x30] sm:$0xff] %vm820_vm1, %v7731_v48  ;;  %v7739_v45 = vadd.f32 %v4049_v6, %v7377_v22 }
0x11d7   : > { %4104 = vst.msk [vmem:[#allocation2 + $0x20] sm:$0xff] %vm820_vm1, %v7734_v44  ;;  %v7744_v3 = vadd.f32 %v4041_v10, %v7373_v41 }
0x11d8   : > { %4107 = vst.msk [vmem:[#allocation2 + $0x38] sm:$0xff] %vm820_vm1, %v7739_v45 }
0x11d9   : > { %4105 = vst.msk [vmem:[#allocation2 + $0x28] sm:$0xff] %vm820_vm1, %v7744_v3 }
0x11da   : > { %v5204_v58 = vpop.f32.mrb[84].mxu1 }
0x11db   : > { %v4062_v24 = vadd.f32 %v5204_v58, %v4663_v59  ;;  %v4053_v8 = vpop.f32.mrb[85].mxu1 }
0x11dc   : > { %v4054_v7 = vadd.f32 %v4663_v59, %v4053_v8  ;;  %v5205_v55 = vpop.f32.mrb[86].mxu1 }
0x11dd   : > { %v7751_v22 = vadd.f32 %v4062_v24, %v7401_v60  ;;  %v4065_v35 = vadd.f32 %v5205_v55, %v4663_v59  ;;  %v4056_v15 = vpop.f32.mrb[87].mxu1 }
0x11de   : > { %v7754_v1 = vadd.f32 %v4054_v7, %v7391_v5  ;;  %v4057_v41 = vadd.f32 %v4663_v59, %v4056_v15 }
0x11df   : > { %4110 = vst.msk [vmem:[#allocation2 + $0x50] sm:$0xff] %vm820_vm1, %v7751_v22  ;;  %v7759_v43 = vadd.f32 %v4065_v35, %v7397_v40 }
0x11e0   : > { %4108 = vst.msk [vmem:[#allocation2 + $0x40] sm:$0xff] %vm820_vm1, %v7754_v1  ;;  %v7764_v46 = vadd.f32 %v4057_v41, %v7393_v54 }
0x11e1   : > { %4111 = vst.msk [vmem:[#allocation2 + $0x58] sm:$0xff] %vm820_vm1, %v7759_v43 }
0x11e2   : > { %4109 = vst.msk [vmem:[#allocation2 + $0x48] sm:$0xff] %vm820_vm1, %v7764_v46 }
0x1201   : > { %v5208_v5 = vpop.f32.mrb[88].mxu1 }
0x1202   : > { %v4078_v60 = vadd.f32 %v5208_v5, %v4663_v59  ;;  %v4069_v47 = vpop.f32.mrb[89].mxu1 }
0x1203   : > { %v4070_v11 = vadd.f32 %v4663_v59, %v4069_v47  ;;  %v5209_v29 = vpop.f32.mrb[90].mxu1  ;;  %4119 = sbr.rel (%p4672_p1) target bundleno = 5167 (0x142f), region = 92 }
0x1204   : > { %v7771_v40 = vadd.f32 %v4078_v60, %v7415_v61  ;;  %v4081_v57 = vadd.f32 %v5209_v29, %v4663_v59  ;;  %v4072_v51 = vpop.f32.mrb[91].mxu1  ;;  %v4120_v61 = vld [vmem:[%s8008_s27] sm:$0xff] (!%p4672_p1) }
0x1205   : > { %v7774_v36 = vadd.f32 %v4070_v11, %v7412_v34  ;;  %v4073_v54 = vadd.f32 %v4663_v59, %v4072_v51  ;;  %v4122_v34 = vld [vmem:[%s8008_s27 + $0x10] sm:$0xff] (!%p4672_p1)  ;;  %v4135_v59 = vld [vmem:[%s8008_s27 + $0x78] sm:$0xff] (!%p4672_p1) }
0x1206   : > { %4114 = vst.msk [vmem:[#allocation2 + $0x70] sm:$0xff] %vm820_vm1, %v7771_v40  ;;  %v7779_v27 = vadd.f32 %v4081_v57, %v7421_v14  ;;  %v4123_v14 = vld [vmem:[%s8008_s27 + $0x18] sm:$0xff] (!%p4672_p1) }
0x1207   : > { %4112 = vst.msk [vmem:[#allocation2 + $0x60] sm:$0xff] %vm820_vm1, %v7774_v36  ;;  %v7784_v30 = vadd.f32 %v4073_v54, %v7417_v12  ;;  %v5861_v12 = vmov (!%p4672_p1), 0  }
0x1208   : > { %4115 = vst.msk [vmem:[#allocation2 + $0x78] sm:$0xff] %vm820_vm1, %v7779_v27  ;;  %5748 = vset.pattern.permute.xlu1 (!%p4672_p1), %v5861_v12  ;;  %5747 = vset.pattern.permute.xlu0 (!%p4672_p1), %v5861_v12 }
0x1209   : > { %4113 = vst.msk [vmem:[#allocation2 + $0x68] sm:$0xff] %vm820_vm1, %v7784_v30  ;;  %4148 = vperm.xlu1 (!%p4672_p1), %5748, %v4122_v34   ;;  %4138 = vperm.xlu0 (!%p4672_p1), %5747, %v4120_v61  }
0x120d   : > { %4153 = vperm.xlu1 %5748, %v4123_v14   ;;  %4143 = vperm.xlu0 %5747, %v4121_v2  }
0x1211   : > { %4163 = vperm.xlu1 %5748, %v4125_v32   ;;  %4158 = vperm.xlu0 %5747, %v4124_v28  }
0x1215   : > { %4173 = vperm.xlu1 %5748, %v4127_v50   ;;  %4168 = vperm.xlu0 %5747, %v4126_v31  }
0x1219   : > { %4183 = vperm.xlu1 %5748, %v4129_v37   ;;  %4178 = vperm.xlu0 %5747, %v4128_v53  }
0x121d   : > { %4193 = vperm.xlu1 %5748, %v4131_v20   ;;  %4188 = vperm.xlu0 %5747, %v4130_v16  }
0x1221   : > { %4203 = vperm.xlu1 %5748, %v4133_v38   ;;  %4198 = vperm.xlu0 %5747, %v4132_v56  }
0x1225   : > { %4213 = vperm.xlu1 %5748, %v4135_v59   ;;  %4208 = vperm.xlu0 %5747, %v4134_v4  }
0x1288   : > { %v4149_v62 = vpop.permute.xlu1 %4148  ;;  %v4139_v21 = vpop.permute.xlu0 %4138 }
0x1289   : > { %v4216_v52 = vmul.f32 %v4139_v21, %v7714_v26  ;;  %v4218_v49 = vmul.f32 %v4149_v62, %v7711_v17 }
0x128b   : > { %v4232_v58 = vsel %vm820_vm1, %v4216_v52, 0.0  ;;  %v4235_v15 = vsel %vm820_vm1, %v4218_v49, 0.0 }
0x128c   : > { %v4154_v19 = vpop.permute.xlu1 %4153  ;;  %v4144_v6 = vpop.permute.xlu0 %4143 }
0x128d   : > { %v4217_v10 = vmul.f32 %v4144_v6, %v7724_v18  ;;  %v4219_v24 = vmul.f32 %v4154_v19, %v7719_v42 }
0x128f   : > { %v4233_v8 = vsel %vm820_vm1, %v4217_v10, 0.0  ;;  %v4237_v5 = vsel %vm820_vm1, %v4219_v24, 0.0 }
0x1290   : > { %v4234_v7 = vadd.f32 %v4233_v8, %v4232_v58  ;;  %v4164_v55 = vpop.permute.xlu1 %4163  ;;  %v4159_v35 = vpop.permute.xlu0 %4158 }
0x1291   : > { %v4220_v41 = vmul.f32 %v4159_v35, %v7734_v44  ;;  %v4221_v17 = vmul.f32 %v4164_v55, %v7744_v3 }
0x1292   : > { %v4236_v26 = vadd.f32 %v4235_v15, %v4234_v7 }
0x1293   : > { %v4239_v11 = vsel %vm820_vm1, %v4220_v41, 0.0  ;;  %v4241_v57 = vsel %vm820_vm1, %v4221_v17, 0.0 }
0x1294   : > { %v4238_v60 = vadd.f32 %v4237_v5, %v4236_v26  ;;  %v4174_v18 = vpop.permute.xlu1 %4173  ;;  %v4169_v47 = vpop.permute.xlu0 %4168 }
0x1295   : > { %v4222_v42 = vmul.f32 %v4169_v47, %v7731_v48  ;;  %v4223_v51 = vmul.f32 %v4174_v18, %v7739_v45 }
0x1296   : > { %v4240_v29 = vadd.f32 %v4239_v11, %v4238_v60 }
0x1297   : > { %v4243_v61 = vsel %vm820_vm1, %v4222_v42, 0.0  ;;  %v4245_v14 = vsel %vm820_vm1, %v4223_v51, 0.0 }
0x1298   : > { %v4242_v54 = vadd.f32 %v4241_v57, %v4240_v29  ;;  %v4184_v34 = vpop.permute.xlu1 %4183  ;;  %v4179_v44 = vpop.permute.xlu0 %4178 }
0x1299   : > { %v4224_v12 = vmul.f32 %v4179_v44, %v7754_v1  ;;  %v4225_v2 = vmul.f32 %v4184_v34, %v7764_v46 }
0x129a   : > { %v4244_v3 = vadd.f32 %v4243_v61, %v4242_v54 }
0x129b   : > { %v4247_v50 = vsel %vm820_vm1, %v4224_v12, 0.0  ;;  %v4249_v37 = vsel %vm820_vm1, %v4225_v2, 0.0 }
0x129c   : > { %v4246_v32 = vadd.f32 %v4245_v14, %v4244_v3  ;;  %v4194_v28 = vpop.permute.xlu1 %4193  ;;  %v4189_v48 = vpop.permute.xlu0 %4188 }
0x129d   : > { %v4226_v31 = vmul.f32 %v4189_v48, %v7751_v22  ;;  %v4227_v53 = vmul.f32 %v4194_v28, %v7759_v43 }
0x129e   : > { %v4248_v45 = vadd.f32 %v4247_v50, %v4246_v32 }
0x129f   : > { %v4251_v38 = vsel %vm820_vm1, %v4226_v31, 0.0  ;;  %v4253_v59 = vsel %vm820_vm1, %v4227_v53, 0.0 }
0x12a0   : > { %v4250_v20 = vadd.f32 %v4249_v37, %v4248_v45  ;;  %v4204_v16 = vpop.permute.xlu1 %4203  ;;  %v4199_v1 = vpop.permute.xlu0 %4198 }
0x12a1   : > { %v4228_v56 = vmul.f32 %v4199_v1, %v7774_v36  ;;  %v4229_v4 = vmul.f32 %v4204_v16, %v7784_v30 }
0x12a2   : > { %v4252_v46 = vadd.f32 %v4251_v38, %v4250_v20 }
0x12a3   : > { %v4255_v13 = vsel %vm820_vm1, %v4228_v56, 0.0  ;;  %v4257_v9 = vsel %vm820_vm1, %v4229_v4, 0.0 }
0x12a4   : > { %v4254_v63 = vadd.f32 %v4253_v59, %v4252_v46  ;;  %v4214_v25 = vpop.permute.xlu1 %4213  ;;  %v4209_v22 = vpop.permute.xlu0 %4208 }
0x12a5   : > { %v4230_v39 = vmul.f32 %v4209_v22, %v7771_v40  ;;  %v4231_v23 = vmul.f32 %v4214_v25, %v7779_v27 }
0x12a6   : > { %v4256_v43 = vadd.f32 %v4255_v13, %v4254_v63 }
0x12a7   : > { %v4259_v36 = vsel %vm820_vm1, %v4230_v39, 0.0  ;;  %v4261_v62 = vsel %vm820_vm1, %v4231_v23, 0.0 }
0x12a8   : > { %v4258_v0 = vadd.f32 %v4257_v9, %v4256_v43 }
0x12aa   : > { %v4260_v33 = vadd.f32 %v4259_v36, %v4258_v0 }
0x12ac   : > { %v4262_v21 = vadd.f32 %v4261_v62, %v4260_v33 }
0x12ae   : > { %v4263_v30 = vrot.slane %v4262_v21, 4 }
0x12b0   : > { %v4264_v52 = vadd.f32 %v4263_v30, %v4262_v21 }
0x12b2   : > { %v4265_v19 = vrot.slane %v4264_v52, 2 }
0x12b4   : > { %v4266_v6 = vadd.f32 %v4265_v19, %v4264_v52 }
0x12b6   : > { %v4267_v49 = vrot.slane %v4266_v6, 1 }
0x12b8   : > { %v4268_v10 = vadd.f32 %v4267_v49, %v4266_v6 }
0x12ba   : > { %5219 = vmatmul.mubr.msk.f32.vlgmr.msra.gmra.mrb[0].mxu0 %vm820_vm1, %v4268_v10 }
0x138d   : > { %v4342_v40 = vpop.f32.mrb[0].mxu0 }
0x138e   : > { %v4346_v58 = vmul.f32 %v4342_v40, %v4342_v40  ;;  %v5220_v27 = vpop.f32.mrb[1].mxu0 }
0x1390   : > { %v4348_v24 = vsel %vm4347_vm7, %v4346_v58, 0.0 }
0x1391   : > { %4349 = vadd.xlane.f32.xlu0 %v4348_v24 }
0x141e   : > { %v4350_v8 = vpop.xlane.xlu0 %4349 }
0x141f   : > { %v4351_v7 = vadd.f32 1e-12, %v4350_v8 }
0x1421   : > { %5749 = vrsqrt.f32 %v4351_v7 }
0x142b   : > { %v5750_v55 = vpop.eup %5749 }
0x142c   : > { %v4353_v35 = vmul.f32 %v5750_v55, %v4342_v40 }
0x142e   : > { %4354 = vst.msk [vmem:[%s6098_s30] sm:$0x1] %vm4347_vm7, %v4353_v35 }
0x142f PF: > { %s8010_s0 = sld [smem:[#allocation10_spill]]  ;;  %s8012_s29 = sld [smem:[#allocation32_spill]] }
0x1430   : > { %s4368_s20 = sshll.u32 %s6098_s30, 4  ;;  %s8013_s23 = sand.u32 1, %s5821_s22   ;;  %s4369_s20 = int_to_ptr.vmem [resolvable:$true] %s4368_s20 }
0x1431   : > { %s4356_s21 = scalar_lea.sflag [#allocation5], %s8013_s23  ;;  %s5751_s27 = scalar_lea.vmem %s4369_s20, 16 }
0x1432   : > { %p5752_p2 = scmp.ne.s32.totalorder %s4369_s20, %s5751_s27  ;;  %s5865_s18 = smov [#allocation4]  }
0x1433   : > { %s5755_s28 = sshll.u32 %s5865_s18, 4  ;;  %s5756_s28 = int_to_ptr.vmem [resolvable:$false] %s5755_s28 }
0x1434   : > { %p5753_p4 = pnand %p5752_p2, %p6000_p3  ;;  %s5757_s2 = scalar_lea.vmem %s5756_s28, 32 }
0x1435   : > { %s4674_s3 = sshll.u32 %s8010_s0, 4  ;;  %p5758_p6 = scmp.lt.s32.totalorder %s4369_s20, %s5756_s28 }
0x1436   : > { %s7857_s14 = scalar_lea.hbm %s8012_s29, %s4674_s3  ;;  %p5754_p5 = pneg %p5753_p4 }
0x1437   : > { %p5759_p7 = scmp.lt.s32.totalorder %s5757_s2, %s5751_s27 }
0x1439   : > { %p5760_p8 = por %p5759_p7, %p5758_p6 }
0x143b   : > { %p5761_p10 = pnand %p5760_p8, %p5754_p5 }
0x143d   : > { %5764 = shalt.err (!%p5761_p10)
}
0x143e   : > { %s5765_s30 = scalar_lea.hbm %s7857_s14, 16  ;;  %s5769_s17 = scalar_lea.hbm %s8012_s29, 32 }
0x143f   : > { %p5766_p11 = scmp.ne.s32.totalorder %s7857_s14, %s5765_s30  ;;  %p5770_p0 = scmp.lt.u32.totalorder %s7857_s14, %s8012_s29 }
0x1440   : > { %p5771_p1 = scmp.lt.u32.totalorder %s5769_s17, %s5765_s30  ;;  %p5773_p4 = scmp.lt.u32.totalorder %s5765_s30, %s7857_s14 }
0x1441   : > { %p5767_p12 = pnand %p5766_p11, %p6000_p3 }
0x1442   : > { %p5772_p2 = por %p5771_p1, %p5770_p0 }
0x1443   : > { %p5768_p13 = pneg %p5767_p12 }
0x1444   : > { %p5774_p5 = por %p5773_p4, %p5772_p2 }
0x1446   : > { %p5775_p6 = pnand %p5774_p5, %p5768_p13 }
0x1448   : > { %5778 = shalt.err (!%p5775_p6)
}
0x1449   : > { %5275 = dma.vmem_to_hbm [thread:$0]  (%p6000_p3), %s4369_s20, 16, %s7857_s14, %s4356_s21  }
0x144a PF: > { %s8014_s0 = sld [smem:[#allocation13_spill]]  ;;  %s8015_s3 = sld [smem:[#allocation7_spill]] }
0x1450   : > { %p5281_p7 = scmp.ge.s32.totalorder %s8014_s0, 2  ;;  %s4380_s19 = sand.u32 1, %s8015_s3  }
0x1451   : > { %s4381_s23 = scalar_lea.sflag [#allocation5], %s4380_s19 }
0x1452   : > { %p5278_p8 = pnand %p5281_p7, %p6010_p9 }
0x1454   : > { %5812 = dma.done.wait (!%p5278_p8), %s4381_s23, 16  }
0x1455   : > { %5814 = vsyncadd (!%p5278_p8), %s4381_s23, 4294967280  ;;  %s29_s28 = sadd.s32 1, %s8014_s0   ;;  %s8017_s27 = sld [smem:[#allocation8_spill]] }
0x1456   : > { %p26_p10 = scmp.ge.s32.totalorder %s29_s28, 6   ;;  %s8018_s23 = sld [smem:[#allocation18_spill]] }
0x1457   : > { %s8019_s24 = sld [smem:[#allocation11_spill]]  ;;  %s8020_s25 = sld [smem:[#allocation12_spill]] }
0x1458   : > { %s8021_s26 = sld [smem:[#allocation14_spill]]  ;;  %s8022_s5 = sld [smem:[#allocation16_spill]] }
0x1459   : > { %s8023_s21 = smov %s5821_s22  ;;  %28 = sbr.rel (!%p26_p10) target bundleno = 14 (0xe), region = 169 }
0x145b   : > { %s8024_s22 = smov %s8017_s27 }
0x145e   : > { %s8025_s27 = smov %s8022_s5 }
0x1460   :  { %4385 = vsyncpa [#allocation5], 1 }
0x1461   :  { %4387 = vsyncpa [#allocation5 + $0x1], 1 }

</bundles_post_ra>
